<compile_context>
chip_gen: v6e
topology: v6e:2x2x1
jax: 0.10.0
libtpu: 0.0.40
codegen_flags: <defaults>
</compile_context>

<pallas_src>
import functools
import math

import jax
import jax.numpy as jnp
from jax import lax
from jax.experimental import pallas as pl
from jax.experimental.pallas import tpu as pltpu

# Flat ordering of the stacked per-layer parameter arrays handed to the kernel.
ENC_KEYS = ("w_qkv", "b_qkv", "w_o", "b_o", "ln1_g", "ln1_b",
            "w1", "b1", "w2", "b2", "ln2_g", "ln2_b")
DEC_KEYS = ("a1_w_qkv", "a1_b_qkv", "a1_w_o", "a1_b_o", "a1_ln_g", "a1_ln_b",
            "a2_w_q", "a2_b_q", "a2_w_kv", "a2_b_kv", "a2_w_o", "a2_b_o",
            "a2_ln_g", "a2_ln_b",
            "f_w1", "f_b1", "f_w2", "f_b2", "f_ln_g", "f_ln_b")
N_ENC = len(ENC_KEYS)
N_DEC = len(DEC_KEYS)


# ----------------------------- in-kernel helpers -----------------------------

def _layer_norm(x, g, b):
    """torch.nn.LayerNorm (biased variance, eps=1e-5)."""
    mean = jnp.mean(x, axis=-1, keepdims=True)
    var = jnp.mean((x - mean) ** 2, axis=-1, keepdims=True)
    return (x - mean) * lax.rsqrt(var + 1e-5) * g + b


def _bd_masks(H, nH, Tk, d):
    """Static block-diagonal selector masks for lane-packed multi-head attention.

    bd_k[r, h*Tk+j] = 1 iff feature row r belongs to head h     -> (H, nH*Tk)
    bd_v[h*Tk+j, c] = 1 iff feature col c belongs to head h     -> (nH*Tk, H)
    seg [c1, c2]    = 1 iff c1, c2 are in the same head segment -> (nH*Tk, nH*Tk)
    Built from 2-D iota + compares only (no integer division / reshapes).
    """
    nk = nH * Tk
    r_k = lax.broadcasted_iota(jnp.int32, (H, nk), 0)
    c_k = lax.broadcasted_iota(jnp.int32, (H, nk), 1)
    r_v = lax.broadcasted_iota(jnp.int32, (nk, H), 0)
    c_v = lax.broadcasted_iota(jnp.int32, (nk, H), 1)
    r_s = lax.broadcasted_iota(jnp.int32, (nk, nk), 0)
    c_s = lax.broadcasted_iota(jnp.int32, (nk, nk), 1)
    bd_k = jnp.zeros((H, nk), jnp.float32)
    bd_v = jnp.zeros((nk, H), jnp.float32)
    seg = jnp.zeros((nk, nk), jnp.float32)
    for h in range(nH):
        rows_d = (r_k >= h * d) & (r_k < (h + 1) * d)
        cols_t = (c_k >= h * Tk) & (c_k < (h + 1) * Tk)
        bd_k = bd_k + (rows_d & cols_t).astype(jnp.float32)
        rows_t = (r_v >= h * Tk) & (r_v < (h + 1) * Tk)
        cols_d = (c_v >= h * d) & (c_v < (h + 1) * d)
        bd_v = bd_v + (rows_t & cols_d).astype(jnp.float32)
        sr = (r_s >= h * Tk) & (r_s < (h + 1) * Tk)
        sc = (c_s >= h * Tk) & (c_s < (h + 1) * Tk)
        seg = seg + (sr & sc).astype(jnp.float32)
    return bd_k, bd_v, seg


def _attention_packed(q2, k2, v2, mask_row, num_heads, bd_k, bd_v, seg):
    """Multi-head scaled-dot-product attention, heads packed on the lane axis.

    q2: (Tq, H); k2, v2: (Tk, H); mask_row: (1, Tk) with 1=keep, 0=pad.
    Returns context (Tq, H) already in the reference's head-concatenated layout.
    """
    Tq, H = q2.shape
    Tk = k2.shape[0]
    d = H // num_heads
    # block-diagonal K: scores[i, h*Tk+j] = <q_head_h[i], k_head_h[j]>
    k_bd = jnp.concatenate([k2.T] * num_heads, axis=1) * bd_k           # (H, nH*Tk)
    scores = jnp.dot(q2, k_bd, preferred_element_type=jnp.float32)      # (Tq, nH*Tk)
    scores = scores * (1.0 / math.sqrt(d))
    mrow = jnp.concatenate([mask_row] * num_heads, axis=1)              # (1, nH*Tk)
    scores = jnp.where(mrow == 0.0, -1000000000.0, scores)              # masked_fill
    # Global row max: the shift cancels in the per-head normalization and the
    # padding mask is head-independent, so this is exactly a per-head softmax.
    scores = scores - jnp.max(scores, axis=-1, keepdims=True)
    e = jnp.exp(scores)
    denom = jnp.dot(e, seg, preferred_element_type=jnp.float32)         # per-head sums
    attn = e / denom
    # block-diagonal V: ctx[i, h*d+dd] = sum_j attn[i, h*Tk+j] * v_head_h[j, dd]
    v_bd = jnp.concatenate([v2] * num_heads, axis=0) * bd_v             # (nH*Tk, H)
    return jnp.dot(attn, v_bd, preferred_element_type=jnp.float32)      # (Tq, H)


# ------------------------------ fused kernel ---------------------------------

def _make_forward_kernel(num_heads):
    def kernel(*refs):
        x_enc_ref, x_dec_ref, src_m_ref, tgt_m_ref = refs[0:4]
        enc = dict(zip(ENC_KEYS, refs[4:4 + N_ENC]))
        dec = dict(zip(DEC_KEYS, refs[4 + N_ENC:4 + N_ENC + N_DEC]))
        out_w_ref = refs[4 + N_ENC + N_DEC]
        out_b_ref = refs[5 + N_ENC + N_DEC]
        out_ref = refs[6 + N_ENC + N_DEC]

        S = x_enc_ref.shape[1]
        T = x_dec_ref.shape[1]
        H = x_enc_ref.shape[2]
        L = enc["w_qkv"].shape[0]
        nH = num_heads
        hd = H // nH

        x_enc = x_enc_ref[0]            # (S, H) f32
        x_dec = x_dec_ref[0]            # (T, H) f32
        src_row = src_m_ref[0]          # (1, S)  1=keep / 0=pad
        tgt_row = tgt_m_ref[0]          # (1, T)

        bd_src = _bd_masks(H, nH, S, hd)
        bd_tgt = bd_src if T == S else _bd_masks(H, nH, T, hd)

        # -------------------------------- encoder --------------------------------
        x = x_enc
        for l in range(L):
            qkv = jnp.dot(x, enc["w_qkv"][l],
                          preferred_element_type=jnp.float32) + enc["b_qkv"][l]
            ctx = _attention_packed(qkv[:, :H], qkv[:, H:2 * H], qkv[:, 2 * H:],
                                    src_row, nH, *bd_src)
            proj = jnp.dot(ctx, enc["w_o"][l],
                           preferred_element_type=jnp.float32) + enc["b_o"][l]
            x = _layer_norm(proj + x, enc["ln1_g"][l], enc["ln1_b"][l])
            h1 = jnp.maximum(jnp.dot(x, enc["w1"][l],
                                     preferred_element_type=jnp.float32) + enc["b1"][l], 0.0)
            y = jnp.dot(h1, enc["w2"][l],
                        preferred_element_type=jnp.float32) + enc["b2"][l]
            x = _layer_norm(y + x, enc["ln2_g"][l], enc["ln2_b"][l])
        enc_out = x                      # (S, H)

        # -------------------------------- decoder --------------------------------
        # TODO(synk): reference decoder self-attention uses a padding-only mask
        # (no causal mask); reproduced as-is.
        x = x_dec
        for l in range(L):
            # self-attention (target padding mask)
            qkv = jnp.dot(x, dec["a1_w_qkv"][l],
                          preferred_element_type=jnp.float32) + dec["a1_b_qkv"][l]
            ctx = _attention_packed(qkv[:, :H], qkv[:, H:2 * H], qkv[:, 2 * H:],
                                    tgt_row, nH, *bd_tgt)
            proj = jnp.dot(ctx, dec["a1_w_o"][l],
                           preferred_element_type=jnp.float32) + dec["a1_b_o"][l]
            x = _layer_norm(proj + x, dec["a1_ln_g"][l], dec["a1_ln_b"][l])
            # cross-attention over the encoder output (source padding mask)
            q2 = jnp.dot(x, dec["a2_w_q"][l],
                         preferred_element_type=jnp.float32) + dec["a2_b_q"][l]
            kv = jnp.dot(enc_out, dec["a2_w_kv"][l],
                         preferred_element_type=jnp.float32) + dec["a2_b_kv"][l]
            ctx = _attention_packed(q2, kv[:, :H], kv[:, H:], src_row, nH, *bd_src)
            proj = jnp.dot(ctx, dec["a2_w_o"][l],
                           preferred_element_type=jnp.float32) + dec["a2_b_o"][l]
            x = _layer_norm(proj + x, dec["a2_ln_g"][l], dec["a2_ln_b"][l])
            # feed-forward
            h1 = jnp.maximum(jnp.dot(x, dec["f_w1"][l],
                                     preferred_element_type=jnp.float32) + dec["f_b1"][l], 0.0)
            y = jnp.dot(h1, dec["f_w2"][l],
                        preferred_element_type=jnp.float32) + dec["f_b2"][l]
            x = _layer_norm(y + x, dec["f_ln_g"][l], dec["f_ln_b"][l])

        # ---------------- output projection (lane-dense, 128-padded vocab) -------
        logits = jnp.dot(x, out_w_ref[...],
                         preferred_element_type=jnp.float32) + out_b_ref[...]
        out_ref[0] = logits.astype(out_ref.dtype)

    return kernel


# ------------------------------ host-side wrapper -----------------------------

def _replicated_spec(arr):
    nd = arr.ndim
    return pl.BlockSpec(arr.shape, lambda b, _nd=nd: (0,) * _nd)


@functools.partial(jax.jit, static_argnames=("num_heads", "target_vocab_size"))
def transformer_forward(params, source_ids, source_mask, target_ids, target_mask,
                        num_heads, target_vocab_size):
    B, S = source_ids.shape
    T = target_ids.shape[1]
    H = params["enc_emb"].shape[1]
    Vpad = params["out_w"].shape[1]
    pe = params["pe"]

    # Embedding lookup + (reference-faithful, batch-indexed) positional encoding.
    # TODO(synk): embedding gather stays in XLA; an in-kernel DMA gather is not
    # worthwhile at these shapes.
    x_enc = params["enc_emb"][source_ids] + pe[:B][:, None, :]
    x_dec = params["dec_emb"][target_ids] + pe[:B][:, None, :]
    src_m = source_mask.astype(jnp.float32)[:, None, :]          # (B, 1, S)
    tgt_m = target_mask.astype(jnp.float32)[:, None, :]          # (B, 1, T)

    weights = ([params["enc"][k] for k in ENC_KEYS]
               + [params["dec"][k] for k in DEC_KEYS]
               + [params["out_w"], params["out_b"]])
    inputs = [x_enc, x_dec, src_m, tgt_m] + weights

    in_specs = ([pl.BlockSpec((1, S, H), lambda b: (b, 0, 0)),
                 pl.BlockSpec((1, T, H), lambda b: (b, 0, 0)),
                 pl.BlockSpec((1, 1, S), lambda b: (b, 0, 0)),
                 pl.BlockSpec((1, 1, T), lambda b: (b, 0, 0))]
                + [_replicated_spec(w) for w in weights])

    logits_pad = pl.pallas_call(
        _make_forward_kernel(num_heads),
        grid=(B,),                                    # one example per grid step
        in_specs=in_specs,
        out_specs=pl.BlockSpec((1, T, Vpad), lambda b: (b, 0, 0)),
        out_shape=jax.ShapeDtypeStruct((B, T, Vpad), jnp.float32),
        compiler_params=pltpu.CompilerParams(dimension_semantics=("parallel",)),
    )(*inputs)
    # padded vocab columns sliced off outside the kernel (keeps the store lane-dense)
    return logits_pad[:, :, :target_vocab_size]


# ------------------------------ parameter init --------------------------------

def positional_encoding_table(max_len, hidden):
    pos = jnp.arange(max_len, dtype=jnp.float32)[:, None]
    div = jnp.exp(jnp.arange(0, hidden, 2, dtype=jnp.float32)
                  * (-math.log(10000.0) / hidden))
    pe = jnp.zeros((max_len, hidden), jnp.float32)
    pe = pe.at[:, 0::2].set(jnp.sin(pos * div))
    pe = pe.at[:, 1::2].set(jnp.cos(pos * div))
    return pe


def _init_linear(key, din, dout, scale=0.02):
    w = jax.random.normal(key, (din, dout), jnp.float32) * scale   # stored [Din, Dout]
    b = jnp.zeros((1, dout), jnp.float32)
    return w, b


def init_transformer(key, cfg):
    H, F, L = cfg["hidden_size"], cfg["filter_size"], cfg["num_layers"]
    V = cfg["target_vocab_size"]
    keys = jax.random.split(key, 5)
    enc_emb = jax.random.normal(keys[0], (cfg["source_vocab_size"], H), jnp.float32) * 0.02
    dec_emb = jax.random.normal(keys[1], (V, H), jnp.float32) * 0.02

    ln_g = jnp.ones((1, H), jnp.float32)
    ln_b = jnp.zeros((1, H), jnp.float32)

    def mha_params(k):
        kq, kk, kv, ko = jax.random.split(k, 4)
        wq, bq = _init_linear(kq, H, H)
        wk, bk = _init_linear(kk, H, H)
        wv, bv = _init_linear(kv, H, H)
        wo, bo = _init_linear(ko, H, H)
        return dict(w_q=wq, b_q=bq, w_k=wk, b_k=bk, w_v=wv, b_v=bv, w_o=wo, b_o=bo)

    def ffn_params(k):
        k1, k2 = jax.random.split(k)
        w1, b1 = _init_linear(k1, H, F)
        w2, b2 = _init_linear(k2, F, H)
        return dict(w1=w1, b1=b1, w2=w2, b2=b2)

    enc_layers = []
    for lk in jax.random.split(keys[2], L):
        k1, k2 = jax.random.split(lk)
        a, f = mha_params(k1), ffn_params(k2)
        enc_layers.append(dict(
            w_qkv=jnp.concatenate([a["w_q"], a["w_k"], a["w_v"]], axis=1),
            b_qkv=jnp.concatenate([a["b_q"], a["b_k"], a["b_v"]], axis=1),
            w_o=a["w_o"], b_o=a["b_o"], ln1_g=ln_g, ln1_b=ln_b,
            w1=f["w1"], b1=f["b1"], w2=f["w2"], b2=f["b2"], ln2_g=ln_g, ln2_b=ln_b))
    enc = {k: jnp.stack([layer[k] for layer in enc_layers]) for k in ENC_KEYS}

    dec_layers = []
    for lk in jax.random.split(keys[3], L):
        k1, k2, k3 = jax.random.split(lk, 3)
        a1, a2, f = mha_params(k1), mha_params(k2), ffn_params(k3)
        dec_layers.append(dict(
            a1_w_qkv=jnp.concatenate([a1["w_q"], a1["w_k"], a1["w_v"]], axis=1),
            a1_b_qkv=jnp.concatenate([a1["b_q"], a1["b_k"], a1["b_v"]], axis=1),
            a1_w_o=a1["w_o"], a1_b_o=a1["b_o"], a1_ln_g=ln_g, a1_ln_b=ln_b,
            a2_w_q=a2["w_q"], a2_b_q=a2["b_q"],
            a2_w_kv=jnp.concatenate([a2["w_k"], a2["w_v"]], axis=1),
            a2_b_kv=jnp.concatenate([a2["b_k"], a2["b_v"]], axis=1),
            a2_w_o=a2["w_o"], a2_b_o=a2["b_o"], a2_ln_g=ln_g, a2_ln_b=ln_b,
            f_w1=f["w1"], f_b1=f["b1"], f_w2=f["w2"], f_b2=f["b2"],
            f_ln_g=ln_g, f_ln_b=ln_b))
    dec = {k: jnp.stack([layer[k] for layer in dec_layers]) for k in DEC_KEYS}

    out_w, out_b = _init_linear(keys[4], H, V)
    v_pad = ((V + 127) // 128) * 128                      # lane-dense logits store
    out_w = jnp.pad(out_w, ((0, 0), (0, v_pad - V)))
    out_b = jnp.pad(out_b, ((0, 0), (0, v_pad - V)))

    return dict(enc_emb=enc_emb, dec_emb=dec_emb, enc=enc, dec=dec,
                out_w=out_w, out_b=out_b,
                pe=positional_encoding_table(cfg["max_len"], H))


# ------------------------- pure-JAX reference (for checking) ------------------

def reference_forward(params, source_ids, source_mask, target_ids, target_mask,
                      num_heads, target_vocab_size):
    HI = lax.Precision.HIGHEST

    def layer_norm(x, g, b):
        mean = jnp.mean(x, axis=-1, keepdims=True)
        var = jnp.mean((x - mean) ** 2, axis=-1, keepdims=True)
        return (x - mean) * lax.rsqrt(var + 1e-5) * g + b

    def mha(q_in, kv_in, mask, w_q, b_q, w_k, b_k, w_v, b_v, w_o, b_o, g, bb):
        B, Tq, H = q_in.shape
        Tk = kv_in.shape[1]
        d = H // num_heads
        q = jnp.einsum('bth,hk->btk', q_in, w_q, precision=HI) + b_q
        k = jnp.einsum('bth,hk->btk', kv_in, w_k, precision=HI) + b_k
        v = jnp.einsum('bth,hk->btk', kv_in, w_v, precision=HI) + b_v
        q = q.reshape(B, Tq, num_heads, d).transpose(0, 2, 1, 3)
        k = k.reshape(B, Tk, num_heads, d).transpose(0, 2, 1, 3)
        v = v.reshape(B, Tk, num_heads, d).transpose(0, 2, 1, 3)
        s = jnp.einsum('bhid,bhjd->bhij', q, k, precision=HI) / math.sqrt(d)
        s = jnp.where(mask[:, None, None, :] == 0, -1000000000.0, s)
        a = jax.nn.softmax(s, axis=-1)
        ctx = jnp.einsum('bhij,bhjd->bhid', a, v, precision=HI)
        ctx = ctx.transpose(0, 2, 1, 3).reshape(B, Tq, H)
        out = jnp.einsum('bth,hk->btk', ctx, w_o, precision=HI) + b_o
        return layer_norm(out + q_in, g, bb)

    def ffn(x, w1, b1, w2, b2, g, bb):
        h = jnp.maximum(jnp.einsum('bth,hf->btf', x, w1, precision=HI) + b1, 0.0)
        y = jnp.einsum('btf,fh->bth', h, w2, precision=HI) + b2
        return layer_norm(y + x, g, bb)

    B = source_ids.shape[0]
    H = params["enc_emb"].shape[1]
    pe = params["pe"]
    enc, dec = params["enc"], params["dec"]
    L = enc["w_qkv"].shape[0]

    x = params["enc_emb"][source_ids] + pe[:B][:, None, :]
    for l in range(L):
        wqkv, bqkv = enc["w_qkv"][l], enc["b_qkv"][l]
        x = mha(x, x, source_mask, wqkv[:, :H], bqkv[:, :H], wqkv[:, H:2 * H],
                bqkv[:, H:2 * H], wqkv[:, 2 * H:], bqkv[:, 2 * H:],
                enc["w_o"][l], enc["b_o"][l], enc["ln1_g"][l], enc["ln1_b"][l])
        x = ffn(x, enc["w1"][l], enc["b1"][l], enc["w2"][l], enc["b2"][l],
                enc["ln2_g"][l], enc["ln2_b"][l])
    enc_out = x

    x = params["dec_emb"][target_ids] + pe[:B][:, None, :]
    for l in range(L):
        wqkv, bqkv = dec["a1_w_qkv"][l], dec["a1_b_qkv"][l]
        x = mha(x, x, target_mask, wqkv[:, :H], bqkv[:, :H], wqkv[:, H:2 * H],
                bqkv[:, H:2 * H], wqkv[:, 2 * H:], bqkv[:, 2 * H:],
                dec["a1_w_o"][l], dec["a1_b_o"][l], dec["a1_ln_g"][l], dec["a1_ln_b"][l])
        wkv, bkv = dec["a2_w_kv"][l], dec["a2_b_kv"][l]
        x = mha(x, enc_out, source_mask, dec["a2_w_q"][l], dec["a2_b_q"][l],
                wkv[:, :H], bkv[:, :H], wkv[:, H:], bkv[:, H:],
                dec["a2_w_o"][l], dec["a2_b_o"][l], dec["a2_ln_g"][l], dec["a2_ln_b"][l])
        x = ffn(x, dec["f_w1"][l], dec["f_b1"][l], dec["f_w2"][l], dec["f_b2"][l],
                dec["f_ln_g"][l], dec["f_ln_b"][l])

    logits = jnp.einsum('bth,hv->btv', x, params["out_w"], precision=HI) + params["out_b"]
    return logits[:, :, :target_vocab_size]


# ----------------------------------- main -------------------------------------

if __name__ == "__main__":
    cfg = dict(source_vocab_size=50, target_vocab_size=60, hidden_size=32,
               num_heads=4, filter_size=64, num_layers=2, dropout=0.0, max_len=512)

    key = jax.random.PRNGKey(0)
    pkey, dkey = jax.random.split(key)
    params = init_transformer(pkey, cfg)

    B, S, T = 2, 8, 8
    k1, k2 = jax.random.split(dkey)
    source_ids = jax.random.randint(k1, (B, S), 0, cfg["source_vocab_size"], dtype=jnp.int32)
    target_ids = jax.random.randint(k2, (B, T), 0, cfg["target_vocab_size"], dtype=jnp.int32)
    # padding masks (1 = keep, 0 = pad)
    source_mask = jnp.ones((B, S), jnp.int32).at[1, S - 2:].set(0)
    target_mask = jnp.ones((B, T), jnp.int32).at[1, T - 1:].set(0)

    logits = transformer_forward(params, source_ids, source_mask,
                                 target_ids, target_mask,
                                 num_heads=cfg["num_heads"],
                                 target_vocab_size=cfg["target_vocab_size"])
    logits = jax.block_until_ready(logits)
    assert logits.shape == (B, T, cfg["target_vocab_size"])
    assert bool(jnp.all(jnp.isfinite(logits)))

    # correctness check vs. a pure-JAX implementation of the reference module
    ref = reference_forward(params, source_ids, source_mask, target_ids, target_mask,
                            cfg["num_heads"], cfg["target_vocab_size"])
    ref = jax.block_until_ready(ref)
    assert bool(jnp.allclose(logits, ref, atol=1e-2, rtol=1e-2))

    print("KERNEL_OK")
</pallas_src>

<mosaic_0001>
module attributes {stable_mosaic.version = 11 : i64} {
  func.func @kernel(%arg0: i32, %arg1: memref<1x8x32xf32, #tpu.memory_space<vmem>>, %arg2: memref<1x8x32xf32, #tpu.memory_space<vmem>>, %arg3: memref<1x1x8xf32, #tpu.memory_space<vmem>>, %arg4: memref<1x1x8xf32, #tpu.memory_space<vmem>>, %arg5: memref<2x32x96xf32, #tpu.memory_space<vmem>>, %arg6: memref<2x1x96xf32, #tpu.memory_space<vmem>>, %arg7: memref<2x32x32xf32, #tpu.memory_space<vmem>>, %arg8: memref<2x1x32xf32, #tpu.memory_space<vmem>>, %arg9: memref<2x1x32xf32, #tpu.memory_space<vmem>>, %arg10: memref<2x1x32xf32, #tpu.memory_space<vmem>>, %arg11: memref<2x32x64xf32, #tpu.memory_space<vmem>>, %arg12: memref<2x1x64xf32, #tpu.memory_space<vmem>>, %arg13: memref<2x64x32xf32, #tpu.memory_space<vmem>>, %arg14: memref<2x1x32xf32, #tpu.memory_space<vmem>>, %arg15: memref<2x1x32xf32, #tpu.memory_space<vmem>>, %arg16: memref<2x1x32xf32, #tpu.memory_space<vmem>>, %arg17: memref<2x32x96xf32, #tpu.memory_space<vmem>>, %arg18: memref<2x1x96xf32, #tpu.memory_space<vmem>>, %arg19: memref<2x32x32xf32, #tpu.memory_space<vmem>>, %arg20: memref<2x1x32xf32, #tpu.memory_space<vmem>>, %arg21: memref<2x1x32xf32, #tpu.memory_space<vmem>>, %arg22: memref<2x1x32xf32, #tpu.memory_space<vmem>>, %arg23: memref<2x32x32xf32, #tpu.memory_space<vmem>>, %arg24: memref<2x1x32xf32, #tpu.memory_space<vmem>>, %arg25: memref<2x32x64xf32, #tpu.memory_space<vmem>>, %arg26: memref<2x1x64xf32, #tpu.memory_space<vmem>>, %arg27: memref<2x32x32xf32, #tpu.memory_space<vmem>>, %arg28: memref<2x1x32xf32, #tpu.memory_space<vmem>>, %arg29: memref<2x1x32xf32, #tpu.memory_space<vmem>>, %arg30: memref<2x1x32xf32, #tpu.memory_space<vmem>>, %arg31: memref<2x32x64xf32, #tpu.memory_space<vmem>>, %arg32: memref<2x1x64xf32, #tpu.memory_space<vmem>>, %arg33: memref<2x64x32xf32, #tpu.memory_space<vmem>>, %arg34: memref<2x1x32xf32, #tpu.memory_space<vmem>>, %arg35: memref<2x1x32xf32, #tpu.memory_space<vmem>>, %arg36: memref<2x1x32xf32, #tpu.memory_space<vmem>>, %arg37: memref<32x128xf32, #tpu.memory_space<vmem>>, %arg38: memref<1x128xf32, #tpu.memory_space<vmem>>, %arg39: memref<1x8x128xf32, #tpu.memory_space<vmem>>) attributes {dimension_semantics = [#tpu.dimension_semantics<parallel>], iteration_bounds = array<i64: 2>, scalar_prefetch = 0 : i64, scratch_operands = 0 : i64, tpu.core_type = #tpu.core_type<tc>, window_params = [{transform_indices = @transform_0, window_bounds = array<i64: 1, 8, 32>}, {transform_indices = @transform_1, window_bounds = array<i64: 1, 8, 32>}, {transform_indices = @transform_2, window_bounds = array<i64: 1, 1, 8>}, {transform_indices = @transform_3, window_bounds = array<i64: 1, 1, 8>}, {pipeline_mode = #tpu.pipeline_mode<synchronous>, transform_indices = @transform_4, window_bounds = array<i64: 2, 32, 96>}, {pipeline_mode = #tpu.pipeline_mode<synchronous>, transform_indices = @transform_5, window_bounds = array<i64: 2, 1, 96>}, {pipeline_mode = #tpu.pipeline_mode<synchronous>, transform_indices = @transform_6, window_bounds = array<i64: 2, 32, 32>}, {pipeline_mode = #tpu.pipeline_mode<synchronous>, transform_indices = @transform_7, window_bounds = array<i64: 2, 1, 32>}, {pipeline_mode = #tpu.pipeline_mode<synchronous>, transform_indices = @transform_8, window_bounds = array<i64: 2, 1, 32>}, {pipeline_mode = #tpu.pipeline_mode<synchronous>, transform_indices = @transform_9, window_bounds = array<i64: 2, 1, 32>}, {pipeline_mode = #tpu.pipeline_mode<synchronous>, transform_indices = @transform_10, window_bounds = array<i64: 2, 32, 64>}, {pipeline_mode = #tpu.pipeline_mode<synchronous>, transform_indices = @transform_11, window_bounds = array<i64: 2, 1, 64>}, {pipeline_mode = #tpu.pipeline_mode<synchronous>, transform_indices = @transform_12, window_bounds = array<i64: 2, 64, 32>}, {pipeline_mode = #tpu.pipeline_mode<synchronous>, transform_indices = @transform_13, window_bounds = array<i64: 2, 1, 32>}, {pipeline_mode = #tpu.pipeline_mode<synchronous>, transform_indices = @transform_14, window_bounds = array<i64: 2, 1, 32>}, {pipeline_mode = #tpu.pipeline_mode<synchronous>, transform_indices = @transform_15, window_bounds = array<i64: 2, 1, 32>}, {pipeline_mode = #tpu.pipeline_mode<synchronous>, transform_indices = @transform_16, window_bounds = array<i64: 2, 32, 96>}, {pipeline_mode = #tpu.pipeline_mode<synchronous>, transform_indices = @transform_17, window_bounds = array<i64: 2, 1, 96>}, {pipeline_mode = #tpu.pipeline_mode<synchronous>, transform_indices = @transform_18, window_bounds = array<i64: 2, 32, 32>}, {pipeline_mode = #tpu.pipeline_mode<synchronous>, transform_indices = @transform_19, window_bounds = array<i64: 2, 1, 32>}, {pipeline_mode = #tpu.pipeline_mode<synchronous>, transform_indices = @transform_20, window_bounds = array<i64: 2, 1, 32>}, {pipeline_mode = #tpu.pipeline_mode<synchronous>, transform_indices = @transform_21, window_bounds = array<i64: 2, 1, 32>}, {pipeline_mode = #tpu.pipeline_mode<synchronous>, transform_indices = @transform_22, window_bounds = array<i64: 2, 32, 32>}, {pipeline_mode = #tpu.pipeline_mode<synchronous>, transform_indices = @transform_23, window_bounds = array<i64: 2, 1, 32>}, {pipeline_mode = #tpu.pipeline_mode<synchronous>, transform_indices = @transform_24, window_bounds = array<i64: 2, 32, 64>}, {pipeline_mode = #tpu.pipeline_mode<synchronous>, transform_indices = @transform_25, window_bounds = array<i64: 2, 1, 64>}, {pipeline_mode = #tpu.pipeline_mode<synchronous>, transform_indices = @transform_26, window_bounds = array<i64: 2, 32, 32>}, {pipeline_mode = #tpu.pipeline_mode<synchronous>, transform_indices = @transform_27, window_bounds = array<i64: 2, 1, 32>}, {pipeline_mode = #tpu.pipeline_mode<synchronous>, transform_indices = @transform_28, window_bounds = array<i64: 2, 1, 32>}, {pipeline_mode = #tpu.pipeline_mode<synchronous>, transform_indices = @transform_29, window_bounds = array<i64: 2, 1, 32>}, {pipeline_mode = #tpu.pipeline_mode<synchronous>, transform_indices = @transform_30, window_bounds = array<i64: 2, 32, 64>}, {pipeline_mode = #tpu.pipeline_mode<synchronous>, transform_indices = @transform_31, window_bounds = array<i64: 2, 1, 64>}, {pipeline_mode = #tpu.pipeline_mode<synchronous>, transform_indices = @transform_32, window_bounds = array<i64: 2, 64, 32>}, {pipeline_mode = #tpu.pipeline_mode<synchronous>, transform_indices = @transform_33, window_bounds = array<i64: 2, 1, 32>}, {pipeline_mode = #tpu.pipeline_mode<synchronous>, transform_indices = @transform_34, window_bounds = array<i64: 2, 1, 32>}, {pipeline_mode = #tpu.pipeline_mode<synchronous>, transform_indices = @transform_35, window_bounds = array<i64: 2, 1, 32>}, {pipeline_mode = #tpu.pipeline_mode<synchronous>, transform_indices = @transform_36, window_bounds = array<i64: 32, 128>}, {pipeline_mode = #tpu.pipeline_mode<synchronous>, transform_indices = @transform_37, window_bounds = array<i64: 1, 128>}, {transform_indices = @transform_38, window_bounds = array<i64: 1, 8, 128>}]} {
    %c0 = arith.constant 0 : index
    %c0_0 = arith.constant 0 : index
    %c0_1 = arith.constant 0 : index
    %0 = vector.load %arg1[%c0, %c0_0, %c0_1] : memref<1x8x32xf32, #tpu.memory_space<vmem>>, vector<1x8x32xf32>
    %1 = vector.shape_cast %0 : vector<1x8x32xf32> to vector<8x32xf32>
    %c0_2 = arith.constant 0 : index
    %c0_3 = arith.constant 0 : index
    %c0_4 = arith.constant 0 : index
    %2 = vector.load %arg2[%c0_2, %c0_3, %c0_4] : memref<1x8x32xf32, #tpu.memory_space<vmem>>, vector<1x8x32xf32>
    %3 = vector.shape_cast %2 : vector<1x8x32xf32> to vector<8x32xf32>
    %c0_5 = arith.constant 0 : index
    %c0_6 = arith.constant 0 : index
    %c0_7 = arith.constant 0 : index
    %4 = vector.load %arg3[%c0_5, %c0_6, %c0_7] : memref<1x1x8xf32, #tpu.memory_space<vmem>>, vector<1x1x8xf32>
    %5 = vector.shape_cast %4 : vector<1x1x8xf32> to vector<1x8xf32>
    %c0_8 = arith.constant 0 : index
    %c0_9 = arith.constant 0 : index
    %c0_10 = arith.constant 0 : index
    %6 = vector.load %arg4[%c0_8, %c0_9, %c0_10] : memref<1x1x8xf32, #tpu.memory_space<vmem>>, vector<1x1x8xf32>
    %7 = vector.shape_cast %6 : vector<1x1x8xf32> to vector<1x8xf32>
    %8 = tpu.iota {dimensions = array<i32: 0>} : vector<32x32xi32>
    %9 = tpu.iota {dimensions = array<i32: 1>} : vector<32x32xi32>
    %10 = tpu.iota {dimensions = array<i32: 0>} : vector<32x32xi32>
    %11 = tpu.iota {dimensions = array<i32: 1>} : vector<32x32xi32>
    %12 = tpu.iota {dimensions = array<i32: 0>} : vector<32x32xi32>
    %13 = tpu.iota {dimensions = array<i32: 1>} : vector<32x32xi32>
    %cst = arith.constant 0.000000e+00 : f32
    %14 = vector.broadcast %cst : f32 to vector<32x32xf32>
    %cst_11 = arith.constant 0.000000e+00 : f32
    %15 = vector.broadcast %cst_11 : f32 to vector<32x32xf32>
    %cst_12 = arith.constant 0.000000e+00 : f32
    %16 = vector.broadcast %cst_12 : f32 to vector<32x32xf32>
    %c0_i32 = arith.constant 0 : i32
    %17 = vector.broadcast %c0_i32 : i32 to vector<32x32xi32>
    %18 = arith.cmpi sge, %8, %17 : vector<32x32xi32>
    %c8_i32 = arith.constant 8 : i32
    %19 = vector.broadcast %c8_i32 : i32 to vector<32x32xi32>
    %20 = arith.cmpi slt, %8, %19 : vector<32x32xi32>
    %21 = arith.andi %18, %20 : vector<32x32xi1>
    %c0_i32_13 = arith.constant 0 : i32
    %22 = vector.broadcast %c0_i32_13 : i32 to vector<32x32xi32>
    %23 = arith.cmpi sge, %9, %22 : vector<32x32xi32>
    %c8_i32_14 = arith.constant 8 : i32
    %24 = vector.broadcast %c8_i32_14 : i32 to vector<32x32xi32>
    %25 = arith.cmpi slt, %9, %24 : vector<32x32xi32>
    %26 = arith.andi %23, %25 : vector<32x32xi1>
    %27 = arith.andi %21, %26 : vector<32x32xi1>
    %28 = arith.extui %27 : vector<32x32xi1> to vector<32x32xi32>
    %29 = arith.sitofp %28 : vector<32x32xi32> to vector<32x32xf32>
    %30 = arith.addf %14, %29 : vector<32x32xf32>
    %c0_i32_15 = arith.constant 0 : i32
    %31 = vector.broadcast %c0_i32_15 : i32 to vector<32x32xi32>
    %32 = arith.cmpi sge, %10, %31 : vector<32x32xi32>
    %c8_i32_16 = arith.constant 8 : i32
    %33 = vector.broadcast %c8_i32_16 : i32 to vector<32x32xi32>
    %34 = arith.cmpi slt, %10, %33 : vector<32x32xi32>
    %35 = arith.andi %32, %34 : vector<32x32xi1>
    %c0_i32_17 = arith.constant 0 : i32
    %36 = vector.broadcast %c0_i32_17 : i32 to vector<32x32xi32>
    %37 = arith.cmpi sge, %11, %36 : vector<32x32xi32>
    %c8_i32_18 = arith.constant 8 : i32
    %38 = vector.broadcast %c8_i32_18 : i32 to vector<32x32xi32>
    %39 = arith.cmpi slt, %11, %38 : vector<32x32xi32>
    %40 = arith.andi %37, %39 : vector<32x32xi1>
    %41 = arith.andi %35, %40 : vector<32x32xi1>
    %42 = arith.extui %41 : vector<32x32xi1> to vector<32x32xi32>
    %43 = arith.sitofp %42 : vector<32x32xi32> to vector<32x32xf32>
    %44 = arith.addf %15, %43 : vector<32x32xf32>
    %c0_i32_19 = arith.constant 0 : i32
    %45 = vector.broadcast %c0_i32_19 : i32 to vector<32x32xi32>
    %46 = arith.cmpi sge, %12, %45 : vector<32x32xi32>
    %c8_i32_20 = arith.constant 8 : i32
    %47 = vector.broadcast %c8_i32_20 : i32 to vector<32x32xi32>
    %48 = arith.cmpi slt, %12, %47 : vector<32x32xi32>
    %49 = arith.andi %46, %48 : vector<32x32xi1>
    %c0_i32_21 = arith.constant 0 : i32
    %50 = vector.broadcast %c0_i32_21 : i32 to vector<32x32xi32>
    %51 = arith.cmpi sge, %13, %50 : vector<32x32xi32>
    %c8_i32_22 = arith.constant 8 : i32
    %52 = vector.broadcast %c8_i32_22 : i32 to vector<32x32xi32>
    %53 = arith.cmpi slt, %13, %52 : vector<32x32xi32>
    %54 = arith.andi %51, %53 : vector<32x32xi1>
    %55 = arith.andi %49, %54 : vector<32x32xi1>
    %56 = arith.extui %55 : vector<32x32xi1> to vector<32x32xi32>
    %57 = arith.sitofp %56 : vector<32x32xi32> to vector<32x32xf32>
    %58 = arith.addf %16, %57 : vector<32x32xf32>
    %c8_i32_23 = arith.constant 8 : i32
    %59 = vector.broadcast %c8_i32_23 : i32 to vector<32x32xi32>
    %60 = arith.cmpi sge, %8, %59 : vector<32x32xi32>
    %c16_i32 = arith.constant 16 : i32
    %61 = vector.broadcast %c16_i32 : i32 to vector<32x32xi32>
    %62 = arith.cmpi slt, %8, %61 : vector<32x32xi32>
    %63 = arith.andi %60, %62 : vector<32x32xi1>
    %c8_i32_24 = arith.constant 8 : i32
    %64 = vector.broadcast %c8_i32_24 : i32 to vector<32x32xi32>
    %65 = arith.cmpi sge, %9, %64 : vector<32x32xi32>
    %c16_i32_25 = arith.constant 16 : i32
    %66 = vector.broadcast %c16_i32_25 : i32 to vector<32x32xi32>
    %67 = arith.cmpi slt, %9, %66 : vector<32x32xi32>
    %68 = arith.andi %65, %67 : vector<32x32xi1>
    %69 = arith.andi %63, %68 : vector<32x32xi1>
    %70 = arith.extui %69 : vector<32x32xi1> to vector<32x32xi32>
    %71 = arith.sitofp %70 : vector<32x32xi32> to vector<32x32xf32>
    %72 = arith.addf %30, %71 : vector<32x32xf32>
    %c8_i32_26 = arith.constant 8 : i32
    %73 = vector.broadcast %c8_i32_26 : i32 to vector<32x32xi32>
    %74 = arith.cmpi sge, %10, %73 : vector<32x32xi32>
    %c16_i32_27 = arith.constant 16 : i32
    %75 = vector.broadcast %c16_i32_27 : i32 to vector<32x32xi32>
    %76 = arith.cmpi slt, %10, %75 : vector<32x32xi32>
    %77 = arith.andi %74, %76 : vector<32x32xi1>
    %c8_i32_28 = arith.constant 8 : i32
    %78 = vector.broadcast %c8_i32_28 : i32 to vector<32x32xi32>
    %79 = arith.cmpi sge, %11, %78 : vector<32x32xi32>
    %c16_i32_29 = arith.constant 16 : i32
    %80 = vector.broadcast %c16_i32_29 : i32 to vector<32x32xi32>
    %81 = arith.cmpi slt, %11, %80 : vector<32x32xi32>
    %82 = arith.andi %79, %81 : vector<32x32xi1>
    %83 = arith.andi %77, %82 : vector<32x32xi1>
    %84 = arith.extui %83 : vector<32x32xi1> to vector<32x32xi32>
    %85 = arith.sitofp %84 : vector<32x32xi32> to vector<32x32xf32>
    %86 = arith.addf %44, %85 : vector<32x32xf32>
    %c8_i32_30 = arith.constant 8 : i32
    %87 = vector.broadcast %c8_i32_30 : i32 to vector<32x32xi32>
    %88 = arith.cmpi sge, %12, %87 : vector<32x32xi32>
    %c16_i32_31 = arith.constant 16 : i32
    %89 = vector.broadcast %c16_i32_31 : i32 to vector<32x32xi32>
    %90 = arith.cmpi slt, %12, %89 : vector<32x32xi32>
    %91 = arith.andi %88, %90 : vector<32x32xi1>
    %c8_i32_32 = arith.constant 8 : i32
    %92 = vector.broadcast %c8_i32_32 : i32 to vector<32x32xi32>
    %93 = arith.cmpi sge, %13, %92 : vector<32x32xi32>
    %c16_i32_33 = arith.constant 16 : i32
    %94 = vector.broadcast %c16_i32_33 : i32 to vector<32x32xi32>
    %95 = arith.cmpi slt, %13, %94 : vector<32x32xi32>
    %96 = arith.andi %93, %95 : vector<32x32xi1>
    %97 = arith.andi %91, %96 : vector<32x32xi1>
    %98 = arith.extui %97 : vector<32x32xi1> to vector<32x32xi32>
    %99 = arith.sitofp %98 : vector<32x32xi32> to vector<32x32xf32>
    %100 = arith.addf %58, %99 : vector<32x32xf32>
    %c16_i32_34 = arith.constant 16 : i32
    %101 = vector.broadcast %c16_i32_34 : i32 to vector<32x32xi32>
    %102 = arith.cmpi sge, %8, %101 : vector<32x32xi32>
    %c24_i32 = arith.constant 24 : i32
    %103 = vector.broadcast %c24_i32 : i32 to vector<32x32xi32>
    %104 = arith.cmpi slt, %8, %103 : vector<32x32xi32>
    %105 = arith.andi %102, %104 : vector<32x32xi1>
    %c16_i32_35 = arith.constant 16 : i32
    %106 = vector.broadcast %c16_i32_35 : i32 to vector<32x32xi32>
    %107 = arith.cmpi sge, %9, %106 : vector<32x32xi32>
    %c24_i32_36 = arith.constant 24 : i32
    %108 = vector.broadcast %c24_i32_36 : i32 to vector<32x32xi32>
    %109 = arith.cmpi slt, %9, %108 : vector<32x32xi32>
    %110 = arith.andi %107, %109 : vector<32x32xi1>
    %111 = arith.andi %105, %110 : vector<32x32xi1>
    %112 = arith.extui %111 : vector<32x32xi1> to vector<32x32xi32>
    %113 = arith.sitofp %112 : vector<32x32xi32> to vector<32x32xf32>
    %114 = arith.addf %72, %113 : vector<32x32xf32>
    %c16_i32_37 = arith.constant 16 : i32
    %115 = vector.broadcast %c16_i32_37 : i32 to vector<32x32xi32>
    %116 = arith.cmpi sge, %10, %115 : vector<32x32xi32>
    %c24_i32_38 = arith.constant 24 : i32
    %117 = vector.broadcast %c24_i32_38 : i32 to vector<32x32xi32>
    %118 = arith.cmpi slt, %10, %117 : vector<32x32xi32>
    %119 = arith.andi %116, %118 : vector<32x32xi1>
    %c16_i32_39 = arith.constant 16 : i32
    %120 = vector.broadcast %c16_i32_39 : i32 to vector<32x32xi32>
    %121 = arith.cmpi sge, %11, %120 : vector<32x32xi32>
    %c24_i32_40 = arith.constant 24 : i32
    %122 = vector.broadcast %c24_i32_40 : i32 to vector<32x32xi32>
    %123 = arith.cmpi slt, %11, %122 : vector<32x32xi32>
    %124 = arith.andi %121, %123 : vector<32x32xi1>
    %125 = arith.andi %119, %124 : vector<32x32xi1>
    %126 = arith.extui %125 : vector<32x32xi1> to vector<32x32xi32>
    %127 = arith.sitofp %126 : vector<32x32xi32> to vector<32x32xf32>
    %128 = arith.addf %86, %127 : vector<32x32xf32>
    %c16_i32_41 = arith.constant 16 : i32
    %129 = vector.broadcast %c16_i32_41 : i32 to vector<32x32xi32>
    %130 = arith.cmpi sge, %12, %129 : vector<32x32xi32>
    %c24_i32_42 = arith.constant 24 : i32
    %131 = vector.broadcast %c24_i32_42 : i32 to vector<32x32xi32>
    %132 = arith.cmpi slt, %12, %131 : vector<32x32xi32>
    %133 = arith.andi %130, %132 : vector<32x32xi1>
    %c16_i32_43 = arith.constant 16 : i32
    %134 = vector.broadcast %c16_i32_43 : i32 to vector<32x32xi32>
    %135 = arith.cmpi sge, %13, %134 : vector<32x32xi32>
    %c24_i32_44 = arith.constant 24 : i32
    %136 = vector.broadcast %c24_i32_44 : i32 to vector<32x32xi32>
    %137 = arith.cmpi slt, %13, %136 : vector<32x32xi32>
    %138 = arith.andi %135, %137 : vector<32x32xi1>
    %139 = arith.andi %133, %138 : vector<32x32xi1>
    %140 = arith.extui %139 : vector<32x32xi1> to vector<32x32xi32>
    %141 = arith.sitofp %140 : vector<32x32xi32> to vector<32x32xf32>
    %142 = arith.addf %100, %141 : vector<32x32xf32>
    %c24_i32_45 = arith.constant 24 : i32
    %143 = vector.broadcast %c24_i32_45 : i32 to vector<32x32xi32>
    %144 = arith.cmpi sge, %8, %143 : vector<32x32xi32>
    %c32_i32 = arith.constant 32 : i32
    %145 = vector.broadcast %c32_i32 : i32 to vector<32x32xi32>
    %146 = arith.cmpi slt, %8, %145 : vector<32x32xi32>
    %147 = arith.andi %144, %146 : vector<32x32xi1>
    %c24_i32_46 = arith.constant 24 : i32
    %148 = vector.broadcast %c24_i32_46 : i32 to vector<32x32xi32>
    %149 = arith.cmpi sge, %9, %148 : vector<32x32xi32>
    %c32_i32_47 = arith.constant 32 : i32
    %150 = vector.broadcast %c32_i32_47 : i32 to vector<32x32xi32>
    %151 = arith.cmpi slt, %9, %150 : vector<32x32xi32>
    %152 = arith.andi %149, %151 : vector<32x32xi1>
    %153 = arith.andi %147, %152 : vector<32x32xi1>
    %154 = arith.extui %153 : vector<32x32xi1> to vector<32x32xi32>
    %155 = arith.sitofp %154 : vector<32x32xi32> to vector<32x32xf32>
    %156 = arith.addf %114, %155 : vector<32x32xf32>
    %c24_i32_48 = arith.constant 24 : i32
    %157 = vector.broadcast %c24_i32_48 : i32 to vector<32x32xi32>
    %158 = arith.cmpi sge, %10, %157 : vector<32x32xi32>
    %c32_i32_49 = arith.constant 32 : i32
    %159 = vector.broadcast %c32_i32_49 : i32 to vector<32x32xi32>
    %160 = arith.cmpi slt, %10, %159 : vector<32x32xi32>
    %161 = arith.andi %158, %160 : vector<32x32xi1>
    %c24_i32_50 = arith.constant 24 : i32
    %162 = vector.broadcast %c24_i32_50 : i32 to vector<32x32xi32>
    %163 = arith.cmpi sge, %11, %162 : vector<32x32xi32>
    %c32_i32_51 = arith.constant 32 : i32
    %164 = vector.broadcast %c32_i32_51 : i32 to vector<32x32xi32>
    %165 = arith.cmpi slt, %11, %164 : vector<32x32xi32>
    %166 = arith.andi %163, %165 : vector<32x32xi1>
    %167 = arith.andi %161, %166 : vector<32x32xi1>
    %168 = arith.extui %167 : vector<32x32xi1> to vector<32x32xi32>
    %169 = arith.sitofp %168 : vector<32x32xi32> to vector<32x32xf32>
    %170 = arith.addf %128, %169 : vector<32x32xf32>
    %c24_i32_52 = arith.constant 24 : i32
    %171 = vector.broadcast %c24_i32_52 : i32 to vector<32x32xi32>
    %172 = arith.cmpi sge, %12, %171 : vector<32x32xi32>
    %c32_i32_53 = arith.constant 32 : i32
    %173 = vector.broadcast %c32_i32_53 : i32 to vector<32x32xi32>
    %174 = arith.cmpi slt, %12, %173 : vector<32x32xi32>
    %175 = arith.andi %172, %174 : vector<32x32xi1>
    %c24_i32_54 = arith.constant 24 : i32
    %176 = vector.broadcast %c24_i32_54 : i32 to vector<32x32xi32>
    %177 = arith.cmpi sge, %13, %176 : vector<32x32xi32>
    %c32_i32_55 = arith.constant 32 : i32
    %178 = vector.broadcast %c32_i32_55 : i32 to vector<32x32xi32>
    %179 = arith.cmpi slt, %13, %178 : vector<32x32xi32>
    %180 = arith.andi %177, %179 : vector<32x32xi1>
    %181 = arith.andi %175, %180 : vector<32x32xi1>
    %182 = arith.extui %181 : vector<32x32xi1> to vector<32x32xi32>
    %183 = arith.sitofp %182 : vector<32x32xi32> to vector<32x32xf32>
    %184 = arith.addf %142, %183 : vector<32x32xf32>
    %c0_56 = arith.constant 0 : index
    %c0_57 = arith.constant 0 : index
    %c0_58 = arith.constant 0 : index
    %185 = vector.load %arg5[%c0_56, %c0_57, %c0_58] : memref<2x32x96xf32, #tpu.memory_space<vmem>>, vector<1x32x96xf32>
    %186 = vector.shape_cast %185 : vector<1x32x96xf32> to vector<32x96xf32>
    %cst_59 = arith.constant dense<0.000000e+00> : vector<8x96xf32>
    %187 = tpu.matmul %1, %186, %cst_59 {dimension_numbers = #tpu.dot_dimension_numbers<[1], [0], [0], [1], [0, 0, 1, 1], [], []>} : vector<8x32xf32>, vector<32x96xf32>, vector<8x96xf32> -> vector<8x96xf32>
    %c0_60 = arith.constant 0 : index
    %c0_61 = arith.constant 0 : index
    %c0_62 = arith.constant 0 : index
    %188 = vector.load %arg6[%c0_60, %c0_61, %c0_62] : memref<2x1x96xf32, #tpu.memory_space<vmem>>, vector<1x1x96xf32>
    %189 = vector.shape_cast %188 : vector<1x1x96xf32> to vector<1x96xf32>
    %190 = vector.broadcast %189 : vector<1x96xf32> to vector<8x96xf32>
    %191 = arith.addf %187, %190 : vector<8x96xf32>
    %192 = vector.extract_strided_slice %191 {offsets = [0, 0], sizes = [8, 32], strides = [1, 1]} : vector<8x96xf32> to vector<8x32xf32>
    %193 = vector.extract_strided_slice %191 {offsets = [0, 32], sizes = [8, 32], strides = [1, 1]} : vector<8x96xf32> to vector<8x32xf32>
    %194 = vector.extract_strided_slice %191 {offsets = [0, 64], sizes = [8, 32], strides = [1, 1]} : vector<8x96xf32> to vector<8x32xf32>
    %195 = tpu.transpose %193, [1, 0] : vector<8x32xf32> -> vector<32x8xf32>
    %196 = tpu.concatenate %195, %195, %195, %195 in 1 : vector<32x8xf32>, vector<32x8xf32>, vector<32x8xf32>, vector<32x8xf32> -> vector<32x32xf32>
    %197 = arith.mulf %196, %156 : vector<32x32xf32>
    %cst_63 = arith.constant dense<0.000000e+00> : vector<8x32xf32>
    %198 = tpu.matmul %192, %197, %cst_63 {dimension_numbers = #tpu.dot_dimension_numbers<[1], [0], [0], [1], [0, 0, 1, 1], [], []>} : vector<8x32xf32>, vector<32x32xf32>, vector<8x32xf32> -> vector<8x32xf32>
    %cst_64 = arith.constant 0.353553385 : f32
    %199 = vector.broadcast %cst_64 : f32 to vector<8x32xf32>
    %200 = arith.mulf %198, %199 : vector<8x32xf32>
    %201 = tpu.concatenate %5, %5, %5, %5 in 1 : vector<1x8xf32>, vector<1x8xf32>, vector<1x8xf32>, vector<1x8xf32> -> vector<1x32xf32>
    %cst_65 = arith.constant 0.000000e+00 : f32
    %202 = vector.broadcast %cst_65 : f32 to vector<1x32xf32>
    %203 = arith.cmpf oeq, %201, %202 : vector<1x32xf32>
    %cst_66 = arith.constant -1.000000e+09 : f32
    %204 = vector.shape_cast %203 : vector<1x32xi1> to vector<1x32xi1>
    %205 = vector.broadcast %204 : vector<1x32xi1> to vector<8x32xi1>
    %206 = vector.broadcast %cst_66 : f32 to vector<8x32xf32>
    %207 = arith.select %205, %206, %200 : vector<8x32xi1>, vector<8x32xf32>
    %cst_67 = arith.constant dense<0xFF800000> : vector<8xf32>
    %208 = vector.multi_reduction <maximumf>, %207, %cst_67 [1] : vector<8x32xf32> to vector<8xf32>
    %209 = vector.shape_cast %208 : vector<8xf32> to vector<8x1xf32>
    %210 = vector.broadcast %209 : vector<8x1xf32> to vector<8x32xf32>
    %211 = arith.subf %207, %210 : vector<8x32xf32>
    %212 = math.exp %211 : vector<8x32xf32>
    %cst_68 = arith.constant dense<0.000000e+00> : vector<8x32xf32>
    %213 = tpu.matmul %212, %184, %cst_68 {dimension_numbers = #tpu.dot_dimension_numbers<[1], [0], [0], [1], [0, 0, 1, 1], [], []>} : vector<8x32xf32>, vector<32x32xf32>, vector<8x32xf32> -> vector<8x32xf32>
    %214 = arith.divf %212, %213 : vector<8x32xf32>
    %215 = tpu.concatenate %194, %194, %194, %194 in 0 : vector<8x32xf32>, vector<8x32xf32>, vector<8x32xf32>, vector<8x32xf32> -> vector<32x32xf32>
    %216 = arith.mulf %215, %170 : vector<32x32xf32>
    %cst_69 = arith.constant dense<0.000000e+00> : vector<8x32xf32>
    %217 = tpu.matmul %214, %216, %cst_69 {dimension_numbers = #tpu.dot_dimension_numbers<[1], [0], [0], [1], [0, 0, 1, 1], [], []>} : vector<8x32xf32>, vector<32x32xf32>, vector<8x32xf32> -> vector<8x32xf32>
    %c0_70 = arith.constant 0 : index
    %c0_71 = arith.constant 0 : index
    %c0_72 = arith.constant 0 : index
    %218 = vector.load %arg7[%c0_70, %c0_71, %c0_72] : memref<2x32x32xf32, #tpu.memory_space<vmem>>, vector<1x32x32xf32>
    %219 = vector.shape_cast %218 : vector<1x32x32xf32> to vector<32x32xf32>
    %cst_73 = arith.constant dense<0.000000e+00> : vector<8x32xf32>
    %220 = tpu.matmul %217, %219, %cst_73 {dimension_numbers = #tpu.dot_dimension_numbers<[1], [0], [0], [1], [0, 0, 1, 1], [], []>} : vector<8x32xf32>, vector<32x32xf32>, vector<8x32xf32> -> vector<8x32xf32>
    %c0_74 = arith.constant 0 : index
    %c0_75 = arith.constant 0 : index
    %c0_76 = arith.constant 0 : index
    %221 = vector.load %arg8[%c0_74, %c0_75, %c0_76] : memref<2x1x32xf32, #tpu.memory_space<vmem>>, vector<1x1x32xf32>
    %222 = vector.shape_cast %221 : vector<1x1x32xf32> to vector<1x32xf32>
    %223 = vector.broadcast %222 : vector<1x32xf32> to vector<8x32xf32>
    %224 = arith.addf %220, %223 : vector<8x32xf32>
    %225 = arith.addf %224, %1 : vector<8x32xf32>
    %c0_77 = arith.constant 0 : index
    %c0_78 = arith.constant 0 : index
    %c0_79 = arith.constant 0 : index
    %226 = vector.load %arg9[%c0_77, %c0_78, %c0_79] : memref<2x1x32xf32, #tpu.memory_space<vmem>>, vector<1x1x32xf32>
    %227 = vector.shape_cast %226 : vector<1x1x32xf32> to vector<1x32xf32>
    %c0_80 = arith.constant 0 : index
    %c0_81 = arith.constant 0 : index
    %c0_82 = arith.constant 0 : index
    %228 = vector.load %arg10[%c0_80, %c0_81, %c0_82] : memref<2x1x32xf32, #tpu.memory_space<vmem>>, vector<1x1x32xf32>
    %229 = vector.shape_cast %228 : vector<1x1x32xf32> to vector<1x32xf32>
    %cst_83 = arith.constant dense<0.000000e+00> : vector<8xf32>
    %230 = vector.multi_reduction <add>, %225, %cst_83 [1] : vector<8x32xf32> to vector<8xf32>
    %231 = vector.shape_cast %230 : vector<8xf32> to vector<8x1xf32>
    %cst_84 = arith.constant 3.200000e+01 : f32
    %232 = vector.broadcast %cst_84 : f32 to vector<8x1xf32>
    %233 = arith.divf %231, %232 : vector<8x1xf32>
    %234 = vector.broadcast %233 : vector<8x1xf32> to vector<8x32xf32>
    %235 = arith.subf %225, %234 : vector<8x32xf32>
    %236 = arith.mulf %235, %235 : vector<8x32xf32>
    %cst_85 = arith.constant dense<0.000000e+00> : vector<8xf32>
    %237 = vector.multi_reduction <add>, %236, %cst_85 [1] : vector<8x32xf32> to vector<8xf32>
    %238 = vector.shape_cast %237 : vector<8xf32> to vector<8x1xf32>
    %cst_86 = arith.constant 3.200000e+01 : f32
    %239 = vector.broadcast %cst_86 : f32 to vector<8x1xf32>
    %240 = arith.divf %238, %239 : vector<8x1xf32>
    %241 = vector.broadcast %233 : vector<8x1xf32> to vector<8x32xf32>
    %242 = arith.subf %225, %241 : vector<8x32xf32>
    %cst_87 = arith.constant 9.99999974E-6 : f32
    %243 = vector.broadcast %cst_87 : f32 to vector<8x1xf32>
    %244 = arith.addf %240, %243 : vector<8x1xf32>
    %245 = math.rsqrt %244 : vector<8x1xf32>
    %246 = vector.broadcast %245 : vector<8x1xf32> to vector<8x32xf32>
    %247 = arith.mulf %242, %246 : vector<8x32xf32>
    %248 = vector.broadcast %227 : vector<1x32xf32> to vector<8x32xf32>
    %249 = arith.mulf %247, %248 : vector<8x32xf32>
    %250 = vector.broadcast %229 : vector<1x32xf32> to vector<8x32xf32>
    %251 = arith.addf %249, %250 : vector<8x32xf32>
    %c0_88 = arith.constant 0 : index
    %c0_89 = arith.constant 0 : index
    %c0_90 = arith.constant 0 : index
    %252 = vector.load %arg11[%c0_88, %c0_89, %c0_90] : memref<2x32x64xf32, #tpu.memory_space<vmem>>, vector<1x32x64xf32>
    %253 = vector.shape_cast %252 : vector<1x32x64xf32> to vector<32x64xf32>
    %cst_91 = arith.constant dense<0.000000e+00> : vector<8x64xf32>
    %254 = tpu.matmul %251, %253, %cst_91 {dimension_numbers = #tpu.dot_dimension_numbers<[1], [0], [0], [1], [0, 0, 1, 1], [], []>} : vector<8x32xf32>, vector<32x64xf32>, vector<8x64xf32> -> vector<8x64xf32>
    %c0_92 = arith.constant 0 : index
    %c0_93 = arith.constant 0 : index
    %c0_94 = arith.constant 0 : index
    %255 = vector.load %arg12[%c0_92, %c0_93, %c0_94] : memref<2x1x64xf32, #tpu.memory_space<vmem>>, vector<1x1x64xf32>
    %256 = vector.shape_cast %255 : vector<1x1x64xf32> to vector<1x64xf32>
    %257 = vector.broadcast %256 : vector<1x64xf32> to vector<8x64xf32>
    %258 = arith.addf %254, %257 : vector<8x64xf32>
    %cst_95 = arith.constant 0.000000e+00 : f32
    %259 = vector.broadcast %cst_95 : f32 to vector<8x64xf32>
    %260 = arith.maximumf %258, %259 : vector<8x64xf32>
    %c0_96 = arith.constant 0 : index
    %c0_97 = arith.constant 0 : index
    %c0_98 = arith.constant 0 : index
    %261 = vector.load %arg13[%c0_96, %c0_97, %c0_98] : memref<2x64x32xf32, #tpu.memory_space<vmem>>, vector<1x64x32xf32>
    %262 = vector.shape_cast %261 : vector<1x64x32xf32> to vector<64x32xf32>
    %cst_99 = arith.constant dense<0.000000e+00> : vector<8x32xf32>
    %263 = tpu.matmul %260, %262, %cst_99 {dimension_numbers = #tpu.dot_dimension_numbers<[1], [0], [0], [1], [0, 0, 1, 1], [], []>} : vector<8x64xf32>, vector<64x32xf32>, vector<8x32xf32> -> vector<8x32xf32>
    %c0_100 = arith.constant 0 : index
    %c0_101 = arith.constant 0 : index
    %c0_102 = arith.constant 0 : index
    %264 = vector.load %arg14[%c0_100, %c0_101, %c0_102] : memref<2x1x32xf32, #tpu.memory_space<vmem>>, vector<1x1x32xf32>
    %265 = vector.shape_cast %264 : vector<1x1x32xf32> to vector<1x32xf32>
    %266 = vector.broadcast %265 : vector<1x32xf32> to vector<8x32xf32>
    %267 = arith.addf %263, %266 : vector<8x32xf32>
    %268 = arith.addf %267, %251 : vector<8x32xf32>
    %c0_103 = arith.constant 0 : index
    %c0_104 = arith.constant 0 : index
    %c0_105 = arith.constant 0 : index
    %269 = vector.load %arg15[%c0_103, %c0_104, %c0_105] : memref<2x1x32xf32, #tpu.memory_space<vmem>>, vector<1x1x32xf32>
    %270 = vector.shape_cast %269 : vector<1x1x32xf32> to vector<1x32xf32>
    %c0_106 = arith.constant 0 : index
    %c0_107 = arith.constant 0 : index
    %c0_108 = arith.constant 0 : index
    %271 = vector.load %arg16[%c0_106, %c0_107, %c0_108] : memref<2x1x32xf32, #tpu.memory_space<vmem>>, vector<1x1x32xf32>
    %272 = vector.shape_cast %271 : vector<1x1x32xf32> to vector<1x32xf32>
    %cst_109 = arith.constant dense<0.000000e+00> : vector<8xf32>
    %273 = vector.multi_reduction <add>, %268, %cst_109 [1] : vector<8x32xf32> to vector<8xf32>
    %274 = vector.shape_cast %273 : vector<8xf32> to vector<8x1xf32>
    %cst_110 = arith.constant 3.200000e+01 : f32
    %275 = vector.broadcast %cst_110 : f32 to vector<8x1xf32>
    %276 = arith.divf %274, %275 : vector<8x1xf32>
    %277 = vector.broadcast %276 : vector<8x1xf32> to vector<8x32xf32>
    %278 = arith.subf %268, %277 : vector<8x32xf32>
    %279 = arith.mulf %278, %278 : vector<8x32xf32>
    %cst_111 = arith.constant dense<0.000000e+00> : vector<8xf32>
    %280 = vector.multi_reduction <add>, %279, %cst_111 [1] : vector<8x32xf32> to vector<8xf32>
    %281 = vector.shape_cast %280 : vector<8xf32> to vector<8x1xf32>
    %cst_112 = arith.constant 3.200000e+01 : f32
    %282 = vector.broadcast %cst_112 : f32 to vector<8x1xf32>
    %283 = arith.divf %281, %282 : vector<8x1xf32>
    %284 = vector.broadcast %276 : vector<8x1xf32> to vector<8x32xf32>
    %285 = arith.subf %268, %284 : vector<8x32xf32>
    %cst_113 = arith.constant 9.99999974E-6 : f32
    %286 = vector.broadcast %cst_113 : f32 to vector<8x1xf32>
    %287 = arith.addf %283, %286 : vector<8x1xf32>
    %288 = math.rsqrt %287 : vector<8x1xf32>
    %289 = vector.broadcast %288 : vector<8x1xf32> to vector<8x32xf32>
    %290 = arith.mulf %285, %289 : vector<8x32xf32>
    %291 = vector.broadcast %270 : vector<1x32xf32> to vector<8x32xf32>
    %292 = arith.mulf %290, %291 : vector<8x32xf32>
    %293 = vector.broadcast %272 : vector<1x32xf32> to vector<8x32xf32>
    %294 = arith.addf %292, %293 : vector<8x32xf32>
    %c1 = arith.constant 1 : index
    %c0_114 = arith.constant 0 : index
    %c0_115 = arith.constant 0 : index
    %295 = vector.load %arg5[%c1, %c0_114, %c0_115] : memref<2x32x96xf32, #tpu.memory_space<vmem>>, vector<1x32x96xf32>
    %296 = vector.shape_cast %295 : vector<1x32x96xf32> to vector<32x96xf32>
    %cst_116 = arith.constant dense<0.000000e+00> : vector<8x96xf32>
    %297 = tpu.matmul %294, %296, %cst_116 {dimension_numbers = #tpu.dot_dimension_numbers<[1], [0], [0], [1], [0, 0, 1, 1], [], []>} : vector<8x32xf32>, vector<32x96xf32>, vector<8x96xf32> -> vector<8x96xf32>
    %c1_117 = arith.constant 1 : index
    %c0_118 = arith.constant 0 : index
    %c0_119 = arith.constant 0 : index
    %298 = vector.load %arg6[%c1_117, %c0_118, %c0_119] : memref<2x1x96xf32, #tpu.memory_space<vmem>>, vector<1x1x96xf32>
    %299 = vector.shape_cast %298 : vector<1x1x96xf32> to vector<1x96xf32>
    %300 = vector.broadcast %299 : vector<1x96xf32> to vector<8x96xf32>
    %301 = arith.addf %297, %300 : vector<8x96xf32>
    %302 = vector.extract_strided_slice %301 {offsets = [0, 0], sizes = [8, 32], strides = [1, 1]} : vector<8x96xf32> to vector<8x32xf32>
    %303 = vector.extract_strided_slice %301 {offsets = [0, 32], sizes = [8, 32], strides = [1, 1]} : vector<8x96xf32> to vector<8x32xf32>
    %304 = vector.extract_strided_slice %301 {offsets = [0, 64], sizes = [8, 32], strides = [1, 1]} : vector<8x96xf32> to vector<8x32xf32>
    %305 = tpu.transpose %303, [1, 0] : vector<8x32xf32> -> vector<32x8xf32>
    %306 = tpu.concatenate %305, %305, %305, %305 in 1 : vector<32x8xf32>, vector<32x8xf32>, vector<32x8xf32>, vector<32x8xf32> -> vector<32x32xf32>
    %307 = arith.mulf %306, %156 : vector<32x32xf32>
    %cst_120 = arith.constant dense<0.000000e+00> : vector<8x32xf32>
    %308 = tpu.matmul %302, %307, %cst_120 {dimension_numbers = #tpu.dot_dimension_numbers<[1], [0], [0], [1], [0, 0, 1, 1], [], []>} : vector<8x32xf32>, vector<32x32xf32>, vector<8x32xf32> -> vector<8x32xf32>
    %cst_121 = arith.constant 0.353553385 : f32
    %309 = vector.broadcast %cst_121 : f32 to vector<8x32xf32>
    %310 = arith.mulf %308, %309 : vector<8x32xf32>
    %311 = tpu.concatenate %5, %5, %5, %5 in 1 : vector<1x8xf32>, vector<1x8xf32>, vector<1x8xf32>, vector<1x8xf32> -> vector<1x32xf32>
    %cst_122 = arith.constant 0.000000e+00 : f32
    %312 = vector.broadcast %cst_122 : f32 to vector<1x32xf32>
    %313 = arith.cmpf oeq, %311, %312 : vector<1x32xf32>
    %cst_123 = arith.constant -1.000000e+09 : f32
    %314 = vector.shape_cast %313 : vector<1x32xi1> to vector<1x32xi1>
    %315 = vector.broadcast %314 : vector<1x32xi1> to vector<8x32xi1>
    %316 = vector.broadcast %cst_123 : f32 to vector<8x32xf32>
    %317 = arith.select %315, %316, %310 : vector<8x32xi1>, vector<8x32xf32>
    %cst_124 = arith.constant dense<0xFF800000> : vector<8xf32>
    %318 = vector.multi_reduction <maximumf>, %317, %cst_124 [1] : vector<8x32xf32> to vector<8xf32>
    %319 = vector.shape_cast %318 : vector<8xf32> to vector<8x1xf32>
    %320 = vector.broadcast %319 : vector<8x1xf32> to vector<8x32xf32>
    %321 = arith.subf %317, %320 : vector<8x32xf32>
    %322 = math.exp %321 : vector<8x32xf32>
    %cst_125 = arith.constant dense<0.000000e+00> : vector<8x32xf32>
    %323 = tpu.matmul %322, %184, %cst_125 {dimension_numbers = #tpu.dot_dimension_numbers<[1], [0], [0], [1], [0, 0, 1, 1], [], []>} : vector<8x32xf32>, vector<32x32xf32>, vector<8x32xf32> -> vector<8x32xf32>
    %324 = arith.divf %322, %323 : vector<8x32xf32>
    %325 = tpu.concatenate %304, %304, %304, %304 in 0 : vector<8x32xf32>, vector<8x32xf32>, vector<8x32xf32>, vector<8x32xf32> -> vector<32x32xf32>
    %326 = arith.mulf %325, %170 : vector<32x32xf32>
    %cst_126 = arith.constant dense<0.000000e+00> : vector<8x32xf32>
    %327 = tpu.matmul %324, %326, %cst_126 {dimension_numbers = #tpu.dot_dimension_numbers<[1], [0], [0], [1], [0, 0, 1, 1], [], []>} : vector<8x32xf32>, vector<32x32xf32>, vector<8x32xf32> -> vector<8x32xf32>
    %c1_127 = arith.constant 1 : index
    %c0_128 = arith.constant 0 : index
    %c0_129 = arith.constant 0 : index
    %328 = vector.load %arg7[%c1_127, %c0_128, %c0_129] : memref<2x32x32xf32, #tpu.memory_space<vmem>>, vector<1x32x32xf32>
    %329 = vector.shape_cast %328 : vector<1x32x32xf32> to vector<32x32xf32>
    %cst_130 = arith.constant dense<0.000000e+00> : vector<8x32xf32>
    %330 = tpu.matmul %327, %329, %cst_130 {dimension_numbers = #tpu.dot_dimension_numbers<[1], [0], [0], [1], [0, 0, 1, 1], [], []>} : vector<8x32xf32>, vector<32x32xf32>, vector<8x32xf32> -> vector<8x32xf32>
    %c1_131 = arith.constant 1 : index
    %c0_132 = arith.constant 0 : index
    %c0_133 = arith.constant 0 : index
    %331 = vector.load %arg8[%c1_131, %c0_132, %c0_133] : memref<2x1x32xf32, #tpu.memory_space<vmem>>, vector<1x1x32xf32>
    %332 = vector.shape_cast %331 : vector<1x1x32xf32> to vector<1x32xf32>
    %333 = vector.broadcast %332 : vector<1x32xf32> to vector<8x32xf32>
    %334 = arith.addf %330, %333 : vector<8x32xf32>
    %335 = arith.addf %334, %294 : vector<8x32xf32>
    %c1_134 = arith.constant 1 : index
    %c0_135 = arith.constant 0 : index
    %c0_136 = arith.constant 0 : index
    %336 = vector.load %arg9[%c1_134, %c0_135, %c0_136] : memref<2x1x32xf32, #tpu.memory_space<vmem>>, vector<1x1x32xf32>
    %337 = vector.shape_cast %336 : vector<1x1x32xf32> to vector<1x32xf32>
    %c1_137 = arith.constant 1 : index
    %c0_138 = arith.constant 0 : index
    %c0_139 = arith.constant 0 : index
    %338 = vector.load %arg10[%c1_137, %c0_138, %c0_139] : memref<2x1x32xf32, #tpu.memory_space<vmem>>, vector<1x1x32xf32>
    %339 = vector.shape_cast %338 : vector<1x1x32xf32> to vector<1x32xf32>
    %cst_140 = arith.constant dense<0.000000e+00> : vector<8xf32>
    %340 = vector.multi_reduction <add>, %335, %cst_140 [1] : vector<8x32xf32> to vector<8xf32>
    %341 = vector.shape_cast %340 : vector<8xf32> to vector<8x1xf32>
    %cst_141 = arith.constant 3.200000e+01 : f32
    %342 = vector.broadcast %cst_141 : f32 to vector<8x1xf32>
    %343 = arith.divf %341, %342 : vector<8x1xf32>
    %344 = vector.broadcast %343 : vector<8x1xf32> to vector<8x32xf32>
    %345 = arith.subf %335, %344 : vector<8x32xf32>
    %346 = arith.mulf %345, %345 : vector<8x32xf32>
    %cst_142 = arith.constant dense<0.000000e+00> : vector<8xf32>
    %347 = vector.multi_reduction <add>, %346, %cst_142 [1] : vector<8x32xf32> to vector<8xf32>
    %348 = vector.shape_cast %347 : vector<8xf32> to vector<8x1xf32>
    %cst_143 = arith.constant 3.200000e+01 : f32
    %349 = vector.broadcast %cst_143 : f32 to vector<8x1xf32>
    %350 = arith.divf %348, %349 : vector<8x1xf32>
    %351 = vector.broadcast %343 : vector<8x1xf32> to vector<8x32xf32>
    %352 = arith.subf %335, %351 : vector<8x32xf32>
    %cst_144 = arith.constant 9.99999974E-6 : f32
    %353 = vector.broadcast %cst_144 : f32 to vector<8x1xf32>
    %354 = arith.addf %350, %353 : vector<8x1xf32>
    %355 = math.rsqrt %354 : vector<8x1xf32>
    %356 = vector.broadcast %355 : vector<8x1xf32> to vector<8x32xf32>
    %357 = arith.mulf %352, %356 : vector<8x32xf32>
    %358 = vector.broadcast %337 : vector<1x32xf32> to vector<8x32xf32>
    %359 = arith.mulf %357, %358 : vector<8x32xf32>
    %360 = vector.broadcast %339 : vector<1x32xf32> to vector<8x32xf32>
    %361 = arith.addf %359, %360 : vector<8x32xf32>
    %c1_145 = arith.constant 1 : index
    %c0_146 = arith.constant 0 : index
    %c0_147 = arith.constant 0 : index
    %362 = vector.load %arg11[%c1_145, %c0_146, %c0_147] : memref<2x32x64xf32, #tpu.memory_space<vmem>>, vector<1x32x64xf32>
    %363 = vector.shape_cast %362 : vector<1x32x64xf32> to vector<32x64xf32>
    %cst_148 = arith.constant dense<0.000000e+00> : vector<8x64xf32>
    %364 = tpu.matmul %361, %363, %cst_148 {dimension_numbers = #tpu.dot_dimension_numbers<[1], [0], [0], [1], [0, 0, 1, 1], [], []>} : vector<8x32xf32>, vector<32x64xf32>, vector<8x64xf32> -> vector<8x64xf32>
    %c1_149 = arith.constant 1 : index
    %c0_150 = arith.constant 0 : index
    %c0_151 = arith.constant 0 : index
    %365 = vector.load %arg12[%c1_149, %c0_150, %c0_151] : memref<2x1x64xf32, #tpu.memory_space<vmem>>, vector<1x1x64xf32>
    %366 = vector.shape_cast %365 : vector<1x1x64xf32> to vector<1x64xf32>
    %367 = vector.broadcast %366 : vector<1x64xf32> to vector<8x64xf32>
    %368 = arith.addf %364, %367 : vector<8x64xf32>
    %cst_152 = arith.constant 0.000000e+00 : f32
    %369 = vector.broadcast %cst_152 : f32 to vector<8x64xf32>
    %370 = arith.maximumf %368, %369 : vector<8x64xf32>
    %c1_153 = arith.constant 1 : index
    %c0_154 = arith.constant 0 : index
    %c0_155 = arith.constant 0 : index
    %371 = vector.load %arg13[%c1_153, %c0_154, %c0_155] : memref<2x64x32xf32, #tpu.memory_space<vmem>>, vector<1x64x32xf32>
    %372 = vector.shape_cast %371 : vector<1x64x32xf32> to vector<64x32xf32>
    %cst_156 = arith.constant dense<0.000000e+00> : vector<8x32xf32>
    %373 = tpu.matmul %370, %372, %cst_156 {dimension_numbers = #tpu.dot_dimension_numbers<[1], [0], [0], [1], [0, 0, 1, 1], [], []>} : vector<8x64xf32>, vector<64x32xf32>, vector<8x32xf32> -> vector<8x32xf32>
    %c1_157 = arith.constant 1 : index
    %c0_158 = arith.constant 0 : index
    %c0_159 = arith.constant 0 : index
    %374 = vector.load %arg14[%c1_157, %c0_158, %c0_159] : memref<2x1x32xf32, #tpu.memory_space<vmem>>, vector<1x1x32xf32>
    %375 = vector.shape_cast %374 : vector<1x1x32xf32> to vector<1x32xf32>
    %376 = vector.broadcast %375 : vector<1x32xf32> to vector<8x32xf32>
    %377 = arith.addf %373, %376 : vector<8x32xf32>
    %378 = arith.addf %377, %361 : vector<8x32xf32>
    %c1_160 = arith.constant 1 : index
    %c0_161 = arith.constant 0 : index
    %c0_162 = arith.constant 0 : index
    %379 = vector.load %arg15[%c1_160, %c0_161, %c0_162] : memref<2x1x32xf32, #tpu.memory_space<vmem>>, vector<1x1x32xf32>
    %380 = vector.shape_cast %379 : vector<1x1x32xf32> to vector<1x32xf32>
    %c1_163 = arith.constant 1 : index
    %c0_164 = arith.constant 0 : index
    %c0_165 = arith.constant 0 : index
    %381 = vector.load %arg16[%c1_163, %c0_164, %c0_165] : memref<2x1x32xf32, #tpu.memory_space<vmem>>, vector<1x1x32xf32>
    %382 = vector.shape_cast %381 : vector<1x1x32xf32> to vector<1x32xf32>
    %cst_166 = arith.constant dense<0.000000e+00> : vector<8xf32>
    %383 = vector.multi_reduction <add>, %378, %cst_166 [1] : vector<8x32xf32> to vector<8xf32>
    %384 = vector.shape_cast %383 : vector<8xf32> to vector<8x1xf32>
    %cst_167 = arith.constant 3.200000e+01 : f32
    %385 = vector.broadcast %cst_167 : f32 to vector<8x1xf32>
    %386 = arith.divf %384, %385 : vector<8x1xf32>
    %387 = vector.broadcast %386 : vector<8x1xf32> to vector<8x32xf32>
    %388 = arith.subf %378, %387 : vector<8x32xf32>
    %389 = arith.mulf %388, %388 : vector<8x32xf32>
    %cst_168 = arith.constant dense<0.000000e+00> : vector<8xf32>
    %390 = vector.multi_reduction <add>, %389, %cst_168 [1] : vector<8x32xf32> to vector<8xf32>
    %391 = vector.shape_cast %390 : vector<8xf32> to vector<8x1xf32>
    %cst_169 = arith.constant 3.200000e+01 : f32
    %392 = vector.broadcast %cst_169 : f32 to vector<8x1xf32>
    %393 = arith.divf %391, %392 : vector<8x1xf32>
    %394 = vector.broadcast %386 : vector<8x1xf32> to vector<8x32xf32>
    %395 = arith.subf %378, %394 : vector<8x32xf32>
    %cst_170 = arith.constant 9.99999974E-6 : f32
    %396 = vector.broadcast %cst_170 : f32 to vector<8x1xf32>
    %397 = arith.addf %393, %396 : vector<8x1xf32>
    %398 = math.rsqrt %397 : vector<8x1xf32>
    %399 = vector.broadcast %398 : vector<8x1xf32> to vector<8x32xf32>
    %400 = arith.mulf %395, %399 : vector<8x32xf32>
    %401 = vector.broadcast %380 : vector<1x32xf32> to vector<8x32xf32>
    %402 = arith.mulf %400, %401 : vector<8x32xf32>
    %403 = vector.broadcast %382 : vector<1x32xf32> to vector<8x32xf32>
    %404 = arith.addf %402, %403 : vector<8x32xf32>
    %c0_171 = arith.constant 0 : index
    %c0_172 = arith.constant 0 : index
    %c0_173 = arith.constant 0 : index
    %405 = vector.load %arg17[%c0_171, %c0_172, %c0_173] : memref<2x32x96xf32, #tpu.memory_space<vmem>>, vector<1x32x96xf32>
    %406 = vector.shape_cast %405 : vector<1x32x96xf32> to vector<32x96xf32>
    %cst_174 = arith.constant dense<0.000000e+00> : vector<8x96xf32>
    %407 = tpu.matmul %3, %406, %cst_174 {dimension_numbers = #tpu.dot_dimension_numbers<[1], [0], [0], [1], [0, 0, 1, 1], [], []>} : vector<8x32xf32>, vector<32x96xf32>, vector<8x96xf32> -> vector<8x96xf32>
    %c0_175 = arith.constant 0 : index
    %c0_176 = arith.constant 0 : index
    %c0_177 = arith.constant 0 : index
    %408 = vector.load %arg18[%c0_175, %c0_176, %c0_177] : memref<2x1x96xf32, #tpu.memory_space<vmem>>, vector<1x1x96xf32>
    %409 = vector.shape_cast %408 : vector<1x1x96xf32> to vector<1x96xf32>
    %410 = vector.broadcast %409 : vector<1x96xf32> to vector<8x96xf32>
    %411 = arith.addf %407, %410 : vector<8x96xf32>
    %412 = vector.extract_strided_slice %411 {offsets = [0, 0], sizes = [8, 32], strides = [1, 1]} : vector<8x96xf32> to vector<8x32xf32>
    %413 = vector.extract_strided_slice %411 {offsets = [0, 32], sizes = [8, 32], strides = [1, 1]} : vector<8x96xf32> to vector<8x32xf32>
    %414 = vector.extract_strided_slice %411 {offsets = [0, 64], sizes = [8, 32], strides = [1, 1]} : vector<8x96xf32> to vector<8x32xf32>
    %415 = tpu.transpose %413, [1, 0] : vector<8x32xf32> -> vector<32x8xf32>
    %416 = tpu.concatenate %415, %415, %415, %415 in 1 : vector<32x8xf32>, vector<32x8xf32>, vector<32x8xf32>, vector<32x8xf32> -> vector<32x32xf32>
    %417 = arith.mulf %416, %156 : vector<32x32xf32>
    %cst_178 = arith.constant dense<0.000000e+00> : vector<8x32xf32>
    %418 = tpu.matmul %412, %417, %cst_178 {dimension_numbers = #tpu.dot_dimension_numbers<[1], [0], [0], [1], [0, 0, 1, 1], [], []>} : vector<8x32xf32>, vector<32x32xf32>, vector<8x32xf32> -> vector<8x32xf32>
    %cst_179 = arith.constant 0.353553385 : f32
    %419 = vector.broadcast %cst_179 : f32 to vector<8x32xf32>
    %420 = arith.mulf %418, %419 : vector<8x32xf32>
    %421 = tpu.concatenate %7, %7, %7, %7 in 1 : vector<1x8xf32>, vector<1x8xf32>, vector<1x8xf32>, vector<1x8xf32> -> vector<1x32xf32>
    %cst_180 = arith.constant 0.000000e+00 : f32
    %422 = vector.broadcast %cst_180 : f32 to vector<1x32xf32>
    %423 = arith.cmpf oeq, %421, %422 : vector<1x32xf32>
    %cst_181 = arith.constant -1.000000e+09 : f32
    %424 = vector.shape_cast %423 : vector<1x32xi1> to vector<1x32xi1>
    %425 = vector.broadcast %424 : vector<1x32xi1> to vector<8x32xi1>
    %426 = vector.broadcast %cst_181 : f32 to vector<8x32xf32>
    %427 = arith.select %425, %426, %420 : vector<8x32xi1>, vector<8x32xf32>
    %cst_182 = arith.constant dense<0xFF800000> : vector<8xf32>
    %428 = vector.multi_reduction <maximumf>, %427, %cst_182 [1] : vector<8x32xf32> to vector<8xf32>
    %429 = vector.shape_cast %428 : vector<8xf32> to vector<8x1xf32>
    %430 = vector.broadcast %429 : vector<8x1xf32> to vector<8x32xf32>
    %431 = arith.subf %427, %430 : vector<8x32xf32>
    %432 = math.exp %431 : vector<8x32xf32>
    %cst_183 = arith.constant dense<0.000000e+00> : vector<8x32xf32>
    %433 = tpu.matmul %432, %184, %cst_183 {dimension_numbers = #tpu.dot_dimension_numbers<[1], [0], [0], [1], [0, 0, 1, 1], [], []>} : vector<8x32xf32>, vector<32x32xf32>, vector<8x32xf32> -> vector<8x32xf32>
    %434 = arith.divf %432, %433 : vector<8x32xf32>
    %435 = tpu.concatenate %414, %414, %414, %414 in 0 : vector<8x32xf32>, vector<8x32xf32>, vector<8x32xf32>, vector<8x32xf32> -> vector<32x32xf32>
    %436 = arith.mulf %435, %170 : vector<32x32xf32>
    %cst_184 = arith.constant dense<0.000000e+00> : vector<8x32xf32>
    %437 = tpu.matmul %434, %436, %cst_184 {dimension_numbers = #tpu.dot_dimension_numbers<[1], [0], [0], [1], [0, 0, 1, 1], [], []>} : vector<8x32xf32>, vector<32x32xf32>, vector<8x32xf32> -> vector<8x32xf32>
    %c0_185 = arith.constant 0 : index
    %c0_186 = arith.constant 0 : index
    %c0_187 = arith.constant 0 : index
    %438 = vector.load %arg19[%c0_185, %c0_186, %c0_187] : memref<2x32x32xf32, #tpu.memory_space<vmem>>, vector<1x32x32xf32>
    %439 = vector.shape_cast %438 : vector<1x32x32xf32> to vector<32x32xf32>
    %cst_188 = arith.constant dense<0.000000e+00> : vector<8x32xf32>
    %440 = tpu.matmul %437, %439, %cst_188 {dimension_numbers = #tpu.dot_dimension_numbers<[1], [0], [0], [1], [0, 0, 1, 1], [], []>} : vector<8x32xf32>, vector<32x32xf32>, vector<8x32xf32> -> vector<8x32xf32>
    %c0_189 = arith.constant 0 : index
    %c0_190 = arith.constant 0 : index
    %c0_191 = arith.constant 0 : index
    %441 = vector.load %arg20[%c0_189, %c0_190, %c0_191] : memref<2x1x32xf32, #tpu.memory_space<vmem>>, vector<1x1x32xf32>
    %442 = vector.shape_cast %441 : vector<1x1x32xf32> to vector<1x32xf32>
    %443 = vector.broadcast %442 : vector<1x32xf32> to vector<8x32xf32>
    %444 = arith.addf %440, %443 : vector<8x32xf32>
    %445 = arith.addf %444, %3 : vector<8x32xf32>
    %c0_192 = arith.constant 0 : index
    %c0_193 = arith.constant 0 : index
    %c0_194 = arith.constant 0 : index
    %446 = vector.load %arg21[%c0_192, %c0_193, %c0_194] : memref<2x1x32xf32, #tpu.memory_space<vmem>>, vector<1x1x32xf32>
    %447 = vector.shape_cast %446 : vector<1x1x32xf32> to vector<1x32xf32>
    %c0_195 = arith.constant 0 : index
    %c0_196 = arith.constant 0 : index
    %c0_197 = arith.constant 0 : index
    %448 = vector.load %arg22[%c0_195, %c0_196, %c0_197] : memref<2x1x32xf32, #tpu.memory_space<vmem>>, vector<1x1x32xf32>
    %449 = vector.shape_cast %448 : vector<1x1x32xf32> to vector<1x32xf32>
    %cst_198 = arith.constant dense<0.000000e+00> : vector<8xf32>
    %450 = vector.multi_reduction <add>, %445, %cst_198 [1] : vector<8x32xf32> to vector<8xf32>
    %451 = vector.shape_cast %450 : vector<8xf32> to vector<8x1xf32>
    %cst_199 = arith.constant 3.200000e+01 : f32
    %452 = vector.broadcast %cst_199 : f32 to vector<8x1xf32>
    %453 = arith.divf %451, %452 : vector<8x1xf32>
    %454 = vector.broadcast %453 : vector<8x1xf32> to vector<8x32xf32>
    %455 = arith.subf %445, %454 : vector<8x32xf32>
    %456 = arith.mulf %455, %455 : vector<8x32xf32>
    %cst_200 = arith.constant dense<0.000000e+00> : vector<8xf32>
    %457 = vector.multi_reduction <add>, %456, %cst_200 [1] : vector<8x32xf32> to vector<8xf32>
    %458 = vector.shape_cast %457 : vector<8xf32> to vector<8x1xf32>
    %cst_201 = arith.constant 3.200000e+01 : f32
    %459 = vector.broadcast %cst_201 : f32 to vector<8x1xf32>
    %460 = arith.divf %458, %459 : vector<8x1xf32>
    %461 = vector.broadcast %453 : vector<8x1xf32> to vector<8x32xf32>
    %462 = arith.subf %445, %461 : vector<8x32xf32>
    %cst_202 = arith.constant 9.99999974E-6 : f32
    %463 = vector.broadcast %cst_202 : f32 to vector<8x1xf32>
    %464 = arith.addf %460, %463 : vector<8x1xf32>
    %465 = math.rsqrt %464 : vector<8x1xf32>
    %466 = vector.broadcast %465 : vector<8x1xf32> to vector<8x32xf32>
    %467 = arith.mulf %462, %466 : vector<8x32xf32>
    %468 = vector.broadcast %447 : vector<1x32xf32> to vector<8x32xf32>
    %469 = arith.mulf %467, %468 : vector<8x32xf32>
    %470 = vector.broadcast %449 : vector<1x32xf32> to vector<8x32xf32>
    %471 = arith.addf %469, %470 : vector<8x32xf32>
    %c0_203 = arith.constant 0 : index
    %c0_204 = arith.constant 0 : index
    %c0_205 = arith.constant 0 : index
    %472 = vector.load %arg23[%c0_203, %c0_204, %c0_205] : memref<2x32x32xf32, #tpu.memory_space<vmem>>, vector<1x32x32xf32>
    %473 = vector.shape_cast %472 : vector<1x32x32xf32> to vector<32x32xf32>
    %cst_206 = arith.constant dense<0.000000e+00> : vector<8x32xf32>
    %474 = tpu.matmul %471, %473, %cst_206 {dimension_numbers = #tpu.dot_dimension_numbers<[1], [0], [0], [1], [0, 0, 1, 1], [], []>} : vector<8x32xf32>, vector<32x32xf32>, vector<8x32xf32> -> vector<8x32xf32>
    %c0_207 = arith.constant 0 : index
    %c0_208 = arith.constant 0 : index
    %c0_209 = arith.constant 0 : index
    %475 = vector.load %arg24[%c0_207, %c0_208, %c0_209] : memref<2x1x32xf32, #tpu.memory_space<vmem>>, vector<1x1x32xf32>
    %476 = vector.shape_cast %475 : vector<1x1x32xf32> to vector<1x32xf32>
    %477 = vector.broadcast %476 : vector<1x32xf32> to vector<8x32xf32>
    %478 = arith.addf %474, %477 : vector<8x32xf32>
    %c0_210 = arith.constant 0 : index
    %c0_211 = arith.constant 0 : index
    %c0_212 = arith.constant 0 : index
    %479 = vector.load %arg25[%c0_210, %c0_211, %c0_212] : memref<2x32x64xf32, #tpu.memory_space<vmem>>, vector<1x32x64xf32>
    %480 = vector.shape_cast %479 : vector<1x32x64xf32> to vector<32x64xf32>
    %cst_213 = arith.constant dense<0.000000e+00> : vector<8x64xf32>
    %481 = tpu.matmul %404, %480, %cst_213 {dimension_numbers = #tpu.dot_dimension_numbers<[1], [0], [0], [1], [0, 0, 1, 1], [], []>} : vector<8x32xf32>, vector<32x64xf32>, vector<8x64xf32> -> vector<8x64xf32>
    %c0_214 = arith.constant 0 : index
    %c0_215 = arith.constant 0 : index
    %c0_216 = arith.constant 0 : index
    %482 = vector.load %arg26[%c0_214, %c0_215, %c0_216] : memref<2x1x64xf32, #tpu.memory_space<vmem>>, vector<1x1x64xf32>
    %483 = vector.shape_cast %482 : vector<1x1x64xf32> to vector<1x64xf32>
    %484 = vector.broadcast %483 : vector<1x64xf32> to vector<8x64xf32>
    %485 = arith.addf %481, %484 : vector<8x64xf32>
    %486 = vector.extract_strided_slice %485 {offsets = [0, 0], sizes = [8, 32], strides = [1, 1]} : vector<8x64xf32> to vector<8x32xf32>
    %487 = vector.extract_strided_slice %485 {offsets = [0, 32], sizes = [8, 32], strides = [1, 1]} : vector<8x64xf32> to vector<8x32xf32>
    %488 = tpu.transpose %486, [1, 0] : vector<8x32xf32> -> vector<32x8xf32>
    %489 = tpu.concatenate %488, %488, %488, %488 in 1 : vector<32x8xf32>, vector<32x8xf32>, vector<32x8xf32>, vector<32x8xf32> -> vector<32x32xf32>
    %490 = arith.mulf %489, %156 : vector<32x32xf32>
    %cst_217 = arith.constant dense<0.000000e+00> : vector<8x32xf32>
    %491 = tpu.matmul %478, %490, %cst_217 {dimension_numbers = #tpu.dot_dimension_numbers<[1], [0], [0], [1], [0, 0, 1, 1], [], []>} : vector<8x32xf32>, vector<32x32xf32>, vector<8x32xf32> -> vector<8x32xf32>
    %cst_218 = arith.constant 0.353553385 : f32
    %492 = vector.broadcast %cst_218 : f32 to vector<8x32xf32>
    %493 = arith.mulf %491, %492 : vector<8x32xf32>
    %494 = tpu.concatenate %5, %5, %5, %5 in 1 : vector<1x8xf32>, vector<1x8xf32>, vector<1x8xf32>, vector<1x8xf32> -> vector<1x32xf32>
    %cst_219 = arith.constant 0.000000e+00 : f32
    %495 = vector.broadcast %cst_219 : f32 to vector<1x32xf32>
    %496 = arith.cmpf oeq, %494, %495 : vector<1x32xf32>
    %cst_220 = arith.constant -1.000000e+09 : f32
    %497 = vector.shape_cast %496 : vector<1x32xi1> to vector<1x32xi1>
    %498 = vector.broadcast %497 : vector<1x32xi1> to vector<8x32xi1>
    %499 = vector.broadcast %cst_220 : f32 to vector<8x32xf32>
    %500 = arith.select %498, %499, %493 : vector<8x32xi1>, vector<8x32xf32>
    %cst_221 = arith.constant dense<0xFF800000> : vector<8xf32>
    %501 = vector.multi_reduction <maximumf>, %500, %cst_221 [1] : vector<8x32xf32> to vector<8xf32>
    %502 = vector.shape_cast %501 : vector<8xf32> to vector<8x1xf32>
    %503 = vector.broadcast %502 : vector<8x1xf32> to vector<8x32xf32>
    %504 = arith.subf %500, %503 : vector<8x32xf32>
    %505 = math.exp %504 : vector<8x32xf32>
    %cst_222 = arith.constant dense<0.000000e+00> : vector<8x32xf32>
    %506 = tpu.matmul %505, %184, %cst_222 {dimension_numbers = #tpu.dot_dimension_numbers<[1], [0], [0], [1], [0, 0, 1, 1], [], []>} : vector<8x32xf32>, vector<32x32xf32>, vector<8x32xf32> -> vector<8x32xf32>
    %507 = arith.divf %505, %506 : vector<8x32xf32>
    %508 = tpu.concatenate %487, %487, %487, %487 in 0 : vector<8x32xf32>, vector<8x32xf32>, vector<8x32xf32>, vector<8x32xf32> -> vector<32x32xf32>
    %509 = arith.mulf %508, %170 : vector<32x32xf32>
    %cst_223 = arith.constant dense<0.000000e+00> : vector<8x32xf32>
    %510 = tpu.matmul %507, %509, %cst_223 {dimension_numbers = #tpu.dot_dimension_numbers<[1], [0], [0], [1], [0, 0, 1, 1], [], []>} : vector<8x32xf32>, vector<32x32xf32>, vector<8x32xf32> -> vector<8x32xf32>
    %c0_224 = arith.constant 0 : index
    %c0_225 = arith.constant 0 : index
    %c0_226 = arith.constant 0 : index
    %511 = vector.load %arg27[%c0_224, %c0_225, %c0_226] : memref<2x32x32xf32, #tpu.memory_space<vmem>>, vector<1x32x32xf32>
    %512 = vector.shape_cast %511 : vector<1x32x32xf32> to vector<32x32xf32>
    %cst_227 = arith.constant dense<0.000000e+00> : vector<8x32xf32>
    %513 = tpu.matmul %510, %512, %cst_227 {dimension_numbers = #tpu.dot_dimension_numbers<[1], [0], [0], [1], [0, 0, 1, 1], [], []>} : vector<8x32xf32>, vector<32x32xf32>, vector<8x32xf32> -> vector<8x32xf32>
    %c0_228 = arith.constant 0 : index
    %c0_229 = arith.constant 0 : index
    %c0_230 = arith.constant 0 : index
    %514 = vector.load %arg28[%c0_228, %c0_229, %c0_230] : memref<2x1x32xf32, #tpu.memory_space<vmem>>, vector<1x1x32xf32>
    %515 = vector.shape_cast %514 : vector<1x1x32xf32> to vector<1x32xf32>
    %516 = vector.broadcast %515 : vector<1x32xf32> to vector<8x32xf32>
    %517 = arith.addf %513, %516 : vector<8x32xf32>
    %518 = arith.addf %517, %471 : vector<8x32xf32>
    %c0_231 = arith.constant 0 : index
    %c0_232 = arith.constant 0 : index
    %c0_233 = arith.constant 0 : index
    %519 = vector.load %arg29[%c0_231, %c0_232, %c0_233] : memref<2x1x32xf32, #tpu.memory_space<vmem>>, vector<1x1x32xf32>
    %520 = vector.shape_cast %519 : vector<1x1x32xf32> to vector<1x32xf32>
    %c0_234 = arith.constant 0 : index
    %c0_235 = arith.constant 0 : index
    %c0_236 = arith.constant 0 : index
    %521 = vector.load %arg30[%c0_234, %c0_235, %c0_236] : memref<2x1x32xf32, #tpu.memory_space<vmem>>, vector<1x1x32xf32>
    %522 = vector.shape_cast %521 : vector<1x1x32xf32> to vector<1x32xf32>
    %cst_237 = arith.constant dense<0.000000e+00> : vector<8xf32>
    %523 = vector.multi_reduction <add>, %518, %cst_237 [1] : vector<8x32xf32> to vector<8xf32>
    %524 = vector.shape_cast %523 : vector<8xf32> to vector<8x1xf32>
    %cst_238 = arith.constant 3.200000e+01 : f32
    %525 = vector.broadcast %cst_238 : f32 to vector<8x1xf32>
    %526 = arith.divf %524, %525 : vector<8x1xf32>
    %527 = vector.broadcast %526 : vector<8x1xf32> to vector<8x32xf32>
    %528 = arith.subf %518, %527 : vector<8x32xf32>
    %529 = arith.mulf %528, %528 : vector<8x32xf32>
    %cst_239 = arith.constant dense<0.000000e+00> : vector<8xf32>
    %530 = vector.multi_reduction <add>, %529, %cst_239 [1] : vector<8x32xf32> to vector<8xf32>
    %531 = vector.shape_cast %530 : vector<8xf32> to vector<8x1xf32>
    %cst_240 = arith.constant 3.200000e+01 : f32
    %532 = vector.broadcast %cst_240 : f32 to vector<8x1xf32>
    %533 = arith.divf %531, %532 : vector<8x1xf32>
    %534 = vector.broadcast %526 : vector<8x1xf32> to vector<8x32xf32>
    %535 = arith.subf %518, %534 : vector<8x32xf32>
    %cst_241 = arith.constant 9.99999974E-6 : f32
    %536 = vector.broadcast %cst_241 : f32 to vector<8x1xf32>
    %537 = arith.addf %533, %536 : vector<8x1xf32>
    %538 = math.rsqrt %537 : vector<8x1xf32>
    %539 = vector.broadcast %538 : vector<8x1xf32> to vector<8x32xf32>
    %540 = arith.mulf %535, %539 : vector<8x32xf32>
    %541 = vector.broadcast %520 : vector<1x32xf32> to vector<8x32xf32>
    %542 = arith.mulf %540, %541 : vector<8x32xf32>
    %543 = vector.broadcast %522 : vector<1x32xf32> to vector<8x32xf32>
    %544 = arith.addf %542, %543 : vector<8x32xf32>
    %c0_242 = arith.constant 0 : index
    %c0_243 = arith.constant 0 : index
    %c0_244 = arith.constant 0 : index
    %545 = vector.load %arg31[%c0_242, %c0_243, %c0_244] : memref<2x32x64xf32, #tpu.memory_space<vmem>>, vector<1x32x64xf32>
    %546 = vector.shape_cast %545 : vector<1x32x64xf32> to vector<32x64xf32>
    %cst_245 = arith.constant dense<0.000000e+00> : vector<8x64xf32>
    %547 = tpu.matmul %544, %546, %cst_245 {dimension_numbers = #tpu.dot_dimension_numbers<[1], [0], [0], [1], [0, 0, 1, 1], [], []>} : vector<8x32xf32>, vector<32x64xf32>, vector<8x64xf32> -> vector<8x64xf32>
    %c0_246 = arith.constant 0 : index
    %c0_247 = arith.constant 0 : index
    %c0_248 = arith.constant 0 : index
    %548 = vector.load %arg32[%c0_246, %c0_247, %c0_248] : memref<2x1x64xf32, #tpu.memory_space<vmem>>, vector<1x1x64xf32>
    %549 = vector.shape_cast %548 : vector<1x1x64xf32> to vector<1x64xf32>
    %550 = vector.broadcast %549 : vector<1x64xf32> to vector<8x64xf32>
    %551 = arith.addf %547, %550 : vector<8x64xf32>
    %cst_249 = arith.constant 0.000000e+00 : f32
    %552 = vector.broadcast %cst_249 : f32 to vector<8x64xf32>
    %553 = arith.maximumf %551, %552 : vector<8x64xf32>
    %c0_250 = arith.constant 0 : index
    %c0_251 = arith.constant 0 : index
    %c0_252 = arith.constant 0 : index
    %554 = vector.load %arg33[%c0_250, %c0_251, %c0_252] : memref<2x64x32xf32, #tpu.memory_space<vmem>>, vector<1x64x32xf32>
    %555 = vector.shape_cast %554 : vector<1x64x32xf32> to vector<64x32xf32>
    %cst_253 = arith.constant dense<0.000000e+00> : vector<8x32xf32>
    %556 = tpu.matmul %553, %555, %cst_253 {dimension_numbers = #tpu.dot_dimension_numbers<[1], [0], [0], [1], [0, 0, 1, 1], [], []>} : vector<8x64xf32>, vector<64x32xf32>, vector<8x32xf32> -> vector<8x32xf32>
    %c0_254 = arith.constant 0 : index
    %c0_255 = arith.constant 0 : index
    %c0_256 = arith.constant 0 : index
    %557 = vector.load %arg34[%c0_254, %c0_255, %c0_256] : memref<2x1x32xf32, #tpu.memory_space<vmem>>, vector<1x1x32xf32>
    %558 = vector.shape_cast %557 : vector<1x1x32xf32> to vector<1x32xf32>
    %559 = vector.broadcast %558 : vector<1x32xf32> to vector<8x32xf32>
    %560 = arith.addf %556, %559 : vector<8x32xf32>
    %561 = arith.addf %560, %544 : vector<8x32xf32>
    %c0_257 = arith.constant 0 : index
    %c0_258 = arith.constant 0 : index
    %c0_259 = arith.constant 0 : index
    %562 = vector.load %arg35[%c0_257, %c0_258, %c0_259] : memref<2x1x32xf32, #tpu.memory_space<vmem>>, vector<1x1x32xf32>
    %563 = vector.shape_cast %562 : vector<1x1x32xf32> to vector<1x32xf32>
    %c0_260 = arith.constant 0 : index
    %c0_261 = arith.constant 0 : index
    %c0_262 = arith.constant 0 : index
    %564 = vector.load %arg36[%c0_260, %c0_261, %c0_262] : memref<2x1x32xf32, #tpu.memory_space<vmem>>, vector<1x1x32xf32>
    %565 = vector.shape_cast %564 : vector<1x1x32xf32> to vector<1x32xf32>
    %cst_263 = arith.constant dense<0.000000e+00> : vector<8xf32>
    %566 = vector.multi_reduction <add>, %561, %cst_263 [1] : vector<8x32xf32> to vector<8xf32>
    %567 = vector.shape_cast %566 : vector<8xf32> to vector<8x1xf32>
    %cst_264 = arith.constant 3.200000e+01 : f32
    %568 = vector.broadcast %cst_264 : f32 to vector<8x1xf32>
    %569 = arith.divf %567, %568 : vector<8x1xf32>
    %570 = vector.broadcast %569 : vector<8x1xf32> to vector<8x32xf32>
    %571 = arith.subf %561, %570 : vector<8x32xf32>
    %572 = arith.mulf %571, %571 : vector<8x32xf32>
    %cst_265 = arith.constant dense<0.000000e+00> : vector<8xf32>
    %573 = vector.multi_reduction <add>, %572, %cst_265 [1] : vector<8x32xf32> to vector<8xf32>
    %574 = vector.shape_cast %573 : vector<8xf32> to vector<8x1xf32>
    %cst_266 = arith.constant 3.200000e+01 : f32
    %575 = vector.broadcast %cst_266 : f32 to vector<8x1xf32>
    %576 = arith.divf %574, %575 : vector<8x1xf32>
    %577 = vector.broadcast %569 : vector<8x1xf32> to vector<8x32xf32>
    %578 = arith.subf %561, %577 : vector<8x32xf32>
    %cst_267 = arith.constant 9.99999974E-6 : f32
    %579 = vector.broadcast %cst_267 : f32 to vector<8x1xf32>
    %580 = arith.addf %576, %579 : vector<8x1xf32>
    %581 = math.rsqrt %580 : vector<8x1xf32>
    %582 = vector.broadcast %581 : vector<8x1xf32> to vector<8x32xf32>
    %583 = arith.mulf %578, %582 : vector<8x32xf32>
    %584 = vector.broadcast %563 : vector<1x32xf32> to vector<8x32xf32>
    %585 = arith.mulf %583, %584 : vector<8x32xf32>
    %586 = vector.broadcast %565 : vector<1x32xf32> to vector<8x32xf32>
    %587 = arith.addf %585, %586 : vector<8x32xf32>
    %c1_268 = arith.constant 1 : index
    %c0_269 = arith.constant 0 : index
    %c0_270 = arith.constant 0 : index
    %588 = vector.load %arg17[%c1_268, %c0_269, %c0_270] : memref<2x32x96xf32, #tpu.memory_space<vmem>>, vector<1x32x96xf32>
    %589 = vector.shape_cast %588 : vector<1x32x96xf32> to vector<32x96xf32>
    %cst_271 = arith.constant dense<0.000000e+00> : vector<8x96xf32>
    %590 = tpu.matmul %587, %589, %cst_271 {dimension_numbers = #tpu.dot_dimension_numbers<[1], [0], [0], [1], [0, 0, 1, 1], [], []>} : vector<8x32xf32>, vector<32x96xf32>, vector<8x96xf32> -> vector<8x96xf32>
    %c1_272 = arith.constant 1 : index
    %c0_273 = arith.constant 0 : index
    %c0_274 = arith.constant 0 : index
    %591 = vector.load %arg18[%c1_272, %c0_273, %c0_274] : memref<2x1x96xf32, #tpu.memory_space<vmem>>, vector<1x1x96xf32>
    %592 = vector.shape_cast %591 : vector<1x1x96xf32> to vector<1x96xf32>
    %593 = vector.broadcast %592 : vector<1x96xf32> to vector<8x96xf32>
    %594 = arith.addf %590, %593 : vector<8x96xf32>
    %595 = vector.extract_strided_slice %594 {offsets = [0, 0], sizes = [8, 32], strides = [1, 1]} : vector<8x96xf32> to vector<8x32xf32>
    %596 = vector.extract_strided_slice %594 {offsets = [0, 32], sizes = [8, 32], strides = [1, 1]} : vector<8x96xf32> to vector<8x32xf32>
    %597 = vector.extract_strided_slice %594 {offsets = [0, 64], sizes = [8, 32], strides = [1, 1]} : vector<8x96xf32> to vector<8x32xf32>
    %598 = tpu.transpose %596, [1, 0] : vector<8x32xf32> -> vector<32x8xf32>
    %599 = tpu.concatenate %598, %598, %598, %598 in 1 : vector<32x8xf32>, vector<32x8xf32>, vector<32x8xf32>, vector<32x8xf32> -> vector<32x32xf32>
    %600 = arith.mulf %599, %156 : vector<32x32xf32>
    %cst_275 = arith.constant dense<0.000000e+00> : vector<8x32xf32>
    %601 = tpu.matmul %595, %600, %cst_275 {dimension_numbers = #tpu.dot_dimension_numbers<[1], [0], [0], [1], [0, 0, 1, 1], [], []>} : vector<8x32xf32>, vector<32x32xf32>, vector<8x32xf32> -> vector<8x32xf32>
    %cst_276 = arith.constant 0.353553385 : f32
    %602 = vector.broadcast %cst_276 : f32 to vector<8x32xf32>
    %603 = arith.mulf %601, %602 : vector<8x32xf32>
    %604 = tpu.concatenate %7, %7, %7, %7 in 1 : vector<1x8xf32>, vector<1x8xf32>, vector<1x8xf32>, vector<1x8xf32> -> vector<1x32xf32>
    %cst_277 = arith.constant 0.000000e+00 : f32
    %605 = vector.broadcast %cst_277 : f32 to vector<1x32xf32>
    %606 = arith.cmpf oeq, %604, %605 : vector<1x32xf32>
    %cst_278 = arith.constant -1.000000e+09 : f32
    %607 = vector.shape_cast %606 : vector<1x32xi1> to vector<1x32xi1>
    %608 = vector.broadcast %607 : vector<1x32xi1> to vector<8x32xi1>
    %609 = vector.broadcast %cst_278 : f32 to vector<8x32xf32>
    %610 = arith.select %608, %609, %603 : vector<8x32xi1>, vector<8x32xf32>
    %cst_279 = arith.constant dense<0xFF800000> : vector<8xf32>
    %611 = vector.multi_reduction <maximumf>, %610, %cst_279 [1] : vector<8x32xf32> to vector<8xf32>
    %612 = vector.shape_cast %611 : vector<8xf32> to vector<8x1xf32>
    %613 = vector.broadcast %612 : vector<8x1xf32> to vector<8x32xf32>
    %614 = arith.subf %610, %613 : vector<8x32xf32>
    %615 = math.exp %614 : vector<8x32xf32>
    %cst_280 = arith.constant dense<0.000000e+00> : vector<8x32xf32>
    %616 = tpu.matmul %615, %184, %cst_280 {dimension_numbers = #tpu.dot_dimension_numbers<[1], [0], [0], [1], [0, 0, 1, 1], [], []>} : vector<8x32xf32>, vector<32x32xf32>, vector<8x32xf32> -> vector<8x32xf32>
    %617 = arith.divf %615, %616 : vector<8x32xf32>
    %618 = tpu.concatenate %597, %597, %597, %597 in 0 : vector<8x32xf32>, vector<8x32xf32>, vector<8x32xf32>, vector<8x32xf32> -> vector<32x32xf32>
    %619 = arith.mulf %618, %170 : vector<32x32xf32>
    %cst_281 = arith.constant dense<0.000000e+00> : vector<8x32xf32>
    %620 = tpu.matmul %617, %619, %cst_281 {dimension_numbers = #tpu.dot_dimension_numbers<[1], [0], [0], [1], [0, 0, 1, 1], [], []>} : vector<8x32xf32>, vector<32x32xf32>, vector<8x32xf32> -> vector<8x32xf32>
    %c1_282 = arith.constant 1 : index
    %c0_283 = arith.constant 0 : index
    %c0_284 = arith.constant 0 : index
    %621 = vector.load %arg19[%c1_282, %c0_283, %c0_284] : memref<2x32x32xf32, #tpu.memory_space<vmem>>, vector<1x32x32xf32>
    %622 = vector.shape_cast %621 : vector<1x32x32xf32> to vector<32x32xf32>
    %cst_285 = arith.constant dense<0.000000e+00> : vector<8x32xf32>
    %623 = tpu.matmul %620, %622, %cst_285 {dimension_numbers = #tpu.dot_dimension_numbers<[1], [0], [0], [1], [0, 0, 1, 1], [], []>} : vector<8x32xf32>, vector<32x32xf32>, vector<8x32xf32> -> vector<8x32xf32>
    %c1_286 = arith.constant 1 : index
    %c0_287 = arith.constant 0 : index
    %c0_288 = arith.constant 0 : index
    %624 = vector.load %arg20[%c1_286, %c0_287, %c0_288] : memref<2x1x32xf32, #tpu.memory_space<vmem>>, vector<1x1x32xf32>
    %625 = vector.shape_cast %624 : vector<1x1x32xf32> to vector<1x32xf32>
    %626 = vector.broadcast %625 : vector<1x32xf32> to vector<8x32xf32>
    %627 = arith.addf %623, %626 : vector<8x32xf32>
    %628 = arith.addf %627, %587 : vector<8x32xf32>
    %c1_289 = arith.constant 1 : index
    %c0_290 = arith.constant 0 : index
    %c0_291 = arith.constant 0 : index
    %629 = vector.load %arg21[%c1_289, %c0_290, %c0_291] : memref<2x1x32xf32, #tpu.memory_space<vmem>>, vector<1x1x32xf32>
    %630 = vector.shape_cast %629 : vector<1x1x32xf32> to vector<1x32xf32>
    %c1_292 = arith.constant 1 : index
    %c0_293 = arith.constant 0 : index
    %c0_294 = arith.constant 0 : index
    %631 = vector.load %arg22[%c1_292, %c0_293, %c0_294] : memref<2x1x32xf32, #tpu.memory_space<vmem>>, vector<1x1x32xf32>
    %632 = vector.shape_cast %631 : vector<1x1x32xf32> to vector<1x32xf32>
    %cst_295 = arith.constant dense<0.000000e+00> : vector<8xf32>
    %633 = vector.multi_reduction <add>, %628, %cst_295 [1] : vector<8x32xf32> to vector<8xf32>
    %634 = vector.shape_cast %633 : vector<8xf32> to vector<8x1xf32>
    %cst_296 = arith.constant 3.200000e+01 : f32
    %635 = vector.broadcast %cst_296 : f32 to vector<8x1xf32>
    %636 = arith.divf %634, %635 : vector<8x1xf32>
    %637 = vector.broadcast %636 : vector<8x1xf32> to vector<8x32xf32>
    %638 = arith.subf %628, %637 : vector<8x32xf32>
    %639 = arith.mulf %638, %638 : vector<8x32xf32>
    %cst_297 = arith.constant dense<0.000000e+00> : vector<8xf32>
    %640 = vector.multi_reduction <add>, %639, %cst_297 [1] : vector<8x32xf32> to vector<8xf32>
    %641 = vector.shape_cast %640 : vector<8xf32> to vector<8x1xf32>
    %cst_298 = arith.constant 3.200000e+01 : f32
    %642 = vector.broadcast %cst_298 : f32 to vector<8x1xf32>
    %643 = arith.divf %641, %642 : vector<8x1xf32>
    %644 = vector.broadcast %636 : vector<8x1xf32> to vector<8x32xf32>
    %645 = arith.subf %628, %644 : vector<8x32xf32>
    %cst_299 = arith.constant 9.99999974E-6 : f32
    %646 = vector.broadcast %cst_299 : f32 to vector<8x1xf32>
    %647 = arith.addf %643, %646 : vector<8x1xf32>
    %648 = math.rsqrt %647 : vector<8x1xf32>
    %649 = vector.broadcast %648 : vector<8x1xf32> to vector<8x32xf32>
    %650 = arith.mulf %645, %649 : vector<8x32xf32>
    %651 = vector.broadcast %630 : vector<1x32xf32> to vector<8x32xf32>
    %652 = arith.mulf %650, %651 : vector<8x32xf32>
    %653 = vector.broadcast %632 : vector<1x32xf32> to vector<8x32xf32>
    %654 = arith.addf %652, %653 : vector<8x32xf32>
    %c1_300 = arith.constant 1 : index
    %c0_301 = arith.constant 0 : index
    %c0_302 = arith.constant 0 : index
    %655 = vector.load %arg23[%c1_300, %c0_301, %c0_302] : memref<2x32x32xf32, #tpu.memory_space<vmem>>, vector<1x32x32xf32>
    %656 = vector.shape_cast %655 : vector<1x32x32xf32> to vector<32x32xf32>
    %cst_303 = arith.constant dense<0.000000e+00> : vector<8x32xf32>
    %657 = tpu.matmul %654, %656, %cst_303 {dimension_numbers = #tpu.dot_dimension_numbers<[1], [0], [0], [1], [0, 0, 1, 1], [], []>} : vector<8x32xf32>, vector<32x32xf32>, vector<8x32xf32> -> vector<8x32xf32>
    %c1_304 = arith.constant 1 : index
    %c0_305 = arith.constant 0 : index
    %c0_306 = arith.constant 0 : index
    %658 = vector.load %arg24[%c1_304, %c0_305, %c0_306] : memref<2x1x32xf32, #tpu.memory_space<vmem>>, vector<1x1x32xf32>
    %659 = vector.shape_cast %658 : vector<1x1x32xf32> to vector<1x32xf32>
    %660 = vector.broadcast %659 : vector<1x32xf32> to vector<8x32xf32>
    %661 = arith.addf %657, %660 : vector<8x32xf32>
    %c1_307 = arith.constant 1 : index
    %c0_308 = arith.constant 0 : index
    %c0_309 = arith.constant 0 : index
    %662 = vector.load %arg25[%c1_307, %c0_308, %c0_309] : memref<2x32x64xf32, #tpu.memory_space<vmem>>, vector<1x32x64xf32>
    %663 = vector.shape_cast %662 : vector<1x32x64xf32> to vector<32x64xf32>
    %cst_310 = arith.constant dense<0.000000e+00> : vector<8x64xf32>
    %664 = tpu.matmul %404, %663, %cst_310 {dimension_numbers = #tpu.dot_dimension_numbers<[1], [0], [0], [1], [0, 0, 1, 1], [], []>} : vector<8x32xf32>, vector<32x64xf32>, vector<8x64xf32> -> vector<8x64xf32>
    %c1_311 = arith.constant 1 : index
    %c0_312 = arith.constant 0 : index
    %c0_313 = arith.constant 0 : index
    %665 = vector.load %arg26[%c1_311, %c0_312, %c0_313] : memref<2x1x64xf32, #tpu.memory_space<vmem>>, vector<1x1x64xf32>
    %666 = vector.shape_cast %665 : vector<1x1x64xf32> to vector<1x64xf32>
    %667 = vector.broadcast %666 : vector<1x64xf32> to vector<8x64xf32>
    %668 = arith.addf %664, %667 : vector<8x64xf32>
    %669 = vector.extract_strided_slice %668 {offsets = [0, 0], sizes = [8, 32], strides = [1, 1]} : vector<8x64xf32> to vector<8x32xf32>
    %670 = vector.extract_strided_slice %668 {offsets = [0, 32], sizes = [8, 32], strides = [1, 1]} : vector<8x64xf32> to vector<8x32xf32>
    %671 = tpu.transpose %669, [1, 0] : vector<8x32xf32> -> vector<32x8xf32>
    %672 = tpu.concatenate %671, %671, %671, %671 in 1 : vector<32x8xf32>, vector<32x8xf32>, vector<32x8xf32>, vector<32x8xf32> -> vector<32x32xf32>
    %673 = arith.mulf %672, %156 : vector<32x32xf32>
    %cst_314 = arith.constant dense<0.000000e+00> : vector<8x32xf32>
    %674 = tpu.matmul %661, %673, %cst_314 {dimension_numbers = #tpu.dot_dimension_numbers<[1], [0], [0], [1], [0, 0, 1, 1], [], []>} : vector<8x32xf32>, vector<32x32xf32>, vector<8x32xf32> -> vector<8x32xf32>
    %cst_315 = arith.constant 0.353553385 : f32
    %675 = vector.broadcast %cst_315 : f32 to vector<8x32xf32>
    %676 = arith.mulf %674, %675 : vector<8x32xf32>
    %677 = tpu.concatenate %5, %5, %5, %5 in 1 : vector<1x8xf32>, vector<1x8xf32>, vector<1x8xf32>, vector<1x8xf32> -> vector<1x32xf32>
    %cst_316 = arith.constant 0.000000e+00 : f32
    %678 = vector.broadcast %cst_316 : f32 to vector<1x32xf32>
    %679 = arith.cmpf oeq, %677, %678 : vector<1x32xf32>
    %cst_317 = arith.constant -1.000000e+09 : f32
    %680 = vector.shape_cast %679 : vector<1x32xi1> to vector<1x32xi1>
    %681 = vector.broadcast %680 : vector<1x32xi1> to vector<8x32xi1>
    %682 = vector.broadcast %cst_317 : f32 to vector<8x32xf32>
    %683 = arith.select %681, %682, %676 : vector<8x32xi1>, vector<8x32xf32>
    %cst_318 = arith.constant dense<0xFF800000> : vector<8xf32>
    %684 = vector.multi_reduction <maximumf>, %683, %cst_318 [1] : vector<8x32xf32> to vector<8xf32>
    %685 = vector.shape_cast %684 : vector<8xf32> to vector<8x1xf32>
    %686 = vector.broadcast %685 : vector<8x1xf32> to vector<8x32xf32>
    %687 = arith.subf %683, %686 : vector<8x32xf32>
    %688 = math.exp %687 : vector<8x32xf32>
    %cst_319 = arith.constant dense<0.000000e+00> : vector<8x32xf32>
    %689 = tpu.matmul %688, %184, %cst_319 {dimension_numbers = #tpu.dot_dimension_numbers<[1], [0], [0], [1], [0, 0, 1, 1], [], []>} : vector<8x32xf32>, vector<32x32xf32>, vector<8x32xf32> -> vector<8x32xf32>
    %690 = arith.divf %688, %689 : vector<8x32xf32>
    %691 = tpu.concatenate %670, %670, %670, %670 in 0 : vector<8x32xf32>, vector<8x32xf32>, vector<8x32xf32>, vector<8x32xf32> -> vector<32x32xf32>
    %692 = arith.mulf %691, %170 : vector<32x32xf32>
    %cst_320 = arith.constant dense<0.000000e+00> : vector<8x32xf32>
    %693 = tpu.matmul %690, %692, %cst_320 {dimension_numbers = #tpu.dot_dimension_numbers<[1], [0], [0], [1], [0, 0, 1, 1], [], []>} : vector<8x32xf32>, vector<32x32xf32>, vector<8x32xf32> -> vector<8x32xf32>
    %c1_321 = arith.constant 1 : index
    %c0_322 = arith.constant 0 : index
    %c0_323 = arith.constant 0 : index
    %694 = vector.load %arg27[%c1_321, %c0_322, %c0_323] : memref<2x32x32xf32, #tpu.memory_space<vmem>>, vector<1x32x32xf32>
    %695 = vector.shape_cast %694 : vector<1x32x32xf32> to vector<32x32xf32>
    %cst_324 = arith.constant dense<0.000000e+00> : vector<8x32xf32>
    %696 = tpu.matmul %693, %695, %cst_324 {dimension_numbers = #tpu.dot_dimension_numbers<[1], [0], [0], [1], [0, 0, 1, 1], [], []>} : vector<8x32xf32>, vector<32x32xf32>, vector<8x32xf32> -> vector<8x32xf32>
    %c1_325 = arith.constant 1 : index
    %c0_326 = arith.constant 0 : index
    %c0_327 = arith.constant 0 : index
    %697 = vector.load %arg28[%c1_325, %c0_326, %c0_327] : memref<2x1x32xf32, #tpu.memory_space<vmem>>, vector<1x1x32xf32>
    %698 = vector.shape_cast %697 : vector<1x1x32xf32> to vector<1x32xf32>
    %699 = vector.broadcast %698 : vector<1x32xf32> to vector<8x32xf32>
    %700 = arith.addf %696, %699 : vector<8x32xf32>
    %701 = arith.addf %700, %654 : vector<8x32xf32>
    %c1_328 = arith.constant 1 : index
    %c0_329 = arith.constant 0 : index
    %c0_330 = arith.constant 0 : index
    %702 = vector.load %arg29[%c1_328, %c0_329, %c0_330] : memref<2x1x32xf32, #tpu.memory_space<vmem>>, vector<1x1x32xf32>
    %703 = vector.shape_cast %702 : vector<1x1x32xf32> to vector<1x32xf32>
    %c1_331 = arith.constant 1 : index
    %c0_332 = arith.constant 0 : index
    %c0_333 = arith.constant 0 : index
    %704 = vector.load %arg30[%c1_331, %c0_332, %c0_333] : memref<2x1x32xf32, #tpu.memory_space<vmem>>, vector<1x1x32xf32>
    %705 = vector.shape_cast %704 : vector<1x1x32xf32> to vector<1x32xf32>
    %cst_334 = arith.constant dense<0.000000e+00> : vector<8xf32>
    %706 = vector.multi_reduction <add>, %701, %cst_334 [1] : vector<8x32xf32> to vector<8xf32>
    %707 = vector.shape_cast %706 : vector<8xf32> to vector<8x1xf32>
    %cst_335 = arith.constant 3.200000e+01 : f32
    %708 = vector.broadcast %cst_335 : f32 to vector<8x1xf32>
    %709 = arith.divf %707, %708 : vector<8x1xf32>
    %710 = vector.broadcast %709 : vector<8x1xf32> to vector<8x32xf32>
    %711 = arith.subf %701, %710 : vector<8x32xf32>
    %712 = arith.mulf %711, %711 : vector<8x32xf32>
    %cst_336 = arith.constant dense<0.000000e+00> : vector<8xf32>
    %713 = vector.multi_reduction <add>, %712, %cst_336 [1] : vector<8x32xf32> to vector<8xf32>
    %714 = vector.shape_cast %713 : vector<8xf32> to vector<8x1xf32>
    %cst_337 = arith.constant 3.200000e+01 : f32
    %715 = vector.broadcast %cst_337 : f32 to vector<8x1xf32>
    %716 = arith.divf %714, %715 : vector<8x1xf32>
    %717 = vector.broadcast %709 : vector<8x1xf32> to vector<8x32xf32>
    %718 = arith.subf %701, %717 : vector<8x32xf32>
    %cst_338 = arith.constant 9.99999974E-6 : f32
    %719 = vector.broadcast %cst_338 : f32 to vector<8x1xf32>
    %720 = arith.addf %716, %719 : vector<8x1xf32>
    %721 = math.rsqrt %720 : vector<8x1xf32>
    %722 = vector.broadcast %721 : vector<8x1xf32> to vector<8x32xf32>
    %723 = arith.mulf %718, %722 : vector<8x32xf32>
    %724 = vector.broadcast %703 : vector<1x32xf32> to vector<8x32xf32>
    %725 = arith.mulf %723, %724 : vector<8x32xf32>
    %726 = vector.broadcast %705 : vector<1x32xf32> to vector<8x32xf32>
    %727 = arith.addf %725, %726 : vector<8x32xf32>
    %c1_339 = arith.constant 1 : index
    %c0_340 = arith.constant 0 : index
    %c0_341 = arith.constant 0 : index
    %728 = vector.load %arg31[%c1_339, %c0_340, %c0_341] : memref<2x32x64xf32, #tpu.memory_space<vmem>>, vector<1x32x64xf32>
    %729 = vector.shape_cast %728 : vector<1x32x64xf32> to vector<32x64xf32>
    %cst_342 = arith.constant dense<0.000000e+00> : vector<8x64xf32>
    %730 = tpu.matmul %727, %729, %cst_342 {dimension_numbers = #tpu.dot_dimension_numbers<[1], [0], [0], [1], [0, 0, 1, 1], [], []>} : vector<8x32xf32>, vector<32x64xf32>, vector<8x64xf32> -> vector<8x64xf32>
    %c1_343 = arith.constant 1 : index
    %c0_344 = arith.constant 0 : index
    %c0_345 = arith.constant 0 : index
    %731 = vector.load %arg32[%c1_343, %c0_344, %c0_345] : memref<2x1x64xf32, #tpu.memory_space<vmem>>, vector<1x1x64xf32>
    %732 = vector.shape_cast %731 : vector<1x1x64xf32> to vector<1x64xf32>
    %733 = vector.broadcast %732 : vector<1x64xf32> to vector<8x64xf32>
    %734 = arith.addf %730, %733 : vector<8x64xf32>
    %cst_346 = arith.constant 0.000000e+00 : f32
    %735 = vector.broadcast %cst_346 : f32 to vector<8x64xf32>
    %736 = arith.maximumf %734, %735 : vector<8x64xf32>
    %c1_347 = arith.constant 1 : index
    %c0_348 = arith.constant 0 : index
    %c0_349 = arith.constant 0 : index
    %737 = vector.load %arg33[%c1_347, %c0_348, %c0_349] : memref<2x64x32xf32, #tpu.memory_space<vmem>>, vector<1x64x32xf32>
    %738 = vector.shape_cast %737 : vector<1x64x32xf32> to vector<64x32xf32>
    %cst_350 = arith.constant dense<0.000000e+00> : vector<8x32xf32>
    %739 = tpu.matmul %736, %738, %cst_350 {dimension_numbers = #tpu.dot_dimension_numbers<[1], [0], [0], [1], [0, 0, 1, 1], [], []>} : vector<8x64xf32>, vector<64x32xf32>, vector<8x32xf32> -> vector<8x32xf32>
    %c1_351 = arith.constant 1 : index
    %c0_352 = arith.constant 0 : index
    %c0_353 = arith.constant 0 : index
    %740 = vector.load %arg34[%c1_351, %c0_352, %c0_353] : memref<2x1x32xf32, #tpu.memory_space<vmem>>, vector<1x1x32xf32>
    %741 = vector.shape_cast %740 : vector<1x1x32xf32> to vector<1x32xf32>
    %742 = vector.broadcast %741 : vector<1x32xf32> to vector<8x32xf32>
    %743 = arith.addf %739, %742 : vector<8x32xf32>
    %744 = arith.addf %743, %727 : vector<8x32xf32>
    %c1_354 = arith.constant 1 : index
    %c0_355 = arith.constant 0 : index
    %c0_356 = arith.constant 0 : index
    %745 = vector.load %arg35[%c1_354, %c0_355, %c0_356] : memref<2x1x32xf32, #tpu.memory_space<vmem>>, vector<1x1x32xf32>
    %746 = vector.shape_cast %745 : vector<1x1x32xf32> to vector<1x32xf32>
    %c1_357 = arith.constant 1 : index
    %c0_358 = arith.constant 0 : index
    %c0_359 = arith.constant 0 : index
    %747 = vector.load %arg36[%c1_357, %c0_358, %c0_359] : memref<2x1x32xf32, #tpu.memory_space<vmem>>, vector<1x1x32xf32>
    %748 = vector.shape_cast %747 : vector<1x1x32xf32> to vector<1x32xf32>
    %cst_360 = arith.constant dense<0.000000e+00> : vector<8xf32>
    %749 = vector.multi_reduction <add>, %744, %cst_360 [1] : vector<8x32xf32> to vector<8xf32>
    %750 = vector.shape_cast %749 : vector<8xf32> to vector<8x1xf32>
    %cst_361 = arith.constant 3.200000e+01 : f32
    %751 = vector.broadcast %cst_361 : f32 to vector<8x1xf32>
    %752 = arith.divf %750, %751 : vector<8x1xf32>
    %753 = vector.broadcast %752 : vector<8x1xf32> to vector<8x32xf32>
    %754 = arith.subf %744, %753 : vector<8x32xf32>
    %755 = arith.mulf %754, %754 : vector<8x32xf32>
    %cst_362 = arith.constant dense<0.000000e+00> : vector<8xf32>
    %756 = vector.multi_reduction <add>, %755, %cst_362 [1] : vector<8x32xf32> to vector<8xf32>
    %757 = vector.shape_cast %756 : vector<8xf32> to vector<8x1xf32>
    %cst_363 = arith.constant 3.200000e+01 : f32
    %758 = vector.broadcast %cst_363 : f32 to vector<8x1xf32>
    %759 = arith.divf %757, %758 : vector<8x1xf32>
    %760 = vector.broadcast %752 : vector<8x1xf32> to vector<8x32xf32>
    %761 = arith.subf %744, %760 : vector<8x32xf32>
    %cst_364 = arith.constant 9.99999974E-6 : f32
    %762 = vector.broadcast %cst_364 : f32 to vector<8x1xf32>
    %763 = arith.addf %759, %762 : vector<8x1xf32>
    %764 = math.rsqrt %763 : vector<8x1xf32>
    %765 = vector.broadcast %764 : vector<8x1xf32> to vector<8x32xf32>
    %766 = arith.mulf %761, %765 : vector<8x32xf32>
    %767 = vector.broadcast %746 : vector<1x32xf32> to vector<8x32xf32>
    %768 = arith.mulf %766, %767 : vector<8x32xf32>
    %769 = vector.broadcast %748 : vector<1x32xf32> to vector<8x32xf32>
    %770 = arith.addf %768, %769 : vector<8x32xf32>
    %c0_365 = arith.constant 0 : index
    %c0_366 = arith.constant 0 : index
    %771 = vector.load %arg37[%c0_365, %c0_366] : memref<32x128xf32, #tpu.memory_space<vmem>>, vector<32x128xf32>
    %cst_367 = arith.constant dense<0.000000e+00> : vector<8x128xf32>
    %772 = tpu.matmul %770, %771, %cst_367 {dimension_numbers = #tpu.dot_dimension_numbers<[1], [0], [0], [1], [0, 0, 1, 1], [], []>} : vector<8x32xf32>, vector<32x128xf32>, vector<8x128xf32> -> vector<8x128xf32>
    %c0_368 = arith.constant 0 : index
    %c0_369 = arith.constant 0 : index
    %773 = vector.load %arg38[%c0_368, %c0_369] : memref<1x128xf32, #tpu.memory_space<vmem>>, vector<1x128xf32>
    %774 = vector.broadcast %773 : vector<1x128xf32> to vector<8x128xf32>
    %775 = arith.addf %772, %774 : vector<8x128xf32>
    %c0_370 = arith.constant 0 : index
    %c0_371 = arith.constant 0 : index
    %c0_372 = arith.constant 0 : index
    %776 = vector.load %arg39[%c0_370, %c0_371, %c0_372] : memref<1x8x128xf32, #tpu.memory_space<vmem>>, vector<1x8x128xf32>
    %777 = vector.shape_cast %776 : vector<1x8x128xf32> to vector<8x128xf32>
    %778 = vector.shape_cast %775 : vector<8x128xf32> to vector<1x8x128xf32>
    tpu.vector_store %arg39[%c0_370, %c0_371, %c0_372], %778 {strides = array<i32>} : memref<1x8x128xf32, #tpu.memory_space<vmem>>, vector<1x8x128xf32>,
    return
  }
  func.func @transform_0(%arg0: i32) -> (i32, i32, i32) {
    %c0_i32 = arith.constant 0 : i32
    %c0_i32_0 = arith.constant 0 : i32
    %c0_i32_1 = arith.constant 0 : i32
    return %arg0, %c0_i32, %c0_i32_0 : i32, i32, i32
  }
  func.func @transform_1(%arg0: i32) -> (i32, i32, i32) {
    %c0_i32 = arith.constant 0 : i32
    %c0_i32_0 = arith.constant 0 : i32
    %c0_i32_1 = arith.constant 0 : i32
    return %arg0, %c0_i32, %c0_i32_0 : i32, i32, i32
  }
  func.func @transform_2(%arg0: i32) -> (i32, i32, i32) {
    %c0_i32 = arith.constant 0 : i32
    %c0_i32_0 = arith.constant 0 : i32
    %c0_i32_1 = arith.constant 0 : i32
    return %arg0, %c0_i32, %c0_i32_0 : i32, i32, i32
  }
  func.func @transform_3(%arg0: i32) -> (i32, i32, i32) {
    %c0_i32 = arith.constant 0 : i32
    %c0_i32_0 = arith.constant 0 : i32
    %c0_i32_1 = arith.constant 0 : i32
    return %arg0, %c0_i32, %c0_i32_0 : i32, i32, i32
  }
  func.func @transform_4(%arg0: i32) -> (i32, i32, i32) {
    %c0_i32 = arith.constant 0 : i32
    %c0_i32_0 = arith.constant 0 : i32
    %c0_i32_1 = arith.constant 0 : i32
    %c0_i32_2 = arith.constant 0 : i32
    return %c0_i32, %c0_i32_0, %c0_i32_1 : i32, i32, i32
  }
  func.func @transform_5(%arg0: i32) -> (i32, i32, i32) {
    %c0_i32 = arith.constant 0 : i32
    %c0_i32_0 = arith.constant 0 : i32
    %c0_i32_1 = arith.constant 0 : i32
    %c0_i32_2 = arith.constant 0 : i32
    return %c0_i32, %c0_i32_0, %c0_i32_1 : i32, i32, i32
  }
  func.func @transform_6(%arg0: i32) -> (i32, i32, i32) {
    %c0_i32 = arith.constant 0 : i32
    %c0_i32_0 = arith.constant 0 : i32
    %c0_i32_1 = arith.constant 0 : i32
    %c0_i32_2 = arith.constant 0 : i32
    return %c0_i32, %c0_i32_0, %c0_i32_1 : i32, i32, i32
  }
  func.func @transform_7(%arg0: i32) -> (i32, i32, i32) {
    %c0_i32 = arith.constant 0 : i32
    %c0_i32_0 = arith.constant 0 : i32
    %c0_i32_1 = arith.constant 0 : i32
    %c0_i32_2 = arith.constant 0 : i32
    return %c0_i32, %c0_i32_0, %c0_i32_1 : i32, i32, i32
  }
  func.func @transform_8(%arg0: i32) -> (i32, i32, i32) {
    %c0_i32 = arith.constant 0 : i32
    %c0_i32_0 = arith.constant 0 : i32
    %c0_i32_1 = arith.constant 0 : i32
    %c0_i32_2 = arith.constant 0 : i32
    return %c0_i32, %c0_i32_0, %c0_i32_1 : i32, i32, i32
  }
  func.func @transform_9(%arg0: i32) -> (i32, i32, i32) {
    %c0_i32 = arith.constant 0 : i32
    %c0_i32_0 = arith.constant 0 : i32
    %c0_i32_1 = arith.constant 0 : i32
    %c0_i32_2 = arith.constant 0 : i32
    return %c0_i32, %c0_i32_0, %c0_i32_1 : i32, i32, i32
  }
  func.func @transform_10(%arg0: i32) -> (i32, i32, i32) {
    %c0_i32 = arith.constant 0 : i32
    %c0_i32_0 = arith.constant 0 : i32
    %c0_i32_1 = arith.constant 0 : i32
    %c0_i32_2 = arith.constant 0 : i32
    return %c0_i32, %c0_i32_0, %c0_i32_1 : i32, i32, i32
  }
  func.func @transform_11(%arg0: i32) -> (i32, i32, i32) {
    %c0_i32 = arith.constant 0 : i32
    %c0_i32_0 = arith.constant 0 : i32
    %c0_i32_1 = arith.constant 0 : i32
    %c0_i32_2 = arith.constant 0 : i32
    return %c0_i32, %c0_i32_0, %c0_i32_1 : i32, i32, i32
  }
  func.func @transform_12(%arg0: i32) -> (i32, i32, i32) {
    %c0_i32 = arith.constant 0 : i32
    %c0_i32_0 = arith.constant 0 : i32
    %c0_i32_1 = arith.constant 0 : i32
    %c0_i32_2 = arith.constant 0 : i32
    return %c0_i32, %c0_i32_0, %c0_i32_1 : i32, i32, i32
  }
  func.func @transform_13(%arg0: i32) -> (i32, i32, i32) {
    %c0_i32 = arith.constant 0 : i32
    %c0_i32_0 = arith.constant 0 : i32
    %c0_i32_1 = arith.constant 0 : i32
    %c0_i32_2 = arith.constant 0 : i32
    return %c0_i32, %c0_i32_0, %c0_i32_1 : i32, i32, i32
  }
  func.func @transform_14(%arg0: i32) -> (i32, i32, i32) {
    %c0_i32 = arith.constant 0 : i32
    %c0_i32_0 = arith.constant 0 : i32
    %c0_i32_1 = arith.constant 0 : i32
    %c0_i32_2 = arith.constant 0 : i32
    return %c0_i32, %c0_i32_0, %c0_i32_1 : i32, i32, i32
  }
  func.func @transform_15(%arg0: i32) -> (i32, i32, i32) {
    %c0_i32 = arith.constant 0 : i32
    %c0_i32_0 = arith.constant 0 : i32
    %c0_i32_1 = arith.constant 0 : i32
    %c0_i32_2 = arith.constant 0 : i32
    return %c0_i32, %c0_i32_0, %c0_i32_1 : i32, i32, i32
  }
  func.func @transform_16(%arg0: i32) -> (i32, i32, i32) {
    %c0_i32 = arith.constant 0 : i32
    %c0_i32_0 = arith.constant 0 : i32
    %c0_i32_1 = arith.constant 0 : i32
    %c0_i32_2 = arith.constant 0 : i32
    return %c0_i32, %c0_i32_0, %c0_i32_1 : i32, i32, i32
  }
  func.func @transform_17(%arg0: i32) -> (i32, i32, i32) {
    %c0_i32 = arith.constant 0 : i32
    %c0_i32_0 = arith.constant 0 : i32
    %c0_i32_1 = arith.constant 0 : i32
    %c0_i32_2 = arith.constant 0 : i32
    return %c0_i32, %c0_i32_0, %c0_i32_1 : i32, i32, i32
  }
  func.func @transform_18(%arg0: i32) -> (i32, i32, i32) {
    %c0_i32 = arith.constant 0 : i32
    %c0_i32_0 = arith.constant 0 : i32
    %c0_i32_1 = arith.constant 0 : i32
    %c0_i32_2 = arith.constant 0 : i32
    return %c0_i32, %c0_i32_0, %c0_i32_1 : i32, i32, i32
  }
  func.func @transform_19(%arg0: i32) -> (i32, i32, i32) {
    %c0_i32 = arith.constant 0 : i32
    %c0_i32_0 = arith.constant 0 : i32
    %c0_i32_1 = arith.constant 0 : i32
    %c0_i32_2 = arith.constant 0 : i32
    return %c0_i32, %c0_i32_0, %c0_i32_1 : i32, i32, i32
  }
  func.func @transform_20(%arg0: i32) -> (i32, i32, i32) {
    %c0_i32 = arith.constant 0 : i32
    %c0_i32_0 = arith.constant 0 : i32
    %c0_i32_1 = arith.constant 0 : i32
    %c0_i32_2 = arith.constant 0 : i32
    return %c0_i32, %c0_i32_0, %c0_i32_1 : i32, i32, i32
  }
  func.func @transform_21(%arg0: i32) -> (i32, i32, i32) {
    %c0_i32 = arith.constant 0 : i32
    %c0_i32_0 = arith.constant 0 : i32
    %c0_i32_1 = arith.constant 0 : i32
    %c0_i32_2 = arith.constant 0 : i32
    return %c0_i32, %c0_i32_0, %c0_i32_1 : i32, i32, i32
  }
  func.func @transform_22(%arg0: i32) -> (i32, i32, i32) {
    %c0_i32 = arith.constant 0 : i32
    %c0_i32_0 = arith.constant 0 : i32
    %c0_i32_1 = arith.constant 0 : i32
    %c0_i32_2 = arith.constant 0 : i32
    return %c0_i32, %c0_i32_0, %c0_i32_1 : i32, i32, i32
  }
  func.func @transform_23(%arg0: i32) -> (i32, i32, i32) {
    %c0_i32 = arith.constant 0 : i32
    %c0_i32_0 = arith.constant 0 : i32
    %c0_i32_1 = arith.constant 0 : i32
    %c0_i32_2 = arith.constant 0 : i32
    return %c0_i32, %c0_i32_0, %c0_i32_1 : i32, i32, i32
  }
  func.func @transform_24(%arg0: i32) -> (i32, i32, i32) {
    %c0_i32 = arith.constant 0 : i32
    %c0_i32_0 = arith.constant 0 : i32
    %c0_i32_1 = arith.constant 0 : i32
    %c0_i32_2 = arith.constant 0 : i32
    return %c0_i32, %c0_i32_0, %c0_i32_1 : i32, i32, i32
  }
  func.func @transform_25(%arg0: i32) -> (i32, i32, i32) {
    %c0_i32 = arith.constant 0 : i32
    %c0_i32_0 = arith.constant 0 : i32
    %c0_i32_1 = arith.constant 0 : i32
    %c0_i32_2 = arith.constant 0 : i32
    return %c0_i32, %c0_i32_0, %c0_i32_1 : i32, i32, i32
  }
  func.func @transform_26(%arg0: i32) -> (i32, i32, i32) {
    %c0_i32 = arith.constant 0 : i32
    %c0_i32_0 = arith.constant 0 : i32
    %c0_i32_1 = arith.constant 0 : i32
    %c0_i32_2 = arith.constant 0 : i32
    return %c0_i32, %c0_i32_0, %c0_i32_1 : i32, i32, i32
  }
  func.func @transform_27(%arg0: i32) -> (i32, i32, i32) {
    %c0_i32 = arith.constant 0 : i32
    %c0_i32_0 = arith.constant 0 : i32
    %c0_i32_1 = arith.constant 0 : i32
    %c0_i32_2 = arith.constant 0 : i32
    return %c0_i32, %c0_i32_0, %c0_i32_1 : i32, i32, i32
  }
  func.func @transform_28(%arg0: i32) -> (i32, i32, i32) {
    %c0_i32 = arith.constant 0 : i32
    %c0_i32_0 = arith.constant 0 : i32
    %c0_i32_1 = arith.constant 0 : i32
    %c0_i32_2 = arith.constant 0 : i32
    return %c0_i32, %c0_i32_0, %c0_i32_1 : i32, i32, i32
  }
  func.func @transform_29(%arg0: i32) -> (i32, i32, i32) {
    %c0_i32 = arith.constant 0 : i32
    %c0_i32_0 = arith.constant 0 : i32
    %c0_i32_1 = arith.constant 0 : i32
    %c0_i32_2 = arith.constant 0 : i32
    return %c0_i32, %c0_i32_0, %c0_i32_1 : i32, i32, i32
  }
  func.func @transform_30(%arg0: i32) -> (i32, i32, i32) {
    %c0_i32 = arith.constant 0 : i32
    %c0_i32_0 = arith.constant 0 : i32
    %c0_i32_1 = arith.constant 0 : i32
    %c0_i32_2 = arith.constant 0 : i32
    return %c0_i32, %c0_i32_0, %c0_i32_1 : i32, i32, i32
  }
  func.func @transform_31(%arg0: i32) -> (i32, i32, i32) {
    %c0_i32 = arith.constant 0 : i32
    %c0_i32_0 = arith.constant 0 : i32
    %c0_i32_1 = arith.constant 0 : i32
    %c0_i32_2 = arith.constant 0 : i32
    return %c0_i32, %c0_i32_0, %c0_i32_1 : i32, i32, i32
  }
  func.func @transform_32(%arg0: i32) -> (i32, i32, i32) {
    %c0_i32 = arith.constant 0 : i32
    %c0_i32_0 = arith.constant 0 : i32
    %c0_i32_1 = arith.constant 0 : i32
    %c0_i32_2 = arith.constant 0 : i32
    return %c0_i32, %c0_i32_0, %c0_i32_1 : i32, i32, i32
  }
  func.func @transform_33(%arg0: i32) -> (i32, i32, i32) {
    %c0_i32 = arith.constant 0 : i32
    %c0_i32_0 = arith.constant 0 : i32
    %c0_i32_1 = arith.constant 0 : i32
    %c0_i32_2 = arith.constant 0 : i32
    return %c0_i32, %c0_i32_0, %c0_i32_1 : i32, i32, i32
  }
  func.func @transform_34(%arg0: i32) -> (i32, i32, i32) {
    %c0_i32 = arith.constant 0 : i32
    %c0_i32_0 = arith.constant 0 : i32
    %c0_i32_1 = arith.constant 0 : i32
    %c0_i32_2 = arith.constant 0 : i32
    return %c0_i32, %c0_i32_0, %c0_i32_1 : i32, i32, i32
  }
  func.func @transform_35(%arg0: i32) -> (i32, i32, i32) {
    %c0_i32 = arith.constant 0 : i32
    %c0_i32_0 = arith.constant 0 : i32
    %c0_i32_1 = arith.constant 0 : i32
    %c0_i32_2 = arith.constant 0 : i32
    return %c0_i32, %c0_i32_0, %c0_i32_1 : i32, i32, i32
  }
  func.func @transform_36(%arg0: i32) -> (i32, i32) {
    %c0_i32 = arith.constant 0 : i32
    %c0_i32_0 = arith.constant 0 : i32
    %c0_i32_1 = arith.constant 0 : i32
    return %c0_i32, %c0_i32_0 : i32, i32
  }
  func.func @transform_37(%arg0: i32) -> (i32, i32) {
    %c0_i32 = arith.constant 0 : i32
    %c0_i32_0 = arith.constant 0 : i32
    %c0_i32_1 = arith.constant 0 : i32
    return %c0_i32, %c0_i32_0 : i32, i32
  }
  func.func @transform_38(%arg0: i32) -> (i32, i32, i32) {
    %c0_i32 = arith.constant 0 : i32
    %c0_i32_0 = arith.constant 0 : i32
    %c0_i32_1 = arith.constant 0 : i32
    return %arg0, %c0_i32, %c0_i32_0 : i32, i32, i32
  }
}

</mosaic_0001>

<bundles_post_ra>
// kernel: transformer_forward.1
= control target key start
LH: loop header
LB: loop body
LE: loop exit
PB: predicated region body
PF: predicated region fallthrough
CT: control target
= control target key end

     0   :  { %s6962_s6 = smov 1   ;;  %s6963_s10 = smov 2   ;;  %s8291_s0 = inlined_call_operand.smem [shape: u32[39], index: -1, kind: input, shape index: {}] }
   0x1   :  { %s7019_s5 = sld [smem:[%s8291_s0]]   ;;  %s6964_s14 = smov 3  }
   0x2   :  { %s7024_s9 = sld [smem:[%s8291_s0 + %s6962_s6]]   ;;  %s6965_s18 = smov 4  }
   0x3   :  { %s7029_s13 = sld [smem:[%s8291_s0 + %s6963_s10]]   ;;  %s6966_s22 = smov 5  }
   0x4   :  { %s7034_s17 = sld [smem:[%s8291_s0 + %s6964_s14]]   ;;  %s6967_s26 = smov 6  }
   0x5   :  { %s7039_s21 = sld [smem:[%s8291_s0 + %s6965_s18]]   ;;  %s6968_s30 = smov 7  }
   0x6   :  { %s7044_s25 = sld [smem:[%s8291_s0 + %s6966_s22]]   ;;  %s6969_s4 = smov 8  }
   0x7   :  { %8350 = sst [smem:[#allocation5_spill]] %s7019_s5  ;;  %s6970_s10 = smov 9  }
   0x8   :  { %8351 = sst [smem:[#allocation6_spill]] %s7024_s9  ;;  %s6971_s15 = smov 10  }
   0x9   :  { %8352 = sst [smem:[#allocation7_spill]] %s7029_s13  ;;  %s6972_s20 = smov 11  }
   0xa   :  { %8353 = sst [smem:[#allocation8_spill]] %s7034_s17  ;;  %s6974_s1 = smov 13  }
   0xb   :  { %8354 = sst [smem:[#allocation9_spill]] %s7039_s21  ;;  %s6975_s7 = smov 14  }
   0xc   :  { %8355 = sst [smem:[#allocation10_spill]] %s7044_s25  ;;  %s6977_s22 = smov 16  }
   0xd   :  { %s7049_s29 = sld [smem:[%s8291_s0 + %s6967_s26]]   ;;  %s6973_s26 = smov 12  }
   0xe   :  { %s7054_s3 = sld [smem:[%s8291_s0 + %s6968_s30]]   ;;  %s6978_s28 = smov 17  }
   0xf   :  { %s7059_s8 = sld [smem:[%s8291_s0 + %s6969_s4]]  }
  0x10   :  { %s7064_s14 = sld [smem:[%s8291_s0 + %s6970_s10]]  }
  0x11   :  { %s7069_s19 = sld [smem:[%s8291_s0 + %s6971_s15]]   ;;  %s6976_s15 = smov 15  }
  0x12   :  { %s7074_s24 = sld [smem:[%s8291_s0 + %s6972_s20]]  }
  0x13   :  { %8356 = sst [smem:[#allocation11_spill]] %s7049_s29 }
  0x14   :  { %8357 = sst [smem:[#allocation12_spill]] %s7054_s3 }
  0x15   :  { %8358 = sst [smem:[#allocation13_spill]] %s7059_s8 }
  0x16   :  { %8359 = sst [smem:[#allocation14_spill]] %s7064_s14 }
  0x17   :  { %8360 = sst [smem:[#allocation15_spill]] %s7069_s19 }
  0x18   :  { %8361 = sst [smem:[#allocation16_spill]] %s7074_s24 }
  0x19   :  { %s7079_s30 = sld [smem:[%s8291_s0 + %s6973_s26]]  }
  0x1a   :  { %s7084_s6 = sld [smem:[%s8291_s0 + %s6974_s1]]  }
  0x1b   :  { %s7089_s12 = sld [smem:[%s8291_s0 + %s6975_s7]]   ;;  %s6979_s7 = smov 18  }
  0x1c   :  { %s7094_s20 = sld [smem:[%s8291_s0 + %s6976_s15]]   ;;  %s6980_s15 = smov 19  }
  0x1d   :  { %s7099_s27 = sld [smem:[%s8291_s0 + %s6977_s22]]   ;;  %s6981_s22 = smov 20  }
  0x1e   :  { %s7104_s4 = sld [smem:[%s8291_s0 + %s6978_s28]]   ;;  %s6982_s28 = smov 21  }
  0x1f   :  { %8362 = sst [smem:[#allocation17_spill]] %s7079_s30 }
  0x20   :  { %8363 = sst [smem:[#allocation18_spill]] %s7084_s6 }
  0x21   :  { %8364 = sst [smem:[#allocation19_spill]] %s7089_s12 }
  0x22   :  { %8365 = sst [smem:[#allocation20_spill]] %s7094_s20 }
  0x23   :  { %8366 = sst [smem:[#allocation21_spill]] %s7099_s27 }
  0x24   :  { %8367 = sst [smem:[#allocation22_spill]] %s7104_s4 }
  0x25   :  { %s7109_s17 = sld [smem:[%s8291_s0 + %s6979_s7]]   ;;  %s6983_s7 = smov 22  }
  0x26   :  { %s7114_s9 = sld [smem:[%s8291_s0 + %s6980_s15]]   ;;  %s6984_s15 = smov 23  }
  0x27   :  { %s7119_s27 = sld [smem:[%s8291_s0 + %s6981_s22]]   ;;  %s6985_s22 = smov 24  }
  0x28   :  { %s7124_s4 = sld [smem:[%s8291_s0 + %s6982_s28]]   ;;  %s6986_s28 = smov 25  }
  0x2b   :  { %8368 = sst [smem:[#allocation23_spill]] %s7109_s17 }
  0x2c   :  { %8369 = sst [smem:[#allocation24_spill]] %s7114_s9 }
  0x2d   :  { %8370 = sst [smem:[#allocation25_spill]] %s7119_s27 }
  0x2e   :  { %8371 = sst [smem:[#allocation26_spill]] %s7124_s4 }
  0x2f   :  { %s7129_s17 = sld [smem:[%s8291_s0 + %s6983_s7]]   ;;  %s6987_s7 = smov 26  }
  0x30   :  { %s7134_s9 = sld [smem:[%s8291_s0 + %s6984_s15]]   ;;  %s6988_s15 = smov 27  }
  0x31   :  { %s7139_s27 = sld [smem:[%s8291_s0 + %s6985_s22]]   ;;  %s6989_s22 = smov 28  }
  0x32   :  { %s7144_s4 = sld [smem:[%s8291_s0 + %s6986_s28]]   ;;  %s6990_s28 = smov 29  }
  0x35   :  { %8372 = sst [smem:[#allocation27_spill]] %s7129_s17 }
  0x36   :  { %8373 = sst [smem:[#allocation28_spill]] %s7134_s9 }
  0x37   :  { %8374 = sst [smem:[#allocation29_spill]] %s7139_s27 }
  0x38   :  { %8375 = sst [smem:[#allocation30_spill]] %s7144_s4 }
  0x39   :  { %s7149_s17 = sld [smem:[%s8291_s0 + %s6987_s7]]   ;;  %s6991_s7 = smov 30  }
  0x3a   :  { %s7154_s9 = sld [smem:[%s8291_s0 + %s6988_s15]]   ;;  %s6992_s15 = smov 31  }
  0x3b   :  { %s7159_s27 = sld [smem:[%s8291_s0 + %s6989_s22]]   ;;  %s6993_s22 = smov 32  }
  0x3c   :  { %s7164_s4 = sld [smem:[%s8291_s0 + %s6990_s28]]   ;;  %s6994_s28 = smov 33  }
  0x3f   :  { %8376 = sst [smem:[#allocation31_spill]] %s7149_s17 }
  0x40   :  { %8377 = sst [smem:[#allocation32_spill]] %s7154_s9 }
  0x41   :  { %8378 = sst [smem:[#allocation33_spill]] %s7159_s27 }
  0x42   :  { %8379 = sst [smem:[#allocation34_spill]] %s7164_s4 }
  0x43   :  { %s7169_s17 = sld [smem:[%s8291_s0 + %s6991_s7]]   ;;  %s6995_s7 = smov 34  }
  0x44   :  { %s7174_s9 = sld [smem:[%s8291_s0 + %s6992_s15]]   ;;  %s6996_s15 = smov 35  }
  0x45   :  { %s7179_s27 = sld [smem:[%s8291_s0 + %s6993_s22]]   ;;  %s6997_s22 = smov 36  }
  0x46   :  { %s7184_s4 = sld [smem:[%s8291_s0 + %s6994_s28]]   ;;  %s6998_s28 = smov 37  }
  0x49   :  { %8380 = sst [smem:[#allocation35_spill]] %s7169_s17 }
  0x4a   :  { %8381 = sst [smem:[#allocation36_spill]] %s7174_s9 }
  0x4b   :  { %8382 = sst [smem:[#allocation37_spill]] %s7179_s27 }
  0x4c   :  { %8383 = sst [smem:[#allocation38_spill]] %s7184_s4 }
  0x4d   :  { %s7189_s17 = sld [smem:[%s8291_s0 + %s6995_s7]]   ;;  %s6999_s7 = smov 38  }
  0x4e   :  { %s7194_s9 = sld [smem:[%s8291_s0 + %s6996_s15]]  }
  0x4f   :  { %s7199_s27 = sld [smem:[%s8291_s0 + %s6997_s22]]  }
  0x50   :  { %s7204_s4 = sld [smem:[%s8291_s0 + %s6998_s28]]  }
  0x53   :  { %8384 = sst [smem:[#allocation39_spill]] %s7189_s17 }
  0x54   :  { %8385 = sst [smem:[#allocation40_spill]] %s7194_s9 }
  0x55   :  { %s7209_s17 = sld [smem:[%s8291_s0 + %s6999_s7]]  }
  0x56   :  { %8386 = sst [smem:[#allocation41_spill]] %s7204_s4 }
  0x5b   :  { %8387 = sst [smem:[#allocation42_spill]] %s7209_s17 }
  0x5c   :  { %82 = vsyncpa [#allocation3], 0 }
  0x5d   :  { %84 = vsyncpa [#allocation3 + $0x1], 0  ;;  %s7211_s15 = smov 0   ;;  %s7213_s16 = smov 0  }
  0x5e   :  { %s7215_s18 = smov 0   ;;  %s7217_s22 = smov 0  }
  0x5f LB: > { %s8388_s9 = sld [smem:[#allocation40_spill]]  ;;  %s7232_s0 = sadd.s32 4294967295, %s6960_s22   ;;  %s6948_s15 = sphi %s7211_s15, %s8463_s15   ;;  %s6960_s22 = sphi %s7217_s22, %s8460_s22   ;;  %s6956_s18 = sphi %s7215_s18, %s8462_s18   ;;  %s6952_s16 = sphi %s7213_s16, %s8464_s16  }
  0x60   : > { %s8389_s30 = sld [smem:[#allocation17_spill]]  ;;  %s5869_s23 = sadd.s32 4294967294, %s6960_s22  }
  0x61   : > { %s8390_s29 = sld [smem:[#allocation11_spill]]  ;;  %s7236_s26 = sadd.s32 1, %s6960_s22  }
  0x62   : > { %s8391_s25 = sld [smem:[#allocation10_spill]]  ;;  %s915_s28 = sadd.s32 1, %s6956_s18 }
  0x63   : > { %s8392_s24 = sld [smem:[#allocation16_spill]]  ;;  %s912_s1 = ssub.s32 %s6960_s22, %s7236_s26 }
  0x64   : > { %s8393_s21 = sld [smem:[#allocation9_spill]]  ;;  %p925_p0 = scmp.ne.s32.totalorder %s6956_s18, %s6952_s16 }
  0x65   : > { %s8394_s20 = sld [smem:[#allocation20_spill]]  ;;  %p913_p1 = scmp.eq.s32.totalorder %s912_s1, 0 }
  0x66   : > { %s8395_s19 = sld [smem:[#allocation15_spill]]  ;;  %p926_p2 = scmp.eq.s32.totalorder %s7232_s0, 1 }
  0x67   : > { %s8396_s12 = sld [smem:[#allocation19_spill]]  ;;  %p931_p3 = scmp.ne.s32.totalorder %s6952_s16, %s6948_s15 }
  0x68   : > { %s8397_s6 = sld [smem:[#allocation18_spill]]  ;;  %p932_p4 = scmp.eq.s32.totalorder %s5869_s23, 1 }
  0x69   : > { %s8398_s14 = sld [smem:[#allocation14_spill]]  ;;  %p7249_p5 = por %p926_p2, %p925_p0 }
  0x6a   : > { %s8399_s8 = sld [smem:[#allocation13_spill]]  ;;  %p7253_p6 = por %p932_p4, %p931_p3 }
  0x6b   : > { %s8400_s3 = sld [smem:[#allocation12_spill]]  ;;  %p5872_p7 = scmp.ge.s32.totalorder %s6960_s22, 1 }
  0x6c   : > { %8401 = sst [smem:[#allocation43_spill]] %s6948_s15  ;;  %p1078_p8 = scmp.lt.s32.totalorder %s6960_s22, 3 }
  0x6d   : > { %8402 = sst [smem:[#allocation44_spill]] %s6956_s18 }
  0x6e   : > { %8403 = sst [smem:[#allocation45_spill]] %s7232_s0  ;;  %p1079_p9 = pnand %p5872_p7, %p1078_p8 }
  0x6f   : > { %8404 = sst [smem:[#allocation46_spill]] %s7236_s26  ;;  %p1181_p10 = scmp.lt.s32.totalorder (!%p1079_p9), %s7232_s0, 1 }
  0x70   : > { %s7247_s2 = scalar_select %p913_p1, %s6956_s18, %s915_s28  }
  0x71   : > { %s8406_s7 = scalar_select %p7249_p5, 1, 0 }
  0x72   : > { %8405 = sst [smem:[#allocation47_spill]] %s7247_s2  ;;  %1082 = sbr.rel (%p1079_p9) target bundleno = 12784 (0x31f0), region = 172 }
  0x73   : > { %8407 = sst [smem:[#allocation48_spill]] %s8406_s7  ;;  %s8312_s1 = smov (!%p1079_p9), 96  }
  0x74   : > { %s8408_s10 = scalar_select %p7253_p6, 1, 0 }
  0x75   : > { %s8410_s5 = sld [smem:[#allocation5_spill]] (!%p1079_p9) }
  0x76   : > { %8409 = sst [smem:[#allocation49_spill]] %s8408_s10 }
  0x77   : > { %v1333_v0 = vld [vmem:[%s8393_s21 + $0x18] sm:$0xff]  ;;  %v7000_v1 = vmov 0.0   ;;  %v1332_v2 = vld [vmem:[%s8393_s21 + $0x10] sm:$0xff]  ;;  %vm7001_vm0 = vmmov 0   ;;  %s7266_s11 = scalar_select %p1181_p10, %s7232_s0, 1  ;;  %v1331_v3 = vld [vmem:[%s8393_s21 + $0x8] sm:$0xff]  ;;  %v1204_v11 = vlaneseq }
  0x78   : > { %6286 = vmatprep.subr.mxu0 %v7000_v1  ;;  %6294 = vmatprep.mubr.msk.f32.mxu0 %vm7001_vm0, %v7000_v1  ;;  %v1330_v4 = vld [vmem:[%s8393_s21] sm:$0xff]  ;;  %vm1341_vm1 = vcmask 261120   ;;  %s8415_s13 = sld [smem:[#allocation7_spill]]  ;;  %vm1496_vm9 = vcmask 130048   ;;  %vm1491_vm12 = vcmask 64512   ;;  %vm1501_vm13 = vcmask 195584  }
  0x79   : > { %6287 = vmatpush3.msra.mxu0 %v1333_v0  ;;  %6297 = vmatprep.subr.mxu1 %v7000_v1  ;;  %s8311_s23 = sshll.u32 %s7266_s11, 3  ;;  %v5880_v6 = vld [vmem:[%s8391_s25] ss:$0 sm:$0xff]  ;;  %v7292_v12 = vand.u32 127, %v1204_v11  ;;  %v1585_v22 = vshrl.u32 %v1204_v11, 7  ;;  %s8445_s18 = sld [smem:[#allocation33_spill]] }
  0x7a   : > { %6288 = vmatprep.subr.mxu0 %v7000_v1  ;;  %6305 = vmatprep.mubr.msk.f32.mxu1 %vm7001_vm0, %v7000_v1  ;;  %s8447_s10 = sld [smem:[#allocation34_spill]] }
  0x7b   : > { %6289 = vmatpush3.msra.mxu0 %v1332_v2  ;;  %s1184_s28 = scalar_lea.vmem %s8410_s5, %s8311_s23  ;;  %vm1311_vm2 = vcmp.ge.s32.totalorder %v7292_v12, 24  ;;  %vm1312_vm3 = vcmp.lt.s32.totalorder %v7292_v12, 32  ;;  %vm1280_vm5 = vcmp.ge.s32.totalorder %v7292_v12, 16  ;;  %vm1281_vm6 = vcmp.lt.s32.totalorder %v7292_v12, 24  ;;  %s8314_s23 = smov 24  }
  0x7c   : > { %6290 = vmatprep.subr.mxu0 %v7000_v1  ;;  %v7279_v5 = vld [vmem:[%s1184_s28] sm:$0xff]  ;;  %s8318_s28 = smov 8   ;;  %vm7300_vm4 = vmand %vm1311_vm2, %vm1312_vm3  ;;  %s8320_s5 = smov 16   ;;  %vm1219_vm8 = vcmp.lt.s32.totalorder %v7292_v12, 8  ;;  %v7345_v23 = vsub.s32 0, %v1585_v22  ;;  %vm1249_vm10 = vcmp.ge.s32.totalorder %v7292_v12, 8 }
  0x7d   : > { %6291 = vmatpush3.msra.mxu0 %v1331_v3  ;;  %v7311_v16 = vsel %vm7300_vm4, 1.0, %v7000_v1  ;;  %vm7313_vm7 = vmand %vm1280_vm5, %vm1281_vm6  ;;  %v7332_v20 = vsel %vm1219_vm8, 1.0, %v7000_v1  ;;  %vm1250_vm11 = vcmp.lt.s32.totalorder %v7292_v12, 16  ;;  %vm2013_vm3 = vcmask 523264   ;;  %s8448_s15 = sld [smem:[#allocation36_spill]] }
  0x7e   : > { %6292 = vmatprep.subr.mxu0 %v7000_v1  ;;  %v7323_v19 = vsel %vm7313_vm7, 1.0, %v7000_v1  ;;  %s1191_s2 = scalar_lea.vmem %s8415_s13, %s7266_s11  ;;  %vm7374_vm14 = vmand %vm1249_vm10, %vm1250_vm11  ;;  %s8429_s13 = smov 24  }
  0x7f   : > { %6293 = vmatpush3.msra.mxu0 %v1330_v4  ;;  %v7347_v24 = vld [vmem:[%s1191_s2] sm:$0x1]  ;;  %v7385_v51 = vsel %vm7374_vm14, 1.0, %v7000_v1  ;;  %s8420_s2 = smov 96   ;;  %s8446_s26 = smov %s8445_s18 }
  0x80   : > { %6295 = vmatmul.mubr.msk.f32.vlgmr.msra.gmra.mxu0 %vm1341_vm1, %v7279_v5  ;;  %6308 = vmatprep.subr.mxu0 %v7000_v1  ;;  %v1587_v25 = vrot.slane %v7347_v24, %v7345_v23  ;;  %s8454_s4 = sld [smem:[#allocation41_spill]] }
  0x81   : > { %6316 = vmatprep.mubr.msk.f32.mxu0 %vm7001_vm0, %v7000_v1 }
  0x83   : > { %s8449_s7 = smov %s8448_s15 }
 0x140   : > { %v1411_v7 = vpop.f32.mrf.mxu0 }
 0x141   : > { %v7288_v8 = vadd.f32 %v5880_v6, %v1411_v7  ;;  %v7007_v7 = vmov 0  }
 0x142   : > { %v6296_v9 = vpop.f32.mrf.mxu0 }
 0x143   : > { %1416 = vrot.lane.b32.xlu0 %v7288_v8, %s8312_s1  ;;  %s8316_s1 = smov 64  }
 0x1b5   : > { %v1417_v10 = vpop.permute.xlu0 %1416 }
 0x1b6   : > { %1419 = vxpose.xlu0.b32.start.end [1/1] (short) (narrow) %v1417_v10, 32 }
 0x232   : > { %v7294_v13 = vpop.trf.xlu0 }
 0x233   : > { %1455 = vrot.lane.b32.xlu1 %v7294_v13, %s8318_s28 }
 0x236   : > { %v1436_v15 = vpop.trf.xlu0 }
 0x237   : > { %1481 = vrot.lane.b32.xlu0 %v1436_v15, %s8314_s23  ;;  %1457 = vrot.lane.b32.xlu1 %v1436_v15, %s8318_s28 }
 0x23a   : > { %v1437_v18 = vpop.trf.xlu0 }
 0x23b   : > { %1699 = vrot.lane.b32.xlu0 %v7311_v16, %s8316_s1  ;;  %1469 = vrot.lane.b32.xlu1 %v1436_v15, %s8320_s5 }
 0x23e   : > { %v1438_v21 = vpop.trf.xlu0 }
 0x23f   : > { %1697 = vrot.lane.b32.xlu0 %v7323_v19, %s8316_s1  ;;  %1459 = vrot.lane.b32.xlu1 %v1437_v18, %s8318_s28 }
 0x243   : > { %1693 = vrot.lane.b32.xlu0 %v7332_v20, %s8316_s1  ;;  %1471 = vrot.lane.b32.xlu1 %v1437_v18, %s8320_s5 }
 0x247   : > { %1483 = vrot.lane.b32.xlu1 %v1437_v18, %s8314_s23 }
 0x24b   : > { %1461 = vrot.lane.b32.xlu1 %v1438_v21, %s8318_s28 }
 0x24f   : > { %1473 = vrot.lane.b32.xlu1 %v1438_v21, %s8320_s5 }
 0x253   : > { %1485 = vrot.lane.b32.xlu1 %v1438_v21, %s8314_s23 }
 0x257   : > { %1467 = vrot.lane.b32.xlu1 %v7294_v13, %s8320_s5 }
 0x25b   : > { %1479 = vrot.lane.b32.xlu1 %v7294_v13, %s8314_s23 }
 0x25f   : > { %1588 = vrot.lane.b32.xlu1 %v1587_v25, %s8318_s28 }
 0x263   : > { %1591 = vrot.lane.b32.xlu1 %v1587_v25, %s8320_s5 }
 0x267   : > { %1594 = vrot.lane.b32.xlu1 %v1587_v25, %s8314_s23 }
 0x2a5   : > { %v1456_v26 = vpop.permute.xlu1 %1455 }
 0x2a6   : > { %v1492_v55 = vsel %vm1491_vm12, %v7294_v13, %v1456_v26 }
 0x2a9   : > { %v1458_v27 = vpop.permute.xlu1 %1457  ;;  %v1482_v28 = vpop.permute.xlu0 %1481 }
 0x2aa   : > { %v1493_v39 = vsel %vm1491_vm12, %v1436_v15, %v1458_v27 }
 0x2ad   : > { %v1470_v29 = vpop.permute.xlu1 %1469  ;;  %v7356_v30 = vpop.permute.xlu0 %1699 }
 0x2ae   : > { %v1708_v31 = vmul.f32 %v7356_v30, %v7288_v8  ;;  %v1498_v42 = vsel %vm1496_vm9, %v1493_v39, %v1470_v29 }
 0x2af   : > { %v1503_v50 = vsel %vm1501_vm13, %v1498_v42, %v1482_v28  ;;  %v1798_v42 = vld [vmem:[%s8390_s29] sm:$0xff] }
 0x2b0   : > { %1719 = vrot.lane.b32.xlu0 %v1708_v31, %s8316_s1  ;;  %v1507_v54 = vmul.f32 %v7385_v51, %v1503_v50 }
 0x2b1   : > { %v1460_v32 = vpop.permute.xlu1 %1459  ;;  %v7361_v33 = vpop.permute.xlu0 %1697 }
 0x2b2   : > { %v1707_v34 = vmul.f32 %v7361_v33, %v7288_v8  ;;  %v1494_v40 = vsel %vm1491_vm12, %v1437_v18, %v1460_v32 }
 0x2b4   : > { %1717 = vrot.lane.b32.xlu0 %v1707_v34, %s8316_s1  ;;  %v1801_v34 = vld [vmem:[%s8390_s29 + $0x18] sm:$0xff] }
 0x2b5   : > { %v1472_v35 = vpop.permute.xlu1 %1471  ;;  %v7402_v60 = vpop.permute.xlu0 %1693 }
 0x2b6   : > { %v1499_v43 = vsel %vm1496_vm9, %v1494_v40, %v1472_v35  ;;  %v1705_v25 = vmul.f32 %v7402_v60, %v7288_v8  ;;  %v1800_v35 = vld [vmem:[%s8390_s29 + $0x10] sm:$0xff] }
 0x2b9   : > { %v1484_v36 = vpop.permute.xlu1 %1483 }
 0x2ba   : > { %v1504_v47 = vsel %vm1501_vm13, %v1499_v43, %v1484_v36  ;;  %v1799_v36 = vld [vmem:[%s8390_s29 + $0x8] sm:$0xff] }
 0x2bb   : > { %v1508_v52 = vmul.f32 %v7323_v19, %v1504_v47 }
 0x2bd   : > { %v1462_v37 = vpop.permute.xlu1 %1461 }
 0x2be   : > { %v1495_v41 = vsel %vm1491_vm12, %v1438_v21, %v1462_v37 }
 0x2c1   : > { %v1474_v38 = vpop.permute.xlu1 %1473 }
 0x2c2   : > { %v1500_v44 = vsel %vm1496_vm9, %v1495_v41, %v1474_v38 }
 0x2c5   : > { %v1486_v45 = vpop.permute.xlu1 %1485 }
 0x2c6   : > { %v1505_v48 = vsel %vm1501_vm13, %v1500_v44, %v1486_v45  ;;  %v5889_v45 = vld [vmem:[%s8400_s3] ss:$0 sm:$0xff] }
 0x2c7   : > { %v1509_v49 = vmul.f32 %v7311_v16, %v1505_v48 }
 0x2c9   : > { %6298 = vmatpush3.msra.mxu1 %v1509_v49  ;;  %v1468_v53 = vpop.permute.xlu1 %1467 }
 0x2ca   : > { %6299 = vmatprep.subr.mxu1 %v7000_v1  ;;  %v1497_v56 = vsel %vm1496_vm9, %v1492_v55, %v1468_v53 }
 0x2cb   : > { %6300 = vmatpush3.msra.mxu1 %v1508_v52 }
 0x2cc   : > { %6301 = vmatprep.subr.mxu1 %v7000_v1 }
 0x2cd   : > { %v1480_v57 = vpop.permute.xlu1 %1479  ;;  %6302 = vmatpush3.msra.mxu1 %v1507_v54 }
 0x2ce   : > { %v1502_v58 = vsel %vm1501_vm13, %v1497_v56, %v1480_v57  ;;  %6303 = vmatprep.subr.mxu1 %v7000_v1 }
 0x2cf   : > { %v1506_v59 = vmul.f32 %v7332_v20, %v1502_v58  ;;  %v1916_v58 = vld [vmem:[%s8395_s19 + $0x18] sm:$0xff] }
 0x2d1   : > { %6304 = vmatpush3.msra.mxu1 %v1506_v59  ;;  %v1589_v63 = vpop.permute.xlu1 %1588  ;;  %v1915_v59 = vld [vmem:[%s8395_s19 + $0x10] sm:$0xff] }
 0x2d2   : > { %6306 = vmatmul.mubr.msk.f32.vlgmr.msra.gmra.mxu1 %vm1341_vm1, %v7288_v8  ;;  %6319 = vmatprep.subr.mxu1 %v7000_v1  ;;  %v1597_v2 = vsel %vm1491_vm12, %v7347_v24, %v1589_v63  ;;  %v7008_v24 = vmov 1.0   ;;  %v2004_v63 = vld [vmem:[%s8389_s30 + $0x30] sm:$0xff] }
 0x2d3   : > { %6327 = vmatprep.mubr.msk.f32.mxu1 %vm7001_vm0, %v7000_v1  ;;  %6309 = vmatpush3.msk.msra.mxu0 %vm7300_vm4, %v7008_v24 }
 0x2d4   : > { %6310 = vmatprep.subr.mxu0 %v7000_v1 }
 0x2d5   : > { %v1592_v0 = vpop.permute.xlu1 %1591  ;;  %6311 = vmatpush3.msk.msra.mxu0 %vm7313_vm7, %v7008_v24 }
 0x2d6   : > { %v1598_v3 = vsel %vm1496_vm9, %v1597_v2, %v1592_v0  ;;  %6312 = vmatprep.subr.mxu0 %v7000_v1  ;;  %v2003_v0 = vld [vmem:[%s8389_s30 + $0x28] sm:$0xff]  ;;  %v2002_v2 = vld [vmem:[%s8389_s30 + $0x20] sm:$0xff] }
 0x2d7   : > { %6313 = vmatpush3.msk.msra.mxu0 %vm7374_vm14, %v7008_v24 }
 0x2d8   : > { %6314 = vmatprep.subr.mxu0 %v7000_v1 }
 0x2d9   : > { %v1595_v4 = vpop.permute.xlu1 %1594  ;;  %6315 = vmatpush3.msk.msra.mxu0 %vm1219_vm8, %v7008_v24 }
 0x2da   : > { %v1599_v6 = vsel %vm1501_vm13, %v1598_v3, %v1595_v4  ;;  %6330 = vmatprep.subr.mxu0 %v7000_v1  ;;  %v2001_v3 = vld [vmem:[%s8389_s30 + $0x18] sm:$0xff] }
 0x2db   : > { %vm1600_vm15 = vcmp.eq.f32.partialorder %v1599_v6, 0.0 }
 0x2dc   : > { %v1601_v9 = vsel %vm1600_vm15, 1, %v7007_v7 }
 0x2dd   : > { %v1605_v10 = vrot.slane %v1601_v9, %v7345_v23 }
 0x2df   : > { %vm7412_vm2 = vcmp.eq.s32.totalorder %v1605_v10, 1 }
 0x322   : > { %v1720_v61 = vpop.permute.xlu0 %1719 }
 0x323   : > { %6320 = vmatpush3.msra.mxu1 %v1720_v61  ;;  %v1913_v61 = vld [vmem:[%s8395_s19] sm:$0xff] }
 0x324   : > { %6321 = vmatprep.subr.mxu1 %v7000_v1 }
 0x326   : > { %v1718_v62 = vpop.permute.xlu0 %1717 }
 0x327   : > { %6322 = vmatpush3.msra.mxu1 %v1718_v62  ;;  %v2005_v62 = vld [vmem:[%s8389_s30 + $0x38] sm:$0xff] }
 0x328   : > { %6323 = vmatprep.subr.mxu1 %v7000_v1 }
 0x392   : > { %v1578_v11 = vpop.f32.mrf.mxu1 }
 0x393   : > { %v1582_v13 = vmul.f32 0.35355338, %v1578_v11  ;;  %v5891_v11 = vld [vmem:[%s8399_s8] ss:$0 sm:$0xff] }
 0x394   : > { %v6307_v18 = vpop.f32.mrf.mxu1 }
 0x395   : > { %v1607_v21 = vsel %vm7412_vm2, -1e+09, %v1582_v13  ;;  %v5892_v18 = vld [vmem:[%s8398_s14] ss:$0 sm:$0xff] }
 0x396   : > { %v1608_v22 = vsel %vm1341_vm1, %v1607_v21, -inf }
 0x397   : > { %1609 = vmax.xlane.f32.xlu1 %v1608_v22 }
 0x3a8   : > { %1695 = vrot.lane.b32.xlu1 %v7385_v51, %s8316_s1 }
 0x3ac   : > { %1713 = vrot.lane.b32.xlu1 %v1705_v25, %s8316_s1  ;;  %v2000_v25 = vld [vmem:[%s8389_s30 + $0x10] sm:$0xff] }
 0x420   : > { %v1610_v26 = vpop.xlane.xlu1 %1609 }
 0x421   : > { %v1611_v27 = vsub.f32 %v1607_v21, %v1610_v26  ;;  %v1999_v26 = vld [vmem:[%s8389_s30 + $0x8] sm:$0xff] }
 0x423   : > { %v1612_v28 = vmul.f32 1.442695, %v1611_v27  ;;  %v1998_v27 = vld [vmem:[%s8389_s30] sm:$0xff] }
 0x424   : > { %v7440_v29 = vpop.permute.xlu1 %1695 }
 0x425   : > { %6856 = vpow2.f32 %v1612_v28  ;;  %v1706_v31 = vmul.f32 %v7440_v29, %v7288_v8  ;;  %v5893_v28 = vld [vmem:[%s8392_s24] ss:$0 sm:$0xff] }
 0x427   : > { %1715 = vrot.lane.b32.xlu0 %v1706_v31, %s8316_s1 }
 0x428   : > { %v1714_v37 = vpop.permute.xlu1 %1713 }
 0x432   : > { %v6857_v32 = vpop.eup %6856 }
 0x433   : > { %6317 = vmatmul.mubr.msk.f32.vlgmr.msra.gmra.mxu0 %vm1341_vm1, %v6857_v32 }
 0x434   : > { %6338 = vmatprep.mubr.msk.f32.mxu0 %vm7001_vm0, %v7000_v1  ;;  %6331 = vmatpush3.msra.mxu0 %v1801_v34 }
 0x435   : > { %6332 = vmatprep.subr.mxu0 %v7000_v1 }
 0x436   : > { %6333 = vmatpush3.msra.mxu0 %v1800_v35 }
 0x437   : > { %6334 = vmatprep.subr.mxu0 %v7000_v1 }
 0x438   : > { %6335 = vmatpush3.msra.mxu0 %v1799_v36  ;;  %v5895_v36 = vld [vmem:[%s8397_s6] ss:$0 sm:$0xff] }
 0x439   : > { %6336 = vmatprep.subr.mxu0 %v7000_v1 }
 0x43a   : > { %6337 = vmatpush3.msra.mxu0 %v1798_v42 }
 0x43b   : > { %6352 = vmatprep.subr.mxu0 %v7000_v1 }
 0x499   : > { %v1716_v8 = vpop.permute.xlu0 %1715 }
 0x49a   : > { %6324 = vmatpush3.msra.mxu1 %v1716_v8 }
 0x49b   : > { %6325 = vmatprep.subr.mxu1 %v7000_v1 }
 0x49c   : > { %6326 = vmatpush3.msra.mxu1 %v1714_v37 }
 0x49d   : > { %6341 = vmatprep.subr.mxu1 %v7000_v1 }
 0x4f3   : > { %v1683_v38 = vpop.f32.mrf.mxu0 }
 0x4f4   : > { %6858 = vrcp.f32 %v1683_v38 }
 0x4f5   : > { %v6318_v39 = vpop.f32.mrf.mxu0 }
 0x501   : > { %v6859_v40 = vpop.eup %6858 }
 0x502   : > { %v1688_v41 = vmul.f32 %v6859_v40, %v6857_v32 }
 0x504   : > { %6328 = vmatmul.mubr.msk.f32.vlgmr.msra.gmra.mxu1 %vm1341_vm1, %v1688_v41 }
 0x505   : > { %6349 = vmatprep.mubr.msk.f32.mxu1 %vm7001_vm0, %v7000_v1  ;;  %6342 = vmatpush3.msra.mxu1 %v1916_v58  ;;  %v5898_v58 = vld [vmem:[%s8394_s20] ss:$0 sm:$0xff] }
 0x506   : > { %6343 = vmatprep.subr.mxu1 %v7000_v1 }
 0x507   : > { %6344 = vmatpush3.msra.mxu1 %v1915_v59 }
 0x508   : > { %6345 = vmatprep.subr.mxu1 %v7000_v1 }
 0x5c4   : > { %v1794_v43 = vpop.f32.mrf.mxu1 }
 0x5c5   : > { %6339 = vmatmul.mubr.msk.f32.vlgmr.msra.gmra.mxu0 %vm1341_vm1, %v1794_v43 }
 0x5c6   : > { %v6329_v44 = vpop.f32.mrf.mxu1  ;;  %6368 = vmatprep.mubr.msk.f32.mxu0 %vm7001_vm0, %v7000_v1  ;;  %6353 = vmatpush3.msra.mxu0 %v2005_v62 }
 0x5c7   : > { %6354 = vmatprep.subr.mxu0 %v7000_v1 }
 0x5c8   : > { %6355 = vmatpush3.msra.mxu0 %v2004_v63 }
 0x5c9   : > { %6356 = vmatprep.subr.mxu0 %v7000_v1 }
 0x5ca   : > { %6357 = vmatpush3.msra.mxu0 %v2003_v0 }
 0x5cb   : > { %6358 = vmatprep.subr.mxu0 %v7000_v1 }
 0x5cc   : > { %6359 = vmatpush3.msra.mxu0 %v2002_v2 }
 0x5cd   : > { %6360 = vmatprep.subr.mxu0 %v7000_v1 }
 0x5ce   : > { %6361 = vmatpush3.msra.mxu0 %v2001_v3 }
 0x5cf   : > { %6362 = vmatprep.subr.mxu0 %v7000_v1 }
 0x5d0   : > { %6363 = vmatpush3.msra.mxu0 %v2000_v25 }
 0x5d1   : > { %6364 = vmatprep.subr.mxu0 %v7000_v1 }
 0x5d2   : > { %6365 = vmatpush3.msra.mxu0 %v1999_v26 }
 0x5d3   : > { %6366 = vmatprep.subr.mxu0 %v7000_v1 }
 0x5d4   : > { %6367 = vmatpush3.msra.mxu0 %v1998_v27 }
 0x5d5   : > { %6393 = vmatprep.subr.mxu0 %v7000_v1 }
 0x685   : > { %v1878_v47 = vpop.f32.mrf.mxu0 }
 0x686   : > { %v1879_v48 = vadd.f32 %v5889_v45, %v1878_v47  ;;  %v5902_v47 = vld [vmem:[%s8393_s21 + $0x38] sm:$0xff] }
 0x687   : > { %v6340_v49 = vpop.f32.mrf.mxu0 }
 0x688   : > { %v1882_v50 = vadd.f32 %v1879_v48, %v7279_v5  ;;  %v1914_v5 = vld [vmem:[%s8395_s19 + $0x8] sm:$0xff]  ;;  %v5901_v48 = vld [vmem:[%s8393_s21 + $0x30] sm:$0xff] }
 0x689   : > { %6346 = vmatpush3.msra.mxu1 %v1914_v5  ;;  %v5900_v49 = vld [vmem:[%s8393_s21 + $0x28] sm:$0xff] }
 0x68a   : > { %v1885_v52 = vsel %vm1341_vm1, %v1882_v50, 0.0  ;;  %6347 = vmatprep.subr.mxu1 %v7000_v1 }
 0x68b   : > { %1886 = vadd.xlane.f32.xlu0 %v1885_v52  ;;  %6348 = vmatpush3.msra.mxu1 %v1913_v61  ;;  %v5904_v61 = vld [vmem:[%s8391_s25 + $0x1] ss:$0 sm:$0xff]  ;;  %s8441_s25 = smov 32  }
 0x68c   : > { %6371 = vmatprep.subr.mxu1 %v7000_v1 }
 0x714   : > { %v1887_v53 = vpop.xlane.xlu0 %1886 }
 0x715   : > { %v1889_v54 = vmul.f32 0.03125, %v1887_v53 }
 0x717   : > { %v1890_v55 = vsub.f32 %v1882_v50, %v1889_v54  ;;  %v5899_v50 = vld [vmem:[%s8393_s21 + $0x20] sm:$0xff]  ;;  %s8330_s21 = smov 32  }
 0x719   : > { %v1891_v56 = vmul.f32 %v1890_v55, %v1890_v55 }
 0x71b   : > { %v1892_v57 = vsel %vm1341_vm1, %v1891_v56, 0.0  ;;  %v5897_v56 = vld [vmem:[%s8396_s12] ss:$0 sm:$0xff] }
 0x71c   : > { %1893 = vadd.xlane.f32.xlu1 %v1892_v57 }
 0x7a5   : > { %v1894_v4 = vpop.xlane.xlu1 %1893 }
 0x7a6   : > { %v1895_v6 = vmul.f32 0.03125, %v1894_v4 }
 0x7a8   : > { %v1896_v9 = vadd.f32 1e-05, %v1895_v6 }
 0x7aa   : > { %6860 = vrsqrt.f32 %v1896_v9 }
 0x7b7   : > { %v6861_v10 = vpop.eup %6860 }
 0x7b8   : > { %v1898_v13 = vmul.f32 %v6861_v10, %v1890_v55 }
 0x7ba   : > { %v1905_v21 = vmul.f32 %v5891_v11, %v1898_v13 }
 0x7bc   : > { %v1912_v22 = vadd.f32 %v5892_v18, %v1905_v21 }
 0x7be   : > { %6350 = vmatmul.mubr.msk.f32.vlgmr.msra.gmra.mxu1 %vm1341_vm1, %v1912_v22 }
 0x7bf   : > { %6379 = vmatprep.mubr.msk.f32.mxu1 %vm7001_vm0, %v7000_v1  ;;  %6372 = vmatpush3.msra.mxu1 %v5902_v47 }
 0x7c0   : > { %6373 = vmatprep.subr.mxu1 %v7000_v1 }
 0x7c1   : > { %6374 = vmatpush3.msra.mxu1 %v5901_v48 }
 0x7c2   : > { %6375 = vmatprep.subr.mxu1 %v7000_v1 }
 0x7c3   : > { %6376 = vmatpush3.msra.mxu1 %v5900_v49 }
 0x7c4   : > { %6377 = vmatprep.subr.mxu1 %v7000_v1 }
 0x7c5   : > { %6378 = vmatpush3.msra.mxu1 %v5899_v50 }
 0x7c6   : > { %6382 = vmatprep.subr.mxu1 %v7000_v1 }
 0x87e   : > { %v1993_v31 = vpop.f32.mrf.mxu1 }
 0x87f   : > { %v1994_v32 = vadd.f32 %v5893_v28, %v1993_v31 }
 0x880   : > { %v6351_v34 = vpop.f32.mrf.mxu1 }
 0x881   : > { %v1997_v35 = vmax.f32 %v1994_v32, 0.0 }
 0x883   : > { %6369 = vmatmul.mubr.msk.f32.vlgmr.msra.gmra.mxu0 %vm2013_vm3, %v1997_v35 }
 0x884   : > { %6394 = vmatpush3.msk.msra.mxu0 %vm7300_vm4, %v7008_v24  ;;  %6401 = vmatprep.mubr.msk.f32.mxu0 %vm7001_vm0, %v7000_v1 }
 0x885   : > { %6395 = vmatprep.subr.mxu0 %v7000_v1 }
 0x886   : > { %6396 = vmatpush3.msk.msra.mxu0 %vm7313_vm7, %v7008_v24 }
 0x887   : > { %6397 = vmatprep.subr.mxu0 %v7000_v1 }
 0x888   : > { %6398 = vmatpush3.msk.msra.mxu0 %vm7374_vm14, %v7008_v24 }
 0x889   : > { %6399 = vmatprep.subr.mxu0 %v7000_v1 }
 0x88a   : > { %6400 = vmatpush3.msk.msra.mxu0 %vm1219_vm8, %v7008_v24 }
 0x88b   : > { %6415 = vmatprep.subr.mxu0 %v7000_v1 }
 0x943   : > { %v2083_v8 = vpop.f32.mrf.mxu0 }
 0x944   : > { %v2084_v37 = vadd.f32 %v5895_v36, %v2083_v8 }
 0x945   : > { %v6370_v38 = vpop.f32.mrf.mxu0 }
 0x946   : > { %v2087_v39 = vadd.f32 %v2084_v37, %v1912_v22 }
 0x948   : > { %v2090_v40 = vsel %vm1341_vm1, %v2087_v39, 0.0 }
 0x949   : > { %2091 = vadd.xlane.f32.xlu0 %v2090_v40 }
 0x9d2   : > { %v2092_v41 = vpop.xlane.xlu0 %2091 }
 0x9d3   : > { %v2093_v42 = vmul.f32 0.03125, %v2092_v41 }
 0x9d5   : > { %v2094_v43 = vsub.f32 %v2087_v39, %v2093_v42 }
 0x9d7   : > { %v2095_v44 = vmul.f32 %v2094_v43, %v2094_v43 }
 0x9d9   : > { %v2096_v45 = vsel %vm1341_vm1, %v2095_v44, 0.0 }
 0x9da   : > { %2097 = vadd.xlane.f32.xlu0 %v2096_v45 }
 0xa63   : > { %v2098_v52 = vpop.xlane.xlu0 %2097 }
 0xa64   : > { %v2099_v53 = vmul.f32 0.03125, %v2098_v52 }
 0xa66   : > { %v2100_v54 = vadd.f32 1e-05, %v2099_v53 }
 0xa68   : > { %6862 = vrsqrt.f32 %v2100_v54 }
 0xa75   : > { %v6863_v55 = vpop.eup %6862 }
 0xa76   : > { %v2102_v57 = vmul.f32 %v6863_v55, %v2094_v43 }
 0xa78   : > { %v2109_v59 = vmul.f32 %v5897_v56, %v2102_v57 }
 0xa7a   : > { %v7530_v5 = vadd.f32 %v5898_v58, %v2109_v59 }
 0xa7c   : > { %6380 = vmatmul.mubr.msk.f32.vlgmr.msra.gmra.mxu1 %vm1341_vm1, %v7530_v5 }
 0xa7d   : > { %6390 = vmatprep.mubr.msk.f32.mxu1 %vm7001_vm0, %v7000_v1 }
 0xb3c   : > { %v2199_v62 = vpop.f32.mrf.mxu1 }
 0xb3d   : > { %v7537_v63 = vadd.f32 %v5904_v61, %v2199_v62 }
 0xb3e   : > { %v6381_v0 = vpop.f32.mrf.mxu1 }
 0xb3f   : > { %2204 = vrot.lane.b32.xlu1 %v7537_v63, %s8420_s2  ;;  %v2452_v4 = vmul.f32 %v7537_v63, %v7361_v33  ;;  %v2451_v9 = vmul.f32 %v7537_v63, %v7440_v29  ;;  %v2450_v10 = vmul.f32 %v7537_v63, %v7402_v60  ;;  %v2453_v59 = vmul.f32 %v7537_v63, %v7356_v30 }
 0xbb1   : > { %v2205_v2 = vpop.permute.xlu1 %2204 }
 0xbb2   : > { %2207 = vxpose.xlu0.b32.start.end [1/1] (short) (narrow) %v2205_v2, 32 }
 0xc2e   : > { %v2223_v3 = vpop.trf.xlu0 }
 0xc2f   : > { %2243 = vrot.lane.b32.xlu0 %v2223_v3, %s8318_s28 }
 0xc32   : > { %v2224_v6 = vpop.trf.xlu0 }
 0xc33   : > { %2245 = vrot.lane.b32.xlu1 %v2224_v6, %s8318_s28  ;;  %2462 = vrot.lane.b32.xlu0 %v2452_v4, %s8316_s1 }
 0xc36   : > { %v2225_v11 = vpop.trf.xlu0 }
 0xc37   : > { %2257 = vrot.lane.b32.xlu1 %v2224_v6, %s8320_s5  ;;  %2460 = vrot.lane.b32.xlu0 %v2451_v9, %s8316_s1  ;;  %v5916_v9 = vld [vmem:[%s8390_s29 + $0x38] sm:$0xff] }
 0xc3a   : > { %v2226_v13 = vpop.trf.xlu0 }
 0xc3b   : > { %2269 = vrot.lane.b32.xlu1 %v2224_v6, %s8314_s23  ;;  %2458 = vrot.lane.b32.xlu0 %v2450_v10, %s8316_s1  ;;  %v5915_v10 = vld [vmem:[%s8390_s29 + $0x30] sm:$0xff] }
 0xc3f   : > { %2247 = vrot.lane.b32.xlu1 %v2225_v11, %s8318_s28 }
 0xc43   : > { %2259 = vrot.lane.b32.xlu1 %v2225_v11, %s8320_s5 }
 0xc47   : > { %2271 = vrot.lane.b32.xlu1 %v2225_v11, %s8314_s23 }
 0xc4b   : > { %2249 = vrot.lane.b32.xlu1 %v2226_v13, %s8318_s28  ;;  %s8423_s28 = sshll.u32 %s7266_s11, 3 }
 0xc4f   : > { %2261 = vrot.lane.b32.xlu1 %v2226_v13, %s8320_s5 }
 0xc53   : > { %2273 = vrot.lane.b32.xlu1 %v2226_v13, %s8314_s23 }
 0xc57   : > { %2255 = vrot.lane.b32.xlu1 %v2223_v3, %s8320_s5 }
 0xc5b   : > { %2267 = vrot.lane.b32.xlu1 %v2223_v3, %s8314_s23  ;;  %s8421_s23 = sld [smem:[#allocation21_spill]] }
 0xca1   : > { %v2244_v43 = vpop.permute.xlu0 %2243 }
 0xca2   : > { %v2279_v48 = vsel %vm1491_vm12, %v2223_v3, %v2244_v43  ;;  %v5924_v43 = vld [vmem:[%s8395_s19 + $0x20] sm:$0xff] }
 0xca5   : > { %v2246_v18 = vpop.permute.xlu1 %2245  ;;  %v2463_v61 = vpop.permute.xlu0 %2462 }
 0xca6   : > { %v2280_v37 = vsel %vm1491_vm12, %v2224_v6, %v2246_v18 }
 0xca9   : > { %v2258_v21 = vpop.permute.xlu1 %2257  ;;  %v2461_v3 = vpop.permute.xlu0 %2460 }
 0xcaa   : > { %v2284_v40 = vsel %vm1496_vm9, %v2280_v37, %v2258_v21 }
 0xcad   : > { %v2270_v22 = vpop.permute.xlu1 %2269 }
 0xcae   : > { %v2288_v42 = vsel %vm1501_vm13, %v2284_v40, %v2270_v22 }
 0xcaf   : > { %v2292_v47 = vmul.f32 %v7385_v51, %v2288_v42  ;;  %v5926_v42 = vld [vmem:[%s8395_s19 + $0x30] sm:$0xff] }
 0xcb1   : > { %v2248_v25 = vpop.permute.xlu1 %2247 }
 0xcb2   : > { %v2281_v32 = vsel %vm1491_vm12, %v2225_v11, %v2248_v25  ;;  %v5914_v11 = vld [vmem:[%s8390_s29 + $0x28] sm:$0xff]  ;;  %v5913_v25 = vld [vmem:[%s8390_s29 + $0x20] sm:$0xff]  ;;  %s8443_s29 = sld [smem:[#allocation35_spill]] }
 0xcb5   : > { %v2260_v26 = vpop.permute.xlu1 %2259 }
 0xcb6   : > { %v2285_v35 = vsel %vm1496_vm9, %v2281_v32, %v2260_v26 }
 0xcb9   : > { %v2272_v27 = vpop.permute.xlu1 %2271 }
 0xcba   : > { %v2289_v38 = vsel %vm1501_vm13, %v2285_v35, %v2272_v27 }
 0xcbb   : > { %v2293_v44 = vmul.f32 %v7323_v19, %v2289_v38 }
 0xcbd   : > { %v2250_v28 = vpop.permute.xlu1 %2249 }
 0xcbe   : > { %v2282_v34 = vsel %vm1491_vm12, %v2226_v13, %v2250_v28  ;;  %v5918_v28 = vld [vmem:[%s8400_s3 + $0x1] ss:$0 sm:$0xff]  ;;  %s8427_s3 = smov 64  }
 0xcc1   : > { %v2262_v31 = vpop.permute.xlu1 %2261 }
 0xcc2   : > { %v2286_v36 = vsel %vm1496_vm9, %v2282_v34, %v2262_v31 }
 0xcc5   : > { %v2274_v8 = vpop.permute.xlu1 %2273 }
 0xcc6   : > { %v2290_v39 = vsel %vm1501_vm13, %v2286_v36, %v2274_v8 }
 0xcc7   : > { %v2294_v41 = vmul.f32 %v7311_v16, %v2290_v39 }
 0xcc9   : > { %6383 = vmatpush3.msra.mxu1 %v2294_v41  ;;  %v2256_v45 = vpop.permute.xlu1 %2255  ;;  %v5927_v41 = vld [vmem:[%s8395_s19 + $0x38] sm:$0xff] }
 0xcca   : > { %6384 = vmatprep.subr.mxu1 %v7000_v1  ;;  %v2283_v49 = vsel %vm1496_vm9, %v2279_v48, %v2256_v45  ;;  %v5937_v45 = vld [vmem:[%s8389_s30 + $0x70] sm:$0xff]  ;;  %v5935_v48 = vld [vmem:[%s8389_s30 + $0x60] sm:$0xff] }
 0xccb   : > { %6385 = vmatpush3.msra.mxu1 %v2293_v44  ;;  %v5938_v44 = vld [vmem:[%s8389_s30 + $0x78] sm:$0xff] }
 0xccc   : > { %6386 = vmatprep.subr.mxu1 %v7000_v1 }
 0xccd   : > { %6387 = vmatpush3.msra.mxu1 %v2292_v47  ;;  %v2268_v50 = vpop.permute.xlu1 %2267  ;;  %v5936_v47 = vld [vmem:[%s8389_s30 + $0x68] sm:$0xff] }
 0xcce   : > { %v2287_v52 = vsel %vm1501_vm13, %v2283_v49, %v2268_v50  ;;  %6388 = vmatprep.subr.mxu1 %v7000_v1  ;;  %v5934_v49 = vld [vmem:[%s8389_s30 + $0x58] sm:$0xff] }
 0xccf   : > { %v2291_v53 = vmul.f32 %v7332_v20, %v2287_v52 }
 0xcd1   : > { %6389 = vmatpush3.msra.mxu1 %v2291_v53 }
 0xcd2   : > { %6391 = vmatmul.mubr.msk.f32.vlgmr.msra.gmra.mxu1 %vm1341_vm1, %v7537_v63  ;;  %6404 = vmatprep.subr.mxu1 %v7000_v1  ;;  %v2459_v63 = vpop.permute.xlu0 %2458 }
 0xcd3   : > { %6412 = vmatprep.mubr.msk.f32.mxu1 %vm7001_vm0, %v7000_v1 }
 0xd92   : > { %v2363_v54 = vpop.f32.mrf.mxu1 }
 0xd93   : > { %v2367_v55 = vmul.f32 0.35355338, %v2363_v54 }
 0xd94   : > { %v6392_v56 = vpop.f32.mrf.mxu1 }
 0xd95   : > { %v2368_v57 = vsel %vm7412_vm2, -1e+09, %v2367_v55  ;;  %v5922_v55 = vld [vmem:[%s8399_s8 + $0x1] ss:$0 sm:$0xff]  ;;  %s8428_s8 = sld [smem:[#allocation8_spill]] }
 0xd96   : > { %v2369_v58 = vsel %vm1341_vm1, %v2368_v57, -inf }
 0xd97   : > { %2370 = vmax.xlane.f32.xlu1 %v2369_v58 }
 0xda8   : > { %2464 = vrot.lane.b32.xlu1 %v2453_v59, %s8316_s1  ;;  %s8422_s1 = sld [smem:[#allocation6_spill]] }
 0xdae   : > { %s1188_s5 = scalar_lea.vmem %s8422_s1, %s8423_s28  ;;  %s8424_s1 = sld [smem:[#allocation22_spill]] }
 0xdaf   : > { %s8426_s28 = smov 8  }
 0xe20   : > { %v2371_v62 = vpop.xlane.xlu1 %2370 }
 0xe21   : > { %v2372_v0 = vsub.f32 %v2368_v57, %v2371_v62  ;;  %v5923_v57 = vld [vmem:[%s8398_s14 + $0x1] ss:$0 sm:$0xff]  ;;  %v2872_v62 = vld [vmem:[%s8421_s23 + $0x10] sm:$0xff]  ;;  %s1194_s14 = scalar_lea.vmem %s8428_s8, %s7266_s11  ;;  %s8432_s8 = sld [smem:[#allocation23_spill]] }
 0xe22   : > { %s8434_s11 = sld [smem:[#allocation24_spill]] }
 0xe23   : > { %v2373_v2 = vmul.f32 1.442695, %v2372_v0  ;;  %v2871_v0 = vld [vmem:[%s8421_s23 + $0x8] sm:$0xff] }
 0xe24   : > { %v2465_v4 = vpop.permute.xlu1 %2464 }
 0xe25   : > { %6864 = vpow2.f32 %v2373_v2  ;;  %6405 = vmatpush3.msra.mxu1 %v2465_v4  ;;  %v2870_v2 = vld [vmem:[%s8421_s23] sm:$0xff]  ;;  %v5933_v4 = vld [vmem:[%s8389_s30 + $0x50] sm:$0xff] }
 0xe26   : > { %6406 = vmatprep.subr.mxu1 %v7000_v1 }
 0xe27   : > { %6407 = vmatpush3.msra.mxu1 %v2463_v61  ;;  %v2873_v61 = vld [vmem:[%s8421_s23 + $0x18] sm:$0xff] }
 0xe28   : > { %6408 = vmatprep.subr.mxu1 %v7000_v1  ;;  %v5999_v14 = vld [vmem:[%s8434_s11 + $0x1] ss:$0 sm:$0xff] }
 0xe29   : > { %6409 = vmatpush3.msra.mxu1 %v2461_v3  ;;  %v7652_v3 = vld [vmem:[%s1188_s5] sm:$0xff]  ;;  %s8425_s5 = smov 16  }
 0xe2a   : > { %6410 = vmatprep.subr.mxu1 %v7000_v1 }
 0xe2b   : > { %6411 = vmatpush3.msra.mxu1 %v2459_v63  ;;  %v5932_v63 = vld [vmem:[%s8389_s30 + $0x48] sm:$0xff] }
 0xe2c   : > { %6426 = vmatprep.subr.mxu1 %v7000_v1 }
 0xe32   : > { %v6865_v6 = vpop.eup %6864 }
 0xe33   : > { %6402 = vmatmul.mubr.msk.f32.vlgmr.msra.gmra.mxu0 %vm1341_vm1, %v6865_v6 }
 0xe34   : > { %6423 = vmatprep.mubr.msk.f32.mxu0 %vm7001_vm0, %v7000_v1  ;;  %6416 = vmatpush3.msra.mxu0 %v5916_v9  ;;  %v5929_v9 = vld [vmem:[%s8392_s24 + $0x1] ss:$0 sm:$0xff]  ;;  %s8440_s24 = sld [smem:[#allocation31_spill]] }
 0xe35   : > { %6417 = vmatprep.subr.mxu0 %v7000_v1 }
 0xe36   : > { %6418 = vmatpush3.msra.mxu0 %v5915_v10 }
 0xe37   : > { %6419 = vmatprep.subr.mxu0 %v7000_v1 }
 0xe38   : > { %6420 = vmatpush3.msra.mxu0 %v5914_v11 }
 0xe39   : > { %6421 = vmatprep.subr.mxu0 %v7000_v1 }
 0xe3a   : > { %6422 = vmatpush3.msra.mxu0 %v5913_v25 }
 0xe3b   : > { %6437 = vmatprep.subr.mxu0 %v7000_v1 }
 0xef3   : > { %v2444_v13 = vpop.f32.mrf.mxu0 }
 0xef4   : > { %6866 = vrcp.f32 %v2444_v13 }
 0xef5   : > { %v6403_v18 = vpop.f32.mrf.mxu0 }
 0xf01   : > { %v6867_v21 = vpop.eup %6866 }
 0xf02   : > { %v2449_v22 = vmul.f32 %v6867_v21, %v6865_v6  ;;  %v5931_v6 = vld [vmem:[%s8389_s30 + $0x40] sm:$0xff]  ;;  %s8444_s30 = sld [smem:[#allocation37_spill]] }
 0xf03   : > { %v5946_v21 = vld [vmem:[%s8424_s1] ss:$0 sm:$0xff] }
 0xf04   : > { %6413 = vmatmul.mubr.msk.f32.vlgmr.msra.gmra.mxu1 %vm1341_vm1, %v2449_v22 }
 0xf05   : > { %6434 = vmatprep.mubr.msk.f32.mxu1 %vm7001_vm0, %v7000_v1  ;;  %6427 = vmatpush3.msra.mxu1 %v5927_v41 }
 0xf06   : > { %6428 = vmatprep.subr.mxu1 %v7000_v1 }
 0xf07   : > { %6429 = vmatpush3.msra.mxu1 %v5926_v42 }
 0xf08   : > { %6430 = vmatprep.subr.mxu1 %v7000_v1 }
 0xfc4   : > { %v2539_v26 = vpop.f32.mrf.mxu1 }
 0xfc5   : > { %6424 = vmatmul.mubr.msk.f32.vlgmr.msra.gmra.mxu0 %vm1341_vm1, %v2539_v26 }
 0xfc6   : > { %v6414_v27 = vpop.f32.mrf.mxu1  ;;  %6453 = vmatprep.mubr.msk.f32.mxu0 %vm7001_vm0, %v7000_v1  ;;  %6438 = vmatpush3.msra.mxu0 %v5938_v44 }
 0xfc7   : > { %6439 = vmatprep.subr.mxu0 %v7000_v1 }
 0xfc8   : > { %6440 = vmatpush3.msra.mxu0 %v5937_v45 }
 0xfc9   : > { %6441 = vmatprep.subr.mxu0 %v7000_v1 }
 0xfca   : > { %6442 = vmatpush3.msra.mxu0 %v5936_v47 }
 0xfcb   : > { %6443 = vmatprep.subr.mxu0 %v7000_v1 }
 0xfcc   : > { %6444 = vmatpush3.msra.mxu0 %v5935_v48 }
 0xfcd   : > { %6445 = vmatprep.subr.mxu0 %v7000_v1 }
 0xfce   : > { %6446 = vmatpush3.msra.mxu0 %v5934_v49 }
 0xfcf   : > { %6447 = vmatprep.subr.mxu0 %v7000_v1 }
 0xfd0   : > { %6448 = vmatpush3.msra.mxu0 %v5933_v4 }
 0xfd1   : > { %6449 = vmatprep.subr.mxu0 %v7000_v1 }
 0xfd2   : > { %6450 = vmatpush3.msra.mxu0 %v5932_v63 }
 0xfd3   : > { %6451 = vmatprep.subr.mxu0 %v7000_v1 }
 0xfd4   : > { %6452 = vmatpush3.msra.mxu0 %v5931_v6 }
 0xfd5   : > { %6478 = vmatprep.subr.mxu0 %v7000_v1 }
0x1085   : > { %v2625_v31 = vpop.f32.mrf.mxu0 }
0x1086   : > { %v2626_v32 = vadd.f32 %v5918_v28, %v2625_v31 }
0x1087   : > { %v6425_v34 = vpop.f32.mrf.mxu0 }
0x1088   : > { %v2629_v35 = vadd.f32 %v2626_v32, %v7530_v5  ;;  %v5925_v5 = vld [vmem:[%s8395_s19 + $0x28] sm:$0xff]  ;;  %s8437_s19 = sld [smem:[#allocation25_spill]] }
0x1089   : > { %6431 = vmatpush3.msra.mxu1 %v5925_v5  ;;  %v1198_v5 = vld [vmem:[%s1194_s14] sm:$0x1]  ;;  %s8433_s14 = sld [smem:[#allocation29_spill]] }
0x108a   : > { %v2634_v36 = vsel %vm1341_vm1, %v2629_v35, 0.0  ;;  %6432 = vmatprep.subr.mxu1 %v7000_v1 }
0x108b   : > { %2635 = vadd.xlane.f32.xlu0 %v2634_v36  ;;  %6433 = vmatpush3.msra.mxu1 %v5924_v43  ;;  %v3123_v43 = vrot.slane %v1198_v5, %v7345_v23 }
0x108c   : > { %6456 = vmatprep.subr.mxu1 %v7000_v1 }
0x1114   : > { %v2636_v8 = vpop.xlane.xlu0 %2635 }
0x1115   : > { %v2637_v37 = vmul.f32 0.03125, %v2636_v8 }
0x1117   : > { %v2638_v38 = vsub.f32 %v2629_v35, %v2637_v37 }
0x1119   : > { %v2639_v39 = vmul.f32 %v2638_v38, %v2638_v38 }
0x111b   : > { %v2640_v40 = vsel %vm1341_vm1, %v2639_v39, 0.0  ;;  %v5940_v39 = vld [vmem:[%s8397_s6 + $0x1] ss:$0 sm:$0xff]  ;;  %s8435_s6 = sld [smem:[#allocation27_spill]] }
0x111c   : > { %2641 = vadd.xlane.f32.xlu1 %v2640_v40 }
0x11a5   : > { %v2642_v50 = vpop.xlane.xlu1 %2641 }
0x11a6   : > { %v2643_v52 = vmul.f32 0.03125, %v2642_v50 }
0x11a8   : > { %v2644_v53 = vadd.f32 1e-05, %v2643_v52 }
0x11aa   : > { %6868 = vrsqrt.f32 %v2644_v53 }
0x11b7   : > { %v6869_v54 = vpop.eup %6868 }
0x11b8   : > { %v2646_v56 = vmul.f32 %v6869_v54, %v2638_v38 }
0x11ba   : > { %v2653_v58 = vmul.f32 %v5922_v55, %v2646_v56 }
0x11bc   : > { %v7637_v59 = vadd.f32 %v5923_v57, %v2653_v58 }
0x11be   : > { %6435 = vmatmul.mubr.msk.f32.vlgmr.msra.gmra.mxu1 %vm1341_vm1, %v7637_v59 }
0x11bf   : > { %6457 = vmatpush3.msra.mxu1 %v2873_v61  ;;  %6464 = vmatprep.mubr.msk.f32.mxu1 %vm7001_vm0, %v7000_v1 }
0x11c0   : > { %6458 = vmatprep.subr.mxu1 %v7000_v1 }
0x11c1   : > { %6459 = vmatpush3.msra.mxu1 %v2872_v62 }
0x11c2   : > { %6460 = vmatprep.subr.mxu1 %v7000_v1 }
0x11c3   : > { %6461 = vmatpush3.msra.mxu1 %v2871_v0 }
0x11c4   : > { %6462 = vmatprep.subr.mxu1 %v7000_v1 }
0x11c5   : > { %6463 = vmatpush3.msra.mxu1 %v2870_v2 }
0x11c6   : > { %6465 = vmatmul.mubr.msk.f32.vlgmr.msra.gmra.mxu1 %vm1341_vm1, %v7652_v3  ;;  %6467 = vmatprep.subr.mxu1 %v7000_v1 }
0x11c7   : > { %6475 = vmatprep.mubr.msk.f32.mxu1 %vm7001_vm0, %v7000_v1 }
0x127e   : > { %v2743_v10 = vpop.f32.mrf.mxu1 }
0x127f   : > { %v2744_v11 = vadd.f32 %v5929_v9, %v2743_v10 }
0x1280   : > { %v6436_v13 = vpop.f32.mrf.mxu1 }
0x1281   : > { %v2747_v18 = vmax.f32 %v2744_v11, 0.0 }
0x1283   : > { %6454 = vmatmul.mubr.msk.f32.vlgmr.msra.gmra.mxu0 %vm2013_vm3, %v2747_v18 }
0x1284   : > { %6479 = vmatpush3.msk.msra.mxu0 %vm7300_vm4, %v7008_v24  ;;  %6486 = vmatprep.mubr.msk.f32.mxu0 %vm7001_vm0, %v7000_v1 }
0x1285   : > { %6480 = vmatprep.subr.mxu0 %v7000_v1 }
0x1286   : > { %v2950_v22 = vpop.f32.mrf.mxu1  ;;  %6481 = vmatpush3.msk.msra.mxu0 %vm7313_vm7, %v7008_v24 }
0x1287   : > { %v7678_v25 = vadd.f32 %v5946_v21, %v2950_v22  ;;  %6482 = vmatprep.subr.mxu0 %v7000_v1 }
0x1288   : > { %v6466_v26 = vpop.f32.mrf.mxu1  ;;  %6483 = vmatpush3.msk.msra.mxu0 %vm7374_vm14, %v7008_v24 }
0x1289   : > { %2955 = vrot.lane.b32.xlu0 %v7678_v25, %s8420_s2  ;;  %6484 = vmatprep.subr.mxu0 %v7000_v1  ;;  %v3228_v34 = vmul.f32 %v7678_v25, %v7356_v30  ;;  %v3227_v36 = vmul.f32 %v7678_v25, %v7361_v33  ;;  %v3225_v37 = vmul.f32 %v7678_v25, %v7402_v60 }
0x128a   : > { %6485 = vmatpush3.msk.msra.mxu0 %vm1219_vm8, %v7008_v24 }
0x128b   : > { %6500 = vmatprep.subr.mxu0 %v7000_v1 }
0x12fb   : > { %v2956_v27 = vpop.permute.xlu0 %2955 }
0x12fc   : > { %2958 = vxpose.xlu1.b32.start.end [1/1] (short) (narrow) %v2956_v27, 32 }
0x1343   : > { %v2834_v28 = vpop.f32.mrf.mxu0 }
0x1344   : > { %v2835_v40 = vadd.f32 %v5940_v39, %v2834_v28 }
0x1345   : > { %v6455_v31 = vpop.f32.mrf.mxu0 }
0x1346   : > { %v7714_v41 = vadd.f32 %v2835_v40, %v7637_v59 }
0x1348   : > { %v2843_v42 = vsel %vm1341_vm1, %v7714_v41, 0.0 }
0x1378   : > { %v2974_v32 = vpop.trf.xlu1 }
0x1379   : > { %3006 = vrot.lane.b32.xlu1 %v2974_v32, %s8425_s5  ;;  %2994 = vrot.lane.b32.xlu0 %v2974_v32, %s8426_s28 }
0x137c   : > { %v2975_v35 = vpop.trf.xlu1 }
0x137d   : > { %2996 = vrot.lane.b32.xlu0 %v2975_v35, %s8426_s28  ;;  %3239 = vrot.lane.b32.xlu1 %v3228_v34, %s8427_s3 }
0x1380   : > { %v2976_v8 = vpop.trf.xlu1 }
0x1381   : > { %3008 = vrot.lane.b32.xlu0 %v2975_v35, %s8425_s5  ;;  %3237 = vrot.lane.b32.xlu1 %v3227_v36, %s8427_s3 }
0x1384   : > { %v2977_v38 = vpop.trf.xlu1 }
0x1385   : > { %2998 = vrot.lane.b32.xlu0 %v2976_v8, %s8426_s28  ;;  %3233 = vrot.lane.b32.xlu1 %v3225_v37, %s8427_s3 }
0x1389   : > { %3010 = vrot.lane.b32.xlu0 %v2976_v8, %s8425_s5 }
0x138d   : > { %3022 = vrot.lane.b32.xlu0 %v2976_v8, %s8429_s13 }
0x1391   : > { %3000 = vrot.lane.b32.xlu0 %v2977_v38, %s8426_s28 }
0x1395   : > { %3012 = vrot.lane.b32.xlu0 %v2977_v38, %s8425_s5 }
0x1399   : > { %3024 = vrot.lane.b32.xlu0 %v2977_v38, %s8429_s13 }
0x139d   : > { %3020 = vrot.lane.b32.xlu0 %v2975_v35, %s8429_s13 }
0x13a1   : > { %3018 = vrot.lane.b32.xlu0 %v2974_v32, %s8429_s13 }
0x13a5   : > { %3124 = vrot.lane.b32.xlu0 %v3123_v43, %s8426_s28 }
0x13a9   : > { %2844 = vadd.xlane.f32.xlu1 %v2843_v42  ;;  %3127 = vrot.lane.b32.xlu0 %v3123_v43, %s8425_s5 }
0x13ad   : > { %3130 = vrot.lane.b32.xlu0 %v3123_v43, %s8429_s13 }
0x13eb   : > { %v2995_v44 = vpop.permute.xlu0 %2994  ;;  %v3007_v0 = vpop.permute.xlu1 %3006 }
0x13ec   : > { %v3030_v9 = vsel %vm1491_vm12, %v2974_v32, %v2995_v44  ;;  %v3226_v44 = vmul.f32 %v7678_v25, %v7440_v29 }
0x13ed   : > { %v3034_v13 = vsel %vm1496_vm9, %v3030_v9, %v3007_v0  ;;  %v3519_v9 = vld [vmem:[%s8433_s14 + $0x18] sm:$0xff] }
0x13ef   : > { %v2997_v45 = vpop.permute.xlu0 %2996  ;;  %v3240_v21 = vpop.permute.xlu1 %3239 }
0x13f0   : > { %v3031_v2 = vsel %vm1491_vm12, %v2975_v35, %v2997_v45 }
0x13f3   : > { %v3009_v47 = vpop.permute.xlu0 %3008  ;;  %v3238_v27 = vpop.permute.xlu1 %3237 }
0x13f4   : > { %v3035_v4 = vsel %vm1496_vm9, %v3031_v2, %v3009_v47 }
0x13f7   : > { %v2999_v48 = vpop.permute.xlu0 %2998 }
0x13f8   : > { %v3032_v54 = vsel %vm1491_vm12, %v2976_v8, %v2999_v48 }
0x13fb   : > { %v3011_v49 = vpop.permute.xlu0 %3010 }
0x13fc   : > { %v3036_v56 = vsel %vm1496_vm9, %v3032_v54, %v3011_v49 }
0x13ff   : > { %v3023_v50 = vpop.permute.xlu0 %3022 }
0x1400   : > { %v3040_v59 = vsel %vm1501_vm13, %v3036_v56, %v3023_v50  ;;  %v3319_v56 = vld [vmem:[%s8432_s8 + $0x8] sm:$0xff] }
0x1401   : > { %v3044_v63 = vmul.f32 %v7323_v19, %v3040_v59 }
0x1403   : > { %v3001_v52 = vpop.permute.xlu0 %3000 }
0x1404   : > { %v3033_v55 = vsel %vm1491_vm12, %v2977_v38, %v3001_v52 }
0x1407   : > { %v3013_v53 = vpop.permute.xlu0 %3012 }
0x1408   : > { %v3037_v57 = vsel %vm1496_vm9, %v3033_v55, %v3013_v53  ;;  %v3320_v55 = vld [vmem:[%s8432_s8 + $0x10] sm:$0xff] }
0x140b   : > { %v3025_v58 = vpop.permute.xlu0 %3024 }
0x140c   : > { %v3041_v61 = vsel %vm1501_vm13, %v3037_v57, %v3025_v58  ;;  %v3318_v57 = vld [vmem:[%s8432_s8] sm:$0xff] }
0x140d   : > { %v3045_v62 = vmul.f32 %v7311_v16, %v3041_v61 }
0x140f   : > { %6468 = vmatpush3.msra.mxu1 %v3045_v62  ;;  %v3021_v6 = vpop.permute.xlu0 %3020 }
0x1410   : > { %v3039_v10 = vsel %vm1501_vm13, %v3035_v4, %v3021_v6  ;;  %6469 = vmatprep.subr.mxu1 %v7000_v1 }
0x1411   : > { %v3043_v11 = vmul.f32 %v7385_v51, %v3039_v10  ;;  %6470 = vmatpush3.msra.mxu1 %v3044_v63 }
0x1412   : > { %6471 = vmatprep.subr.mxu1 %v7000_v1 }
0x1413   : > { %6472 = vmatpush3.msra.mxu1 %v3043_v11  ;;  %v3019_v18 = vpop.permute.xlu0 %3018  ;;  %v5944_v11 = vld [vmem:[%s8396_s12 + $0x1] ss:$0 sm:$0xff]  ;;  %s8436_s12 = sld [smem:[#allocation30_spill]] }
0x1414   : > { %v3038_v22 = vsel %vm1501_vm13, %v3034_v13, %v3019_v18  ;;  %6473 = vmatprep.subr.mxu1 %v7000_v1  ;;  %v3518_v13 = vld [vmem:[%s8433_s14 + $0x10] sm:$0xff] }
0x1415   : > { %v3042_v26 = vmul.f32 %v7332_v20, %v3038_v22 }
0x1417   : > { %6474 = vmatpush3.msra.mxu1 %v3042_v26  ;;  %v3125_v28 = vpop.permute.xlu0 %3124  ;;  %v5945_v26 = vld [vmem:[%s8394_s20 + $0x1] ss:$0 sm:$0xff]  ;;  %s8438_s20 = sld [smem:[#allocation26_spill]] }
0x1418   : > { %6476 = vmatmul.mubr.msk.f32.vlgmr.msra.gmra.mxu1 %vm1341_vm1, %v7678_v25  ;;  %6489 = vmatprep.subr.mxu1 %v7000_v1  ;;  %v3133_v32 = vsel %vm1491_vm12, %v1198_v5, %v3125_v28 }
0x1419   : > { %6490 = vmatpush3.msra.mxu1 %v3240_v21  ;;  %6497 = vmatprep.mubr.msk.f32.mxu1 %vm7001_vm0, %v7000_v1  ;;  %v3517_v21 = vld [vmem:[%s8433_s14 + $0x8] sm:$0xff] }
0x141a   : > { %6491 = vmatprep.subr.mxu1 %v7000_v1 }
0x141b   : > { %6492 = vmatpush3.msra.mxu1 %v3238_v27  ;;  %v3128_v31 = vpop.permute.xlu0 %3127  ;;  %v3516_v27 = vld [vmem:[%s8433_s14] sm:$0xff] }
0x141c   : > { %6493 = vmatprep.subr.mxu1 %v7000_v1  ;;  %v3134_v34 = vsel %vm1496_vm9, %v3133_v32, %v3128_v31  ;;  %v5955_v31 = vld [vmem:[%s8434_s11] ss:$0 sm:$0xff] }
0x141f   : > { %v3131_v35 = vpop.permute.xlu0 %3130 }
0x1420   : > { %v3135_v36 = vsel %vm1501_vm13, %v3134_v34, %v3131_v35 }
0x1421   : > { %vm3136_vm5 = vcmp.eq.f32.partialorder %v3135_v36, 0.0 }
0x1422   : > { %v3137_v8 = vsel %vm3136_vm5, 1, %v7007_v7  ;;  %v3234_v7 = vpop.permute.xlu1 %3233 }
0x1423   : > { %v3141_v37 = vrot.slane %v3137_v8, %v7345_v23 }
0x1425   : > { %vm7755_vm6 = vcmp.eq.s32.totalorder %v3141_v37, 1 }
0x1432   : > { %v2845_v23 = vpop.xlane.xlu1 %2844 }
0x1433   : > { %v2846_v45 = vmul.f32 0.03125, %v2845_v23  ;;  %v3434_v23 = vld [vmem:[%s8435_s6 + $0x10] sm:$0xff] }
0x1435   : > { %v2847_v47 = vsub.f32 %v7714_v41, %v2846_v45  ;;  %v3321_v41 = vld [vmem:[%s8432_s8 + $0x18] sm:$0xff]  ;;  %v3432_v45 = vld [vmem:[%s8435_s6] sm:$0xff] }
0x1437   : > { %v2848_v48 = vmul.f32 %v2847_v47, %v2847_v47 }
0x1439   : > { %v2849_v49 = vsel %vm1341_vm1, %v2848_v48, 0.0 }
0x14d8   : > { %v3114_v38 = vpop.f32.mrf.mxu1 }
0x14d9   : > { %v3118_v39 = vmul.f32 0.35355338, %v3114_v38 }
0x14da   : > { %v6477_v40 = vpop.f32.mrf.mxu1 }
0x14db   : > { %v3143_v5 = vsel %vm7755_vm6, -1e+09, %v3118_v39 }
0x14dc   : > { %v3144_v43 = vsel %vm1341_vm1, %v3143_v5, -inf }
0x14dd   : > { %3145 = vmax.xlane.f32.xlu0 %v3144_v43 }
0x14f3   : > { %3235 = vrot.lane.b32.xlu0 %v3226_v44, %s8427_s3 }
0x1512   : > { %2850 = vadd.xlane.f32.xlu0 %v2849_v49 }
0x1566   : > { %v3146_v50 = vpop.xlane.xlu0 %3145 }
0x1567   : > { %v3147_v52 = vsub.f32 %v3143_v5, %v3146_v50 }
0x1569   : > { %v3148_v53 = vmul.f32 1.442695, %v3147_v52 }
0x156a   : > { %v3236_v54 = vpop.permute.xlu0 %3235 }
0x156b   : > { %6870 = vpow2.f32 %v3148_v53  ;;  %6494 = vmatpush3.msra.mxu1 %v3236_v54  ;;  %v5957_v54 = vld [vmem:[%s8437_s19] ss:$0 sm:$0xff] }
0x156c   : > { %6495 = vmatprep.subr.mxu1 %v7000_v1 }
0x156d   : > { %6496 = vmatpush3.msra.mxu1 %v3234_v7  ;;  %v3435_v7 = vld [vmem:[%s8435_s6 + $0x18] sm:$0xff] }
0x156e   : > { %6511 = vmatprep.subr.mxu1 %v7000_v1 }
0x1578   : > { %v6871_v25 = vpop.eup %6870 }
0x1579   : > { %6487 = vmatmul.mubr.msk.f32.vlgmr.msra.gmra.mxu0 %vm1341_vm1, %v6871_v25 }
0x157a   : > { %6508 = vmatprep.mubr.msk.f32.mxu0 %vm7001_vm0, %v7000_v1  ;;  %6501 = vmatpush3.msra.mxu0 %v3321_v41  ;;  %v5958_v41 = vld [vmem:[%s8438_s20] ss:$0 sm:$0xff] }
0x157b   : > { %6502 = vmatprep.subr.mxu0 %v7000_v1 }
0x157c   : > { %6503 = vmatpush3.msra.mxu0 %v3320_v55 }
0x157d   : > { %6504 = vmatprep.subr.mxu0 %v7000_v1 }
0x157e   : > { %6505 = vmatpush3.msra.mxu0 %v3319_v56 }
0x157f   : > { %6506 = vmatprep.subr.mxu0 %v7000_v1 }
0x1580   : > { %6507 = vmatpush3.msra.mxu0 %v3318_v57 }
0x1581   : > { %6522 = vmatprep.subr.mxu0 %v7000_v1 }
0x159b   : > { %v2851_v0 = vpop.xlane.xlu0 %2850 }
0x159c   : > { %v2852_v2 = vmul.f32 0.03125, %v2851_v0 }
0x159e   : > { %v2853_v4 = vadd.f32 1e-05, %v2852_v2 }
0x1639   : > { %v3219_v58 = vpop.f32.mrf.mxu0 }
0x163a   : > { %6872 = vrcp.f32 %v3219_v58 }
0x163b   : > { %v6488_v59 = vpop.f32.mrf.mxu0  ;;  %6874 = vrsqrt.f32 %v2853_v4 }
0x1647   : > { %v6873_v61 = vpop.eup %6872 }
0x1648   : > { %v3224_v62 = vmul.f32 %v6873_v61, %v6871_v25  ;;  %v6875_v63 = vpop.eup %6874 }
0x1649   : > { %v2855_v6 = vmul.f32 %v6875_v63, %v2847_v47  ;;  %v5961_v47 = vld [vmem:[%s8436_s12] ss:$0 sm:$0xff] }
0x164a   : > { %6498 = vmatmul.mubr.msk.f32.vlgmr.msra.gmra.mxu1 %vm1341_vm1, %v3224_v62 }
0x164b   : > { %6519 = vmatprep.mubr.msk.f32.mxu1 %vm7001_vm0, %v7000_v1  ;;  %v2862_v22 = vmul.f32 %v5944_v11, %v2855_v6  ;;  %6512 = vmatpush3.msra.mxu1 %v3435_v7 }
0x164c   : > { %6513 = vmatprep.subr.mxu1 %v7000_v1 }
0x164d   : > { %v7795_v28 = vadd.f32 %v5945_v26, %v2862_v22  ;;  %6514 = vmatpush3.msra.mxu1 %v3434_v23 }
0x164e   : > { %6515 = vmatprep.subr.mxu1 %v7000_v1 }
0x170a   : > { %v3314_v10 = vpop.f32.mrf.mxu1 }
0x170b   : > { %6509 = vmatmul.mubr.msk.f32.vlgmr.msra.gmra.mxu0 %vm1341_vm1, %v3314_v10 }
0x170c   : > { %6523 = vmatpush3.msra.mxu0 %v3519_v9  ;;  %v6499_v18 = vpop.f32.mrf.mxu1  ;;  %6530 = vmatprep.mubr.msk.f32.mxu0 %vm7001_vm0, %v7000_v1 }
0x170d   : > { %6524 = vmatprep.subr.mxu0 %v7000_v1 }
0x170e   : > { %6525 = vmatpush3.msra.mxu0 %v3518_v13 }
0x170f   : > { %6526 = vmatprep.subr.mxu0 %v7000_v1 }
0x1710   : > { %6527 = vmatpush3.msra.mxu0 %v3517_v21 }
0x1711   : > { %6528 = vmatprep.subr.mxu0 %v7000_v1 }
0x1712   : > { %6529 = vmatpush3.msra.mxu0 %v3516_v27 }
0x1713   : > { %6531 = vmatmul.mubr.msk.f32.vlgmr.msra.gmra.mxu0 %vm1341_vm1, %v7795_v28  ;;  %6544 = vmatprep.subr.mxu0 %v7000_v1 }
0x1714   : > { %6545 = vmatpush3.msk.msra.mxu0 %vm7300_vm4, %v7008_v24  ;;  %6552 = vmatprep.mubr.msk.f32.mxu0 %vm7001_vm0, %v7000_v1 }
0x1715   : > { %6546 = vmatprep.subr.mxu0 %v7000_v1 }
0x1716   : > { %6547 = vmatpush3.msk.msra.mxu0 %vm7313_vm7, %v7008_v24 }
0x1717   : > { %6548 = vmatprep.subr.mxu0 %v7000_v1 }
0x1718   : > { %6549 = vmatpush3.msk.msra.mxu0 %vm7374_vm14, %v7008_v24 }
0x1719   : > { %6550 = vmatprep.subr.mxu0 %v7000_v1 }
0x171a   : > { %6551 = vmatpush3.msk.msra.mxu0 %vm1219_vm8, %v7008_v24 }
0x171b   : > { %6566 = vmatprep.subr.mxu0 %v7000_v1 }
0x17cb   : > { %v3398_v32 = vpop.f32.mrf.mxu0 }
0x17cc   : > { %v3399_v34 = vadd.f32 %v5955_v31, %v3398_v32 }
0x17cd   : > { %v6510_v35 = vpop.f32.mrf.mxu0 }
0x17ce   : > { %v3402_v36 = vadd.f32 %v3399_v34, %v7652_v3  ;;  %v3433_v3 = vld [vmem:[%s8435_s6 + $0x8] sm:$0xff] }
0x17cf   : > { %6516 = vmatpush3.msra.mxu1 %v3433_v3 }
0x17d0   : > { %v3405_v8 = vsel %vm1341_vm1, %v3402_v36, 0.0  ;;  %6517 = vmatprep.subr.mxu1 %v7000_v1 }
0x17d1   : > { %3406 = vadd.xlane.f32.xlu1 %v3405_v8  ;;  %6518 = vmatpush3.msra.mxu1 %v3432_v45 }
0x17d2   : > { %6533 = vmatprep.subr.mxu1 %v7000_v1 }
0x17d3   : > { %v3596_v37 = vpop.f32.mrf.mxu0 }
0x17d4   : > { %v7831_v48 = vadd.f32 %v5961_v47, %v3596_v37 }
0x17d5   : > { %v6532_v38 = vpop.f32.mrf.mxu0 }
0x185a   : > { %v3407_v39 = vpop.xlane.xlu1 %3406 }
0x185b   : > { %v3408_v40 = vmul.f32 0.03125, %v3407_v39 }
0x185d   : > { %v3409_v5 = vsub.f32 %v3402_v36, %v3408_v40 }
0x185f   : > { %v3410_v43 = vmul.f32 %v3409_v5, %v3409_v5 }
0x1861   : > { %v3411_v44 = vsel %vm1341_vm1, %v3410_v43, 0.0 }
0x1862   : > { %3412 = vadd.xlane.f32.xlu1 %v3411_v44 }
0x1895   : > { %3600 = vxpose.xlu1.b32.start.end [1/1] (short) (narrow) %v7831_v48, 32 }
0x18eb   : > { %v3413_v49 = vpop.xlane.xlu1 %3412 }
0x18ec   : > { %v3414_v50 = vmul.f32 0.03125, %v3413_v49 }
0x18ee   : > { %v3415_v52 = vadd.f32 1e-05, %v3414_v50 }
0x18f0   : > { %6876 = vrsqrt.f32 %v3415_v52 }
0x18fd   : > { %v6877_v53 = vpop.eup %6876 }
0x18fe   : > { %v3417_v25 = vmul.f32 %v6877_v53, %v3409_v5 }
0x1900   : > { %v3424_v55 = vmul.f32 %v5957_v54, %v3417_v25 }
0x1902   : > { %v7836_v56 = vadd.f32 %v5958_v41, %v3424_v55 }
0x1904   : > { %6520 = vmatmul.mubr.msk.f32.vlgmr.msra.gmra.mxu1 %vm1341_vm1, %v7836_v56 }
0x1905   : > { %6541 = vmatprep.mubr.msk.f32.mxu1 %vm7001_vm0, %v7000_v1 }
0x1911   : > { %v3616_v57 = vpop.trf.xlu1 }
0x1912   : > { %3636 = vrot.lane.b32.xlu1 %v3616_v57, %s8426_s28 }
0x1915   : > { %v3617_v58 = vpop.trf.xlu1 }
0x1916   : > { %3850 = vrot.lane.b32.xlu1 %v7311_v16, %s8330_s21 }
0x1919   : > { %v3618_v59 = vpop.trf.xlu1 }
0x191a   : > { %3848 = vrot.lane.b32.xlu1 %v7323_v19, %s8330_s21 }
0x191d   : > { %v3619_v61 = vpop.trf.xlu1 }
0x191e   : > { %3844 = vrot.lane.b32.xlu1 %v7332_v20, %s8330_s21  ;;  %3642 = vrot.lane.b32.xlu0 %v3619_v61, %s8426_s28  ;;  %s8439_s21 = sld [smem:[#allocation28_spill]] }
0x1922   : > { %3654 = vrot.lane.b32.xlu0 %v3619_v61, %s8425_s5 }
0x1924   : > { %v5959_v47 = vld [vmem:[%s8439_s21] ss:$0 sm:$0xff] }
0x1926   : > { %3640 = vrot.lane.b32.xlu0 %v3618_v59, %s8426_s28 }
0x192a   : > { %3666 = vrot.lane.b32.xlu0 %v3619_v61, %s8429_s13 }
0x192e   : > { %3652 = vrot.lane.b32.xlu0 %v3618_v59, %s8425_s5 }
0x1932   : > { %3638 = vrot.lane.b32.xlu0 %v3617_v58, %s8426_s28 }
0x1936   : > { %3664 = vrot.lane.b32.xlu0 %v3618_v59, %s8429_s13 }
0x193a   : > { %3650 = vrot.lane.b32.xlu0 %v3617_v58, %s8425_s5 }
0x193e   : > { %3662 = vrot.lane.b32.xlu0 %v3617_v58, %s8429_s13 }
0x1942   : > { %3648 = vrot.lane.b32.xlu0 %v3616_v57, %s8425_s5 }
0x1946   : > { %3660 = vrot.lane.b32.xlu0 %v3616_v57, %s8429_s13 }
0x1984   : > { %v3637_v62 = vpop.permute.xlu1 %3636 }
0x1985   : > { %v3672_v44 = vsel %vm1491_vm12, %v3616_v57, %v3637_v62 }
0x1988   : > { %v7860_v0 = vpop.permute.xlu1 %3850 }
0x1989   : > { %v3859_v2 = vmul.f32 %v7860_v0, %v7831_v48 }
0x198b   : > { %3870 = vrot.lane.b32.xlu1 %v3859_v2, %s8420_s2 }
0x198c   : > { %v7865_v4 = vpop.permute.xlu1 %3848 }
0x198d   : > { %v3858_v63 = vmul.f32 %v7865_v4, %v7831_v48 }
0x198f   : > { %3868 = vrot.lane.b32.xlu1 %v3858_v63, %s8420_s2 }
0x1990   : > { %v3643_v6 = vpop.permute.xlu0 %3642  ;;  %v7894_v53 = vpop.permute.xlu1 %3844 }
0x1991   : > { %v3675_v11 = vsel %vm1491_vm12, %v3619_v61, %v3643_v6 }
0x1994   : > { %v3655_v9 = vpop.permute.xlu0 %3654 }
0x1995   : > { %v3679_v13 = vsel %vm1496_vm9, %v3675_v11, %v3655_v9  ;;  %v3856_v9 = vmul.f32 %v7894_v53, %v7831_v48  ;;  %v3952_v11 = vld [vmem:[%s8440_s24 + $0x18] sm:$0xff] }
0x1998   : > { %v3641_v10 = vpop.permute.xlu0 %3640 }
0x1999   : > { %v3674_v31 = vsel %vm1491_vm12, %v3618_v59, %v3641_v10 }
0x199c   : > { %v3667_v18 = vpop.permute.xlu0 %3666 }
0x199d   : > { %v3683_v21 = vsel %vm1501_vm13, %v3679_v13, %v3667_v18  ;;  %v3951_v13 = vld [vmem:[%s8440_s24 + $0x10] sm:$0xff]  ;;  %v3950_v18 = vld [vmem:[%s8440_s24 + $0x8] sm:$0xff] }
0x199e   : > { %v3687_v22 = vmul.f32 %v7311_v16, %v3683_v21 }
0x19a0   : > { %6534 = vmatpush3.msra.mxu1 %v3687_v22  ;;  %v3653_v26 = vpop.permute.xlu0 %3652 }
0x19a1   : > { %6535 = vmatprep.subr.mxu1 %v7000_v1  ;;  %v3678_v32 = vsel %vm1496_vm9, %v3674_v31, %v3653_v26 }
0x19a4   : > { %v3639_v27 = vpop.permute.xlu0 %3638 }
0x19a5   : > { %v3673_v37 = vsel %vm1491_vm12, %v3617_v58, %v3639_v27 }
0x19a8   : > { %v3665_v34 = vpop.permute.xlu0 %3664 }
0x19a9   : > { %v3682_v35 = vsel %vm1501_vm13, %v3678_v32, %v3665_v34  ;;  %v3949_v32 = vld [vmem:[%s8440_s24] sm:$0xff] }
0x19aa   : > { %v3686_v36 = vmul.f32 %v7323_v19, %v3682_v35 }
0x19ac   : > { %6536 = vmatpush3.msra.mxu1 %v3686_v36  ;;  %v3651_v8 = vpop.permute.xlu0 %3650 }
0x19ad   : > { %6537 = vmatprep.subr.mxu1 %v7000_v1  ;;  %v3677_v38 = vsel %vm1496_vm9, %v3673_v37, %v3651_v8 }
0x19b0   : > { %v3663_v39 = vpop.permute.xlu0 %3662 }
0x19b1   : > { %v3681_v40 = vsel %vm1501_vm13, %v3677_v38, %v3663_v39 }
0x19b2   : > { %v3685_v5 = vmul.f32 %v7385_v51, %v3681_v40 }
0x19b4   : > { %6538 = vmatpush3.msra.mxu1 %v3685_v5  ;;  %v3649_v43 = vpop.permute.xlu0 %3648 }
0x19b5   : > { %6539 = vmatprep.subr.mxu1 %v7000_v1  ;;  %v3676_v7 = vsel %vm1496_vm9, %v3672_v44, %v3649_v43 }
0x19b8   : > { %v3661_v23 = vpop.permute.xlu0 %3660 }
0x19b9   : > { %v3680_v3 = vsel %vm1501_vm13, %v3676_v7, %v3661_v23 }
0x19ba   : > { %v3684_v45 = vmul.f32 %v7332_v20, %v3680_v3  ;;  %v4066_v3 = vld [vmem:[%s8443_s29 + $0x18] sm:$0xff] }
0x19bc   : > { %6540 = vmatpush3.msra.mxu1 %v3684_v45  ;;  %v4065_v45 = vld [vmem:[%s8443_s29 + $0x10] sm:$0xff] }
0x19bd   : > { %6555 = vmatprep.subr.mxu1 %v7000_v1 }
0x19c4   : > { %v3512_v49 = vpop.f32.mrf.mxu1 }
0x19c5   : > { %v3513_v50 = vadd.f32 %v5959_v47, %v3512_v49  ;;  %v4063_v47 = vld [vmem:[%s8443_s29] sm:$0xff]  ;;  %v4155_v49 = vld [vmem:[%s8444_s30 + $0x38] sm:$0xff] }
0x19c6   : > { %v6521_v52 = vpop.f32.mrf.mxu1 }
0x19c7   : > { %6542 = vmatmul.mubr.msk.f32.vlgmr.msra.gmra.mxu1 %vm1341_vm1, %v3513_v50  ;;  %v4154_v50 = vld [vmem:[%s8444_s30 + $0x30] sm:$0xff]  ;;  %v4153_v52 = vld [vmem:[%s8444_s30 + $0x28] sm:$0xff] }
0x19c8   : > { %6563 = vmatprep.mubr.msk.f32.mxu1 %vm7001_vm0, %v7000_v1 }
0x19fd   : > { %v3871_v54 = vpop.permute.xlu1 %3870 }
0x19fe   : > { %6556 = vmatpush3.msra.mxu1 %v3871_v54  ;;  %v4152_v54 = vld [vmem:[%s8444_s30 + $0x20] sm:$0xff] }
0x19ff   : > { %6557 = vmatprep.subr.mxu1 %v7000_v1 }
0x1a01   : > { %v3869_v25 = vpop.permute.xlu1 %3868 }
0x1a02   : > { %6558 = vmatpush3.msra.mxu1 %v3869_v25  ;;  %v4151_v25 = vld [vmem:[%s8444_s30 + $0x18] sm:$0xff] }
0x1a03   : > { %6559 = vmatprep.subr.mxu1 %v7000_v1 }
0x1a87   : > { %v3757_v41 = vpop.f32.mrf.mxu1 }
0x1a88   : > { %v3761_v55 = vmul.f32 0.35355338, %v3757_v41 }
0x1a89   : > { %v6543_v57 = vpop.f32.mrf.mxu1 }
0x1a8a   : > { %v3762_v58 = vsel %vm7412_vm2, -1e+09, %v3761_v55 }
0x1a8b   : > { %v3763_v59 = vsel %vm1341_vm1, %v3762_v58, -inf }
0x1a8c   : > { %3764 = vmax.xlane.f32.xlu0 %v3763_v59  ;;  %v5972_v59 = vld [vmem:[%s8445_s18] ss:$0 sm:$0xff]  ;;  %s8450_s18 = sld [smem:[#allocation38_spill]] }
0x1a92   : > { %s8451_s17 = smov %s8450_s18 }
0x1aa2   : > { %3846 = vrot.lane.b32.xlu0 %v7385_v51, %s8441_s25  ;;  %s8442_s25 = sld [smem:[#allocation32_spill]] }
0x1aa8   : > { %v5970_v36 = vld [vmem:[%s8442_s25] ss:$0 sm:$0xff] }
0x1b15   : > { %v3765_v61 = vpop.xlane.xlu0 %3764 }
0x1b16   : > { %v3766_v62 = vsub.f32 %v3762_v58, %v3765_v61 }
0x1b18   : > { %v3767_v2 = vmul.f32 1.442695, %v3766_v62  ;;  %v5973_v62 = vld [vmem:[%s8447_s10] ss:$0 sm:$0xff] }
0x1b19   : > { %v7903_v63 = vpop.permute.xlu0 %3846 }
0x1b1a   : > { %6878 = vpow2.f32 %v3767_v2  ;;  %v3857_v6 = vmul.f32 %v7903_v63, %v7831_v48 }
0x1b1c   : > { %3866 = vrot.lane.b32.xlu1 %v3857_v6, %s8420_s2 }
0x1b20   : > { %3864 = vrot.lane.b32.xlu1 %v3856_v9, %s8420_s2  ;;  %v4150_v9 = vld [vmem:[%s8444_s30 + $0x10] sm:$0xff] }
0x1b27   : > { %v6879_v10 = vpop.eup %6878 }
0x1b28   : > { %6553 = vmatmul.mubr.msk.f32.vlgmr.msra.gmra.mxu0 %vm1341_vm1, %v6879_v10 }
0x1b29   : > { %6574 = vmatprep.mubr.msk.f32.mxu0 %vm7001_vm0, %v7000_v1  ;;  %6567 = vmatpush3.msra.mxu0 %v3952_v11  ;;  %v4148_v11 = vld [vmem:[%s8444_s30] sm:$0xff] }
0x1b2a   : > { %6568 = vmatprep.subr.mxu0 %v7000_v1 }
0x1b2b   : > { %6569 = vmatpush3.msra.mxu0 %v3951_v13  ;;  %v5974_v13 = vld [vmem:[%s8448_s15] ss:$0 sm:$0xff]  ;;  %s8452_s15 = sld [smem:[#allocation39_spill]] }
0x1b2c   : > { %6570 = vmatprep.subr.mxu0 %v7000_v1 }
0x1b2d   : > { %6571 = vmatpush3.msra.mxu0 %v3950_v18 }
0x1b2e   : > { %6572 = vmatprep.subr.mxu0 %v7000_v1 }
0x1b2f   : > { %6573 = vmatpush3.msra.mxu0 %v3949_v32 }
0x1b30   : > { %6588 = vmatprep.subr.mxu0 %v7000_v1 }
0x1b31   : > { %s8453_s0 = smov %s8452_s15 }
0x1b8e   : > { %v3867_v48 = vpop.permute.xlu1 %3866 }
0x1b8f   : > { %6560 = vmatpush3.msra.mxu1 %v3867_v48 }
0x1b90   : > { %6561 = vmatprep.subr.mxu1 %v7000_v1 }
0x1b92   : > { %v3865_v21 = vpop.permute.xlu1 %3864 }
0x1b93   : > { %6562 = vmatpush3.msra.mxu1 %v3865_v21 }
0x1b94   : > { %6577 = vmatprep.subr.mxu1 %v7000_v1 }
0x1be8   : > { %v3838_v22 = vpop.f32.mrf.mxu0 }
0x1be9   : > { %6880 = vrcp.f32 %v3838_v22 }
0x1bea   : > { %v6554_v26 = vpop.f32.mrf.mxu0 }
0x1beb   : > { %v5976_v26 = vld [vmem:[%s8450_s18] ss:$0 sm:$0xff] }
0x1bf6   : > { %v6881_v27 = vpop.eup %6880 }
0x1bf7   : > { %v3843_v31 = vmul.f32 %v6881_v27, %v6879_v10  ;;  %v4149_v10 = vld [vmem:[%s8444_s30 + $0x8] sm:$0xff] }
0x1bf9   : > { %6564 = vmatmul.mubr.msk.f32.vlgmr.msra.gmra.mxu1 %vm1341_vm1, %v3843_v31 }
0x1bfa   : > { %6585 = vmatprep.mubr.msk.f32.mxu1 %vm7001_vm0, %v7000_v1  ;;  %6578 = vmatpush3.msra.mxu1 %v4066_v3 }
0x1bfb   : > { %6579 = vmatprep.subr.mxu1 %v7000_v1 }
0x1bfc   : > { %6580 = vmatpush3.msra.mxu1 %v4065_v45 }
0x1bfd   : > { %6581 = vmatprep.subr.mxu1 %v7000_v1 }
0x1cb9   : > { %v3945_v34 = vpop.f32.mrf.mxu1 }
0x1cba   : > { %6575 = vmatmul.mubr.msk.f32.vlgmr.msra.gmra.mxu0 %vm1341_vm1, %v3945_v34 }
0x1cbb   : > { %v6565_v35 = vpop.f32.mrf.mxu1  ;;  %6604 = vmatprep.mubr.msk.f32.mxu0 %vm7001_vm0, %v7000_v1  ;;  %6589 = vmatpush3.msra.mxu0 %v4155_v49  ;;  %v5979_v49 = vld [vmem:[%s8388_s9] ss:$0 sm:$0xff] }
0x1cbc   : > { %6590 = vmatprep.subr.mxu0 %v7000_v1 }
0x1cbd   : > { %6591 = vmatpush3.msra.mxu0 %v4154_v50 }
0x1cbe   : > { %6592 = vmatprep.subr.mxu0 %v7000_v1 }
0x1cbf   : > { %6593 = vmatpush3.msra.mxu0 %v4153_v52 }
0x1cc0   : > { %6594 = vmatprep.subr.mxu0 %v7000_v1 }
0x1cc1   : > { %6595 = vmatpush3.msra.mxu0 %v4152_v54  ;;  %v5985_v54 = vld [vmem:[%s8424_s1 + $0x1] ss:$0 sm:$0xff] }
0x1cc2   : > { %6596 = vmatprep.subr.mxu0 %v7000_v1 }
0x1cc3   : > { %6597 = vmatpush3.msra.mxu0 %v4151_v25 }
0x1cc4   : > { %6598 = vmatprep.subr.mxu0 %v7000_v1 }
0x1cc5   : > { %6599 = vmatpush3.msra.mxu0 %v4150_v9 }
0x1cc6   : > { %6600 = vmatprep.subr.mxu0 %v7000_v1 }
0x1cc7   : > { %6601 = vmatpush3.msra.mxu0 %v4149_v10 }
0x1cc8   : > { %6602 = vmatprep.subr.mxu0 %v7000_v1 }
0x1cc9   : > { %6603 = vmatpush3.msra.mxu0 %v4148_v11 }
0x1cca   : > { %6629 = vmatprep.subr.mxu0 %v7000_v1 }
0x1d7a   : > { %v4029_v8 = vpop.f32.mrf.mxu0 }
0x1d7b   : > { %v4030_v37 = vadd.f32 %v5970_v36, %v4029_v8 }
0x1d7c   : > { %v6576_v38 = vpop.f32.mrf.mxu0 }
0x1d7d   : > { %v4033_v39 = vadd.f32 %v4030_v37, %v7836_v56  ;;  %v4064_v56 = vld [vmem:[%s8443_s29 + $0x8] sm:$0xff] }
0x1d7e   : > { %6582 = vmatpush3.msra.mxu1 %v4064_v56  ;;  %v5978_v56 = vld [vmem:[%s8452_s15] ss:$0 sm:$0xff] }
0x1d7f   : > { %v4036_v40 = vsel %vm1341_vm1, %v4033_v39, 0.0  ;;  %6583 = vmatprep.subr.mxu1 %v7000_v1 }
0x1d80   : > { %4037 = vadd.xlane.f32.xlu0 %v4036_v40  ;;  %6584 = vmatpush3.msra.mxu1 %v4063_v47  ;;  %v5983_v40 = vld [vmem:[%s8421_s23 + $0x38] sm:$0xff] }
0x1d81   : > { %6607 = vmatprep.subr.mxu1 %v7000_v1 }
0x1e09   : > { %v4038_v5 = vpop.xlane.xlu0 %4037 }
0x1e0a   : > { %v4039_v43 = vmul.f32 0.03125, %v4038_v5  ;;  %v5982_v5 = vld [vmem:[%s8421_s23 + $0x30] sm:$0xff] }
0x1e0c   : > { %v4040_v44 = vsub.f32 %v4033_v39, %v4039_v43  ;;  %v5981_v43 = vld [vmem:[%s8421_s23 + $0x28] sm:$0xff] }
0x1e0e   : > { %v4041_v7 = vmul.f32 %v4040_v44, %v4040_v44 }
0x1e10   : > { %v4042_v23 = vsel %vm1341_vm1, %v4041_v7, 0.0 }
0x1e11   : > { %4043 = vadd.xlane.f32.xlu1 %v4042_v23 }
0x1e9a   : > { %v4044_v41 = vpop.xlane.xlu1 %4043 }
0x1e9b   : > { %v4045_v55 = vmul.f32 0.03125, %v4044_v41 }
0x1e9d   : > { %v4046_v57 = vadd.f32 1e-05, %v4045_v55 }
0x1e9f   : > { %6882 = vrsqrt.f32 %v4046_v57 }
0x1eac   : > { %v6883_v58 = vpop.eup %6882 }
0x1ead   : > { %v4048_v61 = vmul.f32 %v6883_v58, %v4040_v44  ;;  %v5980_v44 = vld [vmem:[%s8421_s23 + $0x20] sm:$0xff] }
0x1eaf   : > { %v4055_v2 = vmul.f32 %v5972_v59, %v4048_v61 }
0x1eb1   : > { %v4062_v6 = vadd.f32 %v5973_v62, %v4055_v2 }
0x1eb3   : > { %6586 = vmatmul.mubr.msk.f32.vlgmr.msra.gmra.mxu1 %vm1341_vm1, %v4062_v6 }
0x1eb4   : > { %6615 = vmatprep.mubr.msk.f32.mxu1 %vm7001_vm0, %v7000_v1  ;;  %6608 = vmatpush3.msra.mxu1 %v5983_v40 }
0x1eb5   : > { %6609 = vmatprep.subr.mxu1 %v7000_v1 }
0x1eb6   : > { %6610 = vmatpush3.msra.mxu1 %v5982_v5 }
0x1eb7   : > { %6611 = vmatprep.subr.mxu1 %v7000_v1 }
0x1eb8   : > { %6612 = vmatpush3.msra.mxu1 %v5981_v43 }
0x1eb9   : > { %6613 = vmatprep.subr.mxu1 %v7000_v1 }
0x1eba   : > { %6614 = vmatpush3.msra.mxu1 %v5980_v44 }
0x1ebb   : > { %6618 = vmatprep.subr.mxu1 %v7000_v1 }
0x1f73   : > { %v4143_v18 = vpop.f32.mrf.mxu1 }
0x1f74   : > { %v4144_v48 = vadd.f32 %v5974_v13, %v4143_v18 }
0x1f75   : > { %v6587_v21 = vpop.f32.mrf.mxu1 }
0x1f76   : > { %v4147_v22 = vmax.f32 %v4144_v48, 0.0 }
0x1f78   : > { %6605 = vmatmul.mubr.msk.f32.vlgmr.msra.gmra.mxu0 %vm2013_vm3, %v4147_v22 }
0x1f79   : > { %6630 = vmatpush3.msk.msra.mxu0 %vm7300_vm4, %v7008_v24  ;;  %6637 = vmatprep.mubr.msk.f32.mxu0 %vm7001_vm0, %v7000_v1 }
0x1f7a   : > { %6631 = vmatprep.subr.mxu0 %v7000_v1 }
0x1f7b   : > { %6632 = vmatpush3.msk.msra.mxu0 %vm7313_vm7, %v7008_v24 }
0x1f7c   : > { %6633 = vmatprep.subr.mxu0 %v7000_v1 }
0x1f7d   : > { %6634 = vmatpush3.msk.msra.mxu0 %vm7374_vm14, %v7008_v24 }
0x1f7e   : > { %6635 = vmatprep.subr.mxu0 %v7000_v1 }
0x1f7f   : > { %6636 = vmatpush3.msk.msra.mxu0 %vm1219_vm8, %v7008_v24 }
0x1f80   : > { %6651 = vmatprep.subr.mxu0 %v7000_v1 }
0x2038   : > { %v4232_v27 = vpop.f32.mrf.mxu0 }
0x2039   : > { %v4233_v31 = vadd.f32 %v5976_v26, %v4232_v27 }
0x203a   : > { %v6606_v32 = vpop.f32.mrf.mxu0 }
0x203b   : > { %v4236_v34 = vadd.f32 %v4233_v31, %v4062_v6 }
0x203d   : > { %v4239_v35 = vsel %vm1341_vm1, %v4236_v34, 0.0 }
0x203e   : > { %4240 = vadd.xlane.f32.xlu0 %v4239_v35 }
0x20c7   : > { %v4241_v36 = vpop.xlane.xlu0 %4240 }
0x20c8   : > { %v4242_v8 = vmul.f32 0.03125, %v4241_v36 }
0x20ca   : > { %v4243_v37 = vsub.f32 %v4236_v34, %v4242_v8 }
0x20cc   : > { %v4244_v38 = vmul.f32 %v4243_v37, %v4243_v37 }
0x20ce   : > { %v4245_v39 = vsel %vm1341_vm1, %v4244_v38, 0.0 }
0x20cf   : > { %4246 = vadd.xlane.f32.xlu0 %v4245_v39 }
0x2158   : > { %v4247_v7 = vpop.xlane.xlu0 %4246 }
0x2159   : > { %v4248_v23 = vmul.f32 0.03125, %v4247_v7 }
0x215b   : > { %v4249_v3 = vadd.f32 1e-05, %v4248_v23 }
0x215d   : > { %6884 = vrsqrt.f32 %v4249_v3 }
0x216a   : > { %v6885_v45 = vpop.eup %6884 }
0x216b   : > { %v4251_v47 = vmul.f32 %v6885_v45, %v4243_v37 }
0x216d   : > { %v4258_v50 = vmul.f32 %v5978_v56, %v4251_v47 }
0x216f   : > { %v7996_v52 = vadd.f32 %v5979_v49, %v4258_v50 }
0x2171   : > { %6616 = vmatmul.mubr.msk.f32.vlgmr.msra.gmra.mxu1 %vm1341_vm1, %v7996_v52 }
0x2172   : > { %6626 = vmatprep.mubr.msk.f32.mxu1 %vm7001_vm0, %v7000_v1 }
0x2231   : > { %v4348_v25 = vpop.f32.mrf.mxu1 }
0x2232   : > { %v8003_v41 = vadd.f32 %v5985_v54, %v4348_v25 }
0x2233   : > { %v6617_v55 = vpop.f32.mrf.mxu1 }
0x2234   : > { %4353 = vrot.lane.b32.xlu1 %v8003_v41, %s8420_s2  ;;  %v4601_v59 = vmul.f32 %v8003_v41, %v7361_v33  ;;  %v4600_v62 = vmul.f32 %v8003_v41, %v7440_v29  ;;  %v4599_v2 = vmul.f32 %v8003_v41, %v7402_v60  ;;  %v4602_v54 = vmul.f32 %v8003_v41, %v7356_v30 }
0x22a6   : > { %v4354_v57 = vpop.permute.xlu1 %4353 }
0x22a7   : > { %4356 = vxpose.xlu0.b32.start.end [1/1] (short) (narrow) %v4354_v57, 32 }
0x2323   : > { %v4372_v58 = vpop.trf.xlu0 }
0x2324   : > { %4392 = vrot.lane.b32.xlu0 %v4372_v58, %s8426_s28 }
0x2327   : > { %v4373_v61 = vpop.trf.xlu0 }
0x2328   : > { %4394 = vrot.lane.b32.xlu1 %v4373_v61, %s8426_s28  ;;  %4611 = vrot.lane.b32.xlu0 %v4601_v59, %s8427_s3 }
0x232b   : > { %v4374_v33 = vpop.trf.xlu0 }
0x232c   : > { %4406 = vrot.lane.b32.xlu1 %v4373_v61, %s8425_s5  ;;  %4609 = vrot.lane.b32.xlu0 %v4600_v62, %s8427_s3  ;;  %v5996_v62 = vld [vmem:[%s8432_s8 + $0x30] sm:$0xff] }
0x232f   : > { %v4375_v6 = vpop.trf.xlu0 }
0x2330   : > { %4418 = vrot.lane.b32.xlu1 %v4373_v61, %s8429_s13  ;;  %4607 = vrot.lane.b32.xlu0 %v4599_v2, %s8427_s3  ;;  %v5995_v2 = vld [vmem:[%s8432_s8 + $0x28] sm:$0xff] }
0x2334   : > { %4396 = vrot.lane.b32.xlu1 %v4374_v33, %s8426_s28 }
0x2338   : > { %4408 = vrot.lane.b32.xlu1 %v4374_v33, %s8425_s5 }
0x233c   : > { %4420 = vrot.lane.b32.xlu1 %v4374_v33, %s8429_s13 }
0x2340   : > { %4398 = vrot.lane.b32.xlu1 %v4375_v6, %s8426_s28 }
0x2344   : > { %4410 = vrot.lane.b32.xlu1 %v4375_v6, %s8425_s5 }
0x2348   : > { %4422 = vrot.lane.b32.xlu1 %v4375_v6, %s8429_s13 }
0x234c   : > { %4404 = vrot.lane.b32.xlu1 %v4372_v58, %s8425_s5 }
0x2350   : > { %4416 = vrot.lane.b32.xlu1 %v4372_v58, %s8429_s13 }
0x2396   : > { %v4393_v38 = vpop.permute.xlu0 %4392 }
0x2397   : > { %v4428_v43 = vsel %vm1491_vm12, %v4372_v58, %v4393_v38 }
0x239a   : > { %v4395_v60 = vpop.permute.xlu1 %4394  ;;  %v4612_v25 = vpop.permute.xlu0 %4611 }
0x239b   : > { %v4429_v32 = vsel %vm1491_vm12, %v4373_v61, %v4395_v60 }
0x239e   : > { %v4407_v29 = vpop.permute.xlu1 %4406  ;;  %v4610_v59 = vpop.permute.xlu0 %4609 }
0x239f   : > { %v4433_v36 = vsel %vm1496_vm9, %v4429_v32, %v4407_v29  ;;  %v6017_v32 = vld [vmem:[%s8436_s12 + $0x1] ss:$0 sm:$0xff] }
0x23a2   : > { %v4419_v9 = vpop.permute.xlu1 %4418  ;;  %v4608_v30 = vpop.permute.xlu0 %4607 }
0x23a3   : > { %v4437_v37 = vsel %vm1501_vm13, %v4433_v36, %v4419_v9 }
0x23a4   : > { %v4441_v5 = vmul.f32 %v7385_v51, %v4437_v37  ;;  %v6008_v37 = vld [vmem:[%s8435_s6 + $0x38] sm:$0xff] }
0x23a6   : > { %v4397_v10 = vpop.permute.xlu1 %4396 }
0x23a7   : > { %v4430_v21 = vsel %vm1491_vm12, %v4374_v33, %v4397_v10  ;;  %v5994_v33 = vld [vmem:[%s8432_s8 + $0x20] sm:$0xff]  ;;  %v6015_v10 = vld [vmem:[%s8433_s14 + $0x38] sm:$0xff] }
0x23aa   : > { %v4409_v11 = vpop.permute.xlu1 %4408 }
0x23ab   : > { %v4434_v26 = vsel %vm1496_vm9, %v4430_v21, %v4409_v11  ;;  %v6012_v21 = vld [vmem:[%s8433_s14 + $0x20] sm:$0xff] }
0x23ae   : > { %v4421_v13 = vpop.permute.xlu1 %4420 }
0x23af   : > { %v4438_v34 = vsel %vm1501_vm13, %v4434_v26, %v4421_v13  ;;  %v6014_v13 = vld [vmem:[%s8433_s14 + $0x30] sm:$0xff] }
0x23b0   : > { %v4442_v39 = vmul.f32 %v7323_v19, %v4438_v34 }
0x23b2   : > { %v4399_v18 = vpop.permute.xlu1 %4398 }
0x23b3   : > { %v4431_v22 = vsel %vm1491_vm12, %v4375_v6, %v4399_v18 }
0x23b6   : > { %v4411_v48 = vpop.permute.xlu1 %4410 }
0x23b7   : > { %v4435_v27 = vsel %vm1496_vm9, %v4431_v22, %v4411_v48  ;;  %v6013_v48 = vld [vmem:[%s8433_s14 + $0x28] sm:$0xff] }
0x23ba   : > { %v4423_v31 = vpop.permute.xlu1 %4422 }
0x23bb   : > { %v4439_v35 = vsel %vm1501_vm13, %v4435_v27, %v4423_v31 }
0x23bc   : > { %v4443_v8 = vmul.f32 %v7311_v16, %v4439_v35 }
0x23be   : > { %6619 = vmatpush3.msra.mxu1 %v4443_v8  ;;  %v4405_v40 = vpop.permute.xlu1 %4404 }
0x23bf   : > { %6620 = vmatprep.subr.mxu1 %v7000_v1  ;;  %v4432_v44 = vsel %vm1496_vm9, %v4428_v43, %v4405_v40  ;;  %v6006_v40 = vld [vmem:[%s8435_s6 + $0x28] sm:$0xff] }
0x23c0   : > { %6621 = vmatpush3.msra.mxu1 %v4442_v39  ;;  %v6007_v39 = vld [vmem:[%s8435_s6 + $0x30] sm:$0xff] }
0x23c1   : > { %6622 = vmatprep.subr.mxu1 %v7000_v1 }
0x23c2   : > { %6623 = vmatpush3.msra.mxu1 %v4441_v5  ;;  %v4417_v7 = vpop.permute.xlu1 %4416 }
0x23c3   : > { %v4436_v23 = vsel %vm1501_vm13, %v4432_v44, %v4417_v7  ;;  %6624 = vmatprep.subr.mxu1 %v7000_v1  ;;  %v6005_v44 = vld [vmem:[%s8435_s6 + $0x20] sm:$0xff] }
0x23c4   : > { %v4440_v3 = vmul.f32 %v7332_v20, %v4436_v23 }
0x23c6   : > { %6625 = vmatpush3.msra.mxu1 %v4440_v3 }
0x23c7   : > { %6627 = vmatmul.mubr.msk.f32.vlgmr.msra.gmra.mxu1 %vm1341_vm1, %v8003_v41  ;;  %6640 = vmatprep.subr.mxu1 %v7000_v1  ;;  %v5997_v41 = vld [vmem:[%s8432_s8 + $0x38] sm:$0xff]  ;;  %s7010_s8 = smov [#allocation2]  }
0x23c8   : > { %6648 = vmatprep.mubr.msk.f32.mxu1 %vm7001_vm0, %v7000_v1 }
0x2487   : > { %v4512_v45 = vpop.f32.mrf.mxu1 }
0x2488   : > { %v4516_v56 = vmul.f32 0.35355338, %v4512_v45 }
0x2489   : > { %v6628_v47 = vpop.f32.mrf.mxu1 }
0x248a   : > { %v4517_v49 = vsel %vm7755_vm6, -1e+09, %v4516_v56 }
0x248b   : > { %v4518_v50 = vsel %vm1341_vm1, %v4517_v49, -inf }
0x248c   : > { %4519 = vmax.xlane.f32.xlu1 %v4518_v50 }
0x249d   : > { %4613 = vrot.lane.b32.xlu1 %v4602_v54, %s8427_s3  ;;  %v6004_v54 = vld [vmem:[%s8438_s20 + $0x1] ss:$0 sm:$0xff]  ;;  %s8456_s3 = sld [smem:[#allocation42_spill]] }
0x2515   : > { %v4520_v55 = vpop.xlane.xlu1 %4519 }
0x2516   : > { %v4521_v57 = vsub.f32 %v4517_v49, %v4520_v55  ;;  %v6003_v49 = vld [vmem:[%s8437_s19 + $0x1] ss:$0 sm:$0xff] }
0x2518   : > { %v4522_v58 = vmul.f32 1.442695, %v4521_v57 }
0x2519   : > { %v4614_v61 = vpop.permute.xlu1 %4613 }
0x251a   : > { %6886 = vpow2.f32 %v4522_v58  ;;  %6641 = vmatpush3.msra.mxu1 %v4614_v61 }
0x251b   : > { %6642 = vmatprep.subr.mxu1 %v7000_v1 }
0x251c   : > { %6643 = vmatpush3.msra.mxu1 %v4612_v25 }
0x251d   : > { %6644 = vmatprep.subr.mxu1 %v7000_v1 }
0x251e   : > { %6645 = vmatpush3.msra.mxu1 %v4610_v59 }
0x251f   : > { %6646 = vmatprep.subr.mxu1 %v7000_v1 }
0x2520   : > { %6647 = vmatpush3.msra.mxu1 %v4608_v30 }
0x2521   : > { %6662 = vmatprep.subr.mxu1 %v7000_v1 }
0x2527   : > { %v6887_v42 = vpop.eup %6886 }
0x2528   : > { %6638 = vmatmul.mubr.msk.f32.vlgmr.msra.gmra.mxu0 %vm1341_vm1, %v6887_v42 }
0x2529   : > { %6659 = vmatprep.mubr.msk.f32.mxu0 %vm7001_vm0, %v7000_v1  ;;  %6652 = vmatpush3.msra.mxu0 %v5997_v41 }
0x252a   : > { %6653 = vmatprep.subr.mxu0 %v7000_v1 }
0x252b   : > { %6654 = vmatpush3.msra.mxu0 %v5996_v62 }
0x252c   : > { %6655 = vmatprep.subr.mxu0 %v7000_v1 }
0x252d   : > { %6656 = vmatpush3.msra.mxu0 %v5995_v2 }
0x252e   : > { %6657 = vmatprep.subr.mxu0 %v7000_v1 }
0x252f   : > { %6658 = vmatpush3.msra.mxu0 %v5994_v33 }
0x2530   : > { %6673 = vmatprep.subr.mxu0 %v7000_v1 }
0x25e8   : > { %v4593_v6 = vpop.f32.mrf.mxu0 }
0x25e9   : > { %6888 = vrcp.f32 %v4593_v6 }
0x25ea   : > { %v6639_v60 = vpop.f32.mrf.mxu0 }
0x25f6   : > { %v6889_v29 = vpop.eup %6888 }
0x25f7   : > { %v4598_v9 = vmul.f32 %v6889_v29, %v6887_v42 }
0x25f9   : > { %6649 = vmatmul.mubr.msk.f32.vlgmr.msra.gmra.mxu1 %vm1341_vm1, %v4598_v9 }
0x25fa   : > { %6670 = vmatprep.mubr.msk.f32.mxu1 %vm7001_vm0, %v7000_v1  ;;  %6663 = vmatpush3.msra.mxu1 %v6008_v37 }
0x25fb   : > { %6664 = vmatprep.subr.mxu1 %v7000_v1 }
0x25fc   : > { %6665 = vmatpush3.msra.mxu1 %v6007_v39 }
0x25fd   : > { %6666 = vmatprep.subr.mxu1 %v7000_v1 }
0x25fe   : > { %6667 = vmatpush3.msra.mxu1 %v6006_v40  ;;  %v6028_v40 = vld [vmem:[%s8440_s24 + $0x30] sm:$0xff] }
0x25ff   : > { %6668 = vmatprep.subr.mxu1 %v7000_v1 }
0x2600   : > { %6669 = vmatpush3.msra.mxu1 %v6005_v44 }
0x2601   : > { %6684 = vmatprep.subr.mxu1 %v7000_v1 }
0x26b9   : > { %v4688_v11 = vpop.f32.mrf.mxu1 }
0x26ba   : > { %6660 = vmatmul.mubr.msk.f32.vlgmr.msra.gmra.mxu0 %vm1341_vm1, %v4688_v11 }
0x26bb   : > { %6674 = vmatpush3.msra.mxu0 %v6015_v10  ;;  %v6650_v18 = vpop.f32.mrf.mxu1  ;;  %6681 = vmatprep.mubr.msk.f32.mxu0 %vm7001_vm0, %v7000_v1 }
0x26bc   : > { %6675 = vmatprep.subr.mxu0 %v7000_v1 }
0x26bd   : > { %6676 = vmatpush3.msra.mxu0 %v6014_v13 }
0x26be   : > { %6677 = vmatprep.subr.mxu0 %v7000_v1 }
0x26bf   : > { %6678 = vmatpush3.msra.mxu0 %v6013_v48 }
0x26c0   : > { %6679 = vmatprep.subr.mxu0 %v7000_v1 }
0x26c1   : > { %6680 = vmatpush3.msra.mxu0 %v6012_v21 }
0x26c2   : > { %6682 = vmatmul.mubr.msk.f32.vlgmr.msra.gmra.mxu0 %vm1341_vm1, %v7795_v28  ;;  %6695 = vmatprep.subr.mxu0 %v7000_v1 }
0x26c3   : > { %6696 = vmatpush3.msk.msra.mxu0 %vm7300_vm4, %v7008_v24  ;;  %6703 = vmatprep.mubr.msk.f32.mxu0 %vm7001_vm0, %v7000_v1 }
0x26c4   : > { %6697 = vmatprep.subr.mxu0 %v7000_v1 }
0x26c5   : > { %6698 = vmatpush3.msk.msra.mxu0 %vm7313_vm7, %v7008_v24 }
0x26c6   : > { %6699 = vmatprep.subr.mxu0 %v7000_v1 }
0x26c7   : > { %6700 = vmatpush3.msk.msra.mxu0 %vm7374_vm14, %v7008_v24 }
0x26c8   : > { %6701 = vmatprep.subr.mxu0 %v7000_v1 }
0x26c9   : > { %6702 = vmatpush3.msk.msra.mxu0 %vm1219_vm8, %v7008_v24 }
0x26ca   : > { %6717 = vmatprep.subr.mxu0 %v7000_v1 }
0x277a   : > { %v4774_v28 = vpop.f32.mrf.mxu0 }
0x277b   : > { %v4775_v22 = vadd.f32 %v5999_v14, %v4774_v28 }
0x277c   : > { %v6661_v17 = vpop.f32.mrf.mxu0 }
0x277d   : > { %v4778_v26 = vadd.f32 %v4775_v22, %v7996_v52 }
0x277f   : > { %v4783_v27 = vsel %vm1341_vm1, %v4778_v26, 0.0 }
0x2780   : > { %4784 = vadd.xlane.f32.xlu0 %v4783_v27 }
0x2782   : > { %v4975_v46 = vpop.f32.mrf.mxu0 }
0x2783   : > { %v8111_v34 = vadd.f32 %v6017_v32, %v4975_v46 }
0x2784   : > { %v6683_v31 = vpop.f32.mrf.mxu0 }
0x2785   : > { %v5226_v5 = vmul.f32 %v8111_v34, %v7860_v0  ;;  %v5224_v7 = vmul.f32 %v8111_v34, %v7903_v63  ;;  %v5223_v0 = vmul.f32 %v8111_v34, %v7894_v53 }
0x27ad   : > { %4979 = vxpose.xlu0.b32.start.end [1/1] (short) (narrow) %v8111_v34, 32 }
0x2809   : > { %v4785_v12 = vpop.xlane.xlu0 %4784 }
0x280a   : > { %v4786_v24 = vmul.f32 0.03125, %v4785_v12 }
0x280c   : > { %v4787_v35 = vsub.f32 %v4778_v26, %v4786_v24  ;;  %v6010_v26 = vld [vmem:[%s8439_s21 + $0x1] ss:$0 sm:$0xff] }
0x280e   : > { %v4788_v36 = vmul.f32 %v4787_v35, %v4787_v35 }
0x2810   : > { %v4789_v8 = vsel %vm1341_vm1, %v4788_v36, 0.0  ;;  %v5225_v36 = vmul.f32 %v8111_v34, %v7865_v4  ;;  %v6029_v34 = vld [vmem:[%s8440_s24 + $0x38] sm:$0xff] }
0x2811   : > { %4790 = vadd.xlane.f32.xlu1 %v4789_v8 }
0x2829   : > { %v8115_v52 = vpop.trf.xlu0 }
0x282d   : > { %v4996_v38 = vpop.trf.xlu0 }
0x282e   : > { %5029 = vrot.lane.b32.xlu0 %v4996_v38, %s8425_s5 }
0x2831   : > { %v4997_v43 = vpop.trf.xlu0 }
0x2832   : > { %5237 = vrot.lane.b32.xlu0 %v5226_v5, %s8420_s2  ;;  %v6027_v5 = vld [vmem:[%s8440_s24 + $0x28] sm:$0xff] }
0x2835   : > { %v4998_v23 = vpop.trf.xlu0 }
0x2836   : > { %5021 = vrot.lane.b32.xlu1 %v4998_v23, %s8426_s28  ;;  %5233 = vrot.lane.b32.xlu0 %v5224_v7, %s8420_s2 }
0x283a   : > { %5033 = vrot.lane.b32.xlu1 %v4998_v23, %s8425_s5  ;;  %5231 = vrot.lane.b32.xlu0 %v5223_v0, %s8420_s2  ;;  %v6026_v0 = vld [vmem:[%s8440_s24 + $0x20] sm:$0xff] }
0x283e   : > { %5019 = vrot.lane.b32.xlu1 %v4997_v43, %s8426_s28 }
0x2842   : > { %5045 = vrot.lane.b32.xlu1 %v4998_v23, %s8429_s13 }
0x2846   : > { %5031 = vrot.lane.b32.xlu1 %v4997_v43, %s8425_s5 }
0x284a   : > { %5017 = vrot.lane.b32.xlu1 %v4996_v38, %s8426_s28 }
0x284e   : > { %5043 = vrot.lane.b32.xlu1 %v4997_v43, %s8429_s13 }
0x2852   : > { %5015 = vrot.lane.b32.xlu1 %v8115_v52, %s8426_s28 }
0x2856   : > { %5041 = vrot.lane.b32.xlu1 %v4996_v38, %s8429_s13 }
0x285a   : > { %5027 = vrot.lane.b32.xlu1 %v8115_v52, %s8425_s5  ;;  %s1178_s5 = sand.u32 1, %s6952_s16  }
0x285b   : > { %s5873_s28 = sshll.u32 %s1178_s5, 3 }
0x285c   : > { %s1180_s15 = scalar_lea.vmem [#allocation2], %s5873_s28 }
0x285d   : > { %s5742_s1 = sshll.u32 %s1180_s15, 4  ;;  %s5743_s1 = int_to_ptr.vmem [resolvable:$true] %s5742_s1 }
0x285e   : > { %5039 = vrot.lane.b32.xlu1 %v8115_v52, %s8429_s13  ;;  %s8455_s13 = sld [smem:[#allocation45_spill]] }
0x2864   : > { %s6062_s18 = sshll.u32 %s8455_s13, 7 }
0x2865   : > { %s8260_s6 = scalar_lea.hbm %s8456_s3, %s6062_s18 }
0x289a   : > { %v4791_v53 = vpop.xlane.xlu1 %4790 }
0x289b   : > { %v4792_v63 = vmul.f32 0.03125, %v4791_v53 }
0x289d   : > { %v4793_v3 = vadd.f32 1e-05, %v4792_v63 }
0x289f   : > { %6890 = vrsqrt.f32 %v4793_v3  ;;  %v6031_v3 = vld [vmem:[%s8442_s25 + $0x1] ss:$0 sm:$0xff] }
0x28a0   : > { %v5030_v11 = vpop.permute.xlu0 %5029 }
0x28a4   : > { %v5238_v31 = vpop.permute.xlu0 %5237 }
0x28a8   : > { %v5022_v45 = vpop.permute.xlu1 %5021  ;;  %v5234_v37 = vpop.permute.xlu0 %5233 }
0x28a9   : > { %v5054_v25 = vsel %vm1491_vm12, %v4998_v23, %v5022_v45 }
0x28ac   : > { %v6891_v56 = vpop.eup %6890  ;;  %v5034_v47 = vpop.permute.xlu1 %5033 }
0x28ad   : > { %v4795_v50 = vmul.f32 %v6891_v56, %v4787_v35  ;;  %v5058_v59 = vsel %vm1496_vm9, %v5054_v25, %v5034_v47  ;;  %v5232_v15 = vpop.permute.xlu0 %5231 }
0x28af   : > { %v4802_v55 = vmul.f32 %v6003_v49, %v4795_v50 }
0x28b0   : > { %v5020_v57 = vpop.permute.xlu1 %5019 }
0x28b1   : > { %v8152_v58 = vadd.f32 %v6004_v54, %v4802_v55  ;;  %v5053_v62 = vsel %vm1491_vm12, %v4997_v43, %v5020_v57 }
0x28b3   : > { %6671 = vmatmul.mubr.msk.f32.vlgmr.msra.gmra.mxu1 %vm1341_vm1, %v8152_v58 }
0x28b4   : > { %v5046_v61 = vpop.permute.xlu1 %5045  ;;  %6692 = vmatprep.mubr.msk.f32.mxu1 %vm7001_vm0, %v7000_v1 }
0x28b5   : > { %v5062_v30 = vsel %vm1501_vm13, %v5058_v59, %v5046_v61  ;;  %v6040_v61 = vld [vmem:[%s8443_s29 + $0x38] sm:$0xff] }
0x28b6   : > { %v5066_v42 = vmul.f32 %v7311_v16, %v5062_v30  ;;  %v6039_v30 = vld [vmem:[%s8443_s29 + $0x30] sm:$0xff] }
0x28b8   : > { %v5032_v41 = vpop.permute.xlu1 %5031  ;;  %6685 = vmatpush3.msra.mxu1 %v5066_v42  ;;  %v6037_v42 = vld [vmem:[%s8443_s29 + $0x20] sm:$0xff] }
0x28b9   : > { %6686 = vmatprep.subr.mxu1 %v7000_v1  ;;  %v5057_v33 = vsel %vm1496_vm9, %v5053_v62, %v5032_v41  ;;  %v6051_v41 = vld [vmem:[%s8444_s30 + $0x78] sm:$0xff]  ;;  %v6050_v62 = vld [vmem:[%s8444_s30 + $0x70] sm:$0xff] }
0x28bc   : > { %v5018_v2 = vpop.permute.xlu1 %5017 }
0x28bd   : > { %v5052_v9 = vsel %vm1491_vm12, %v4996_v38, %v5018_v2  ;;  %v6049_v2 = vld [vmem:[%s8444_s30 + $0x68] sm:$0xff] }
0x28be   : > { %v5056_v16 = vsel %vm1496_vm9, %v5052_v9, %v5030_v11  ;;  %v6035_v11 = vld [vmem:[%s8446_s26 + $0x1] ss:$0 sm:$0xff] }
0x28c0   : > { %v5044_v6 = vpop.permute.xlu1 %5043 }
0x28c1   : > { %v5061_v60 = vsel %vm1501_vm13, %v5057_v33, %v5044_v6  ;;  %v6048_v33 = vld [vmem:[%s8444_s30 + $0x60] sm:$0xff]  ;;  %v6047_v6 = vld [vmem:[%s8444_s30 + $0x58] sm:$0xff] }
0x28c2   : > { %v5065_v29 = vmul.f32 %v7323_v19, %v5061_v60 }
0x28c4   : > { %v5016_v10 = vpop.permute.xlu1 %5015  ;;  %6687 = vmatpush3.msra.mxu1 %v5065_v29 }
0x28c5   : > { %6688 = vmatprep.subr.mxu1 %v7000_v1  ;;  %v5051_v19 = vsel %vm1491_vm12, %v8115_v52, %v5016_v10 }
0x28c8   : > { %v5042_v13 = vpop.permute.xlu1 %5041 }
0x28c9   : > { %v5060_v18 = vsel %vm1501_vm13, %v5056_v16, %v5042_v13  ;;  %v6036_v13 = vld [vmem:[%s8447_s10 + $0x1] ss:$0 sm:$0xff] }
0x28ca   : > { %v5064_v48 = vmul.f32 %v7385_v51, %v5060_v18 }
0x28cc   : > { %v5028_v21 = vpop.permute.xlu1 %5027  ;;  %6689 = vmatpush3.msra.mxu1 %v5064_v48 }
0x28cd   : > { %6690 = vmatprep.subr.mxu1 %v7000_v1  ;;  %v5055_v14 = vsel %vm1496_vm9, %v5051_v19, %v5028_v21  ;;  %v6046_v21 = vld [vmem:[%s8444_s30 + $0x50] sm:$0xff]  ;;  %v6045_v19 = vld [vmem:[%s8444_s30 + $0x48] sm:$0xff] }
0x28d0   : > { %v5040_v28 = vpop.permute.xlu1 %5039 }
0x28d1   : > { %v5059_v22 = vsel %vm1501_vm13, %v5055_v14, %v5040_v28  ;;  %v6044_v14 = vld [vmem:[%s8444_s30 + $0x40] sm:$0xff] }
0x28d2   : > { %v5063_v17 = vmul.f32 %v7332_v20, %v5059_v22  ;;  %v6042_v28 = vld [vmem:[%s8449_s7 + $0x1] ss:$0 sm:$0xff]  ;;  %s6900_s7 = scalar_lea.vmem %s5743_s1, 128 }
0x28d3   : > { %p6901_p11 = scmp.ne.s32.totalorder %s5743_s1, %s6900_s7 }
0x28d4   : > { %6691 = vmatpush3.msra.mxu1 %v5063_v17 }
0x28d5   : > { %6706 = vmatprep.subr.mxu1 %v7000_v1  ;;  %p6902_p12 = pnand %p6901_p11, %p7249_p5 }
0x28d7   : > { %p6903_p13 = pneg %p6902_p12 }
0x2973   : > { %v4892_v27 = vpop.f32.mrf.mxu1 }
0x2974   : > { %v4893_v51 = vadd.f32 %v6010_v26, %v4892_v27 }
0x2975   : > { %v6672_v46 = vpop.f32.mrf.mxu1 }
0x2976   : > { %6693 = vmatmul.mubr.msk.f32.vlgmr.msra.gmra.mxu1 %vm1341_vm1, %v4893_v51  ;;  %v6053_v51 = vld [vmem:[%s8451_s17 + $0x1] ss:$0 sm:$0xff] }
0x2977   : > { %6707 = vmatpush3.msra.mxu1 %v5238_v31  ;;  %6714 = vmatprep.mubr.msk.f32.mxu1 %vm7001_vm0, %v7000_v1 }
0x2978   : > { %6708 = vmatprep.subr.mxu1 %v7000_v1 }
0x2a36   : > { %v5136_v32 = vpop.f32.mrf.mxu1 }
0x2a37   : > { %v5140_v12 = vmul.f32 0.35355338, %v5136_v32 }
0x2a38   : > { %v6694_v24 = vpop.f32.mrf.mxu1 }
0x2a39   : > { %v5141_v20 = vsel %vm7412_vm2, -1e+09, %v5140_v12 }
0x2a3a   : > { %v5142_v35 = vsel %vm1341_vm1, %v5141_v20, -inf }
0x2a3b   : > { %5143 = vmax.xlane.f32.xlu1 %v5142_v35 }
0x2a4c   : > { %5235 = vrot.lane.b32.xlu1 %v5225_v36, %s8420_s2 }
0x2ac4   : > { %v5144_v8 = vpop.xlane.xlu1 %5143 }
0x2ac5   : > { %v5145_v52 = vsub.f32 %v5141_v20, %v5144_v8 }
0x2ac7   : > { %v5146_v38 = vmul.f32 1.442695, %v5145_v52 }
0x2ac8   : > { %v5236_v39 = vpop.permute.xlu1 %5235 }
0x2ac9   : > { %6892 = vpow2.f32 %v5146_v38  ;;  %6709 = vmatpush3.msra.mxu1 %v5236_v39  ;;  %v5645_v38 = vld [vmem:[%s7199_s27 + $0x10] sm:$0xff]  ;;  %v5644_v39 = vld [vmem:[%s7199_s27 + $0x8] sm:$0xff] }
0x2aca   : > { %6710 = vmatprep.subr.mxu1 %v7000_v1 }
0x2acb   : > { %6711 = vmatpush3.msra.mxu1 %v5234_v37  ;;  %v5646_v37 = vld [vmem:[%s7199_s27 + $0x18] sm:$0xff] }
0x2acc   : > { %6712 = vmatprep.subr.mxu1 %v7000_v1 }
0x2acd   : > { %6713 = vmatpush3.msra.mxu1 %v5232_v15  ;;  %v5643_v15 = vld [vmem:[%s7199_s27] sm:$0xff] }
0x2ace   : > { %6728 = vmatprep.subr.mxu1 %v7000_v1 }
0x2ad6   : > { %v6893_v4 = vpop.eup %6892 }
0x2ad7   : > { %6704 = vmatmul.mubr.msk.f32.vlgmr.msra.gmra.mxu0 %vm1341_vm1, %v6893_v4 }
0x2ad8   : > { %6725 = vmatprep.mubr.msk.f32.mxu0 %vm7001_vm0, %v7000_v1  ;;  %6718 = vmatpush3.msra.mxu0 %v6029_v34 }
0x2ad9   : > { %6719 = vmatprep.subr.mxu0 %v7000_v1 }
0x2ada   : > { %6720 = vmatpush3.msra.mxu0 %v6028_v40 }
0x2adb   : > { %6721 = vmatprep.subr.mxu0 %v7000_v1 }
0x2adc   : > { %6722 = vmatpush3.msra.mxu0 %v6027_v5 }
0x2add   : > { %6723 = vmatprep.subr.mxu0 %v7000_v1 }
0x2ade   : > { %6724 = vmatpush3.msra.mxu0 %v6026_v0 }
0x2adf   : > { %6739 = vmatprep.subr.mxu0 %v7000_v1 }
0x2b97   : > { %v5217_v43 = vpop.f32.mrf.mxu0 }
0x2b98   : > { %6894 = vrcp.f32 %v5217_v43  ;;  %v6057_v43 = vld [vmem:[%s8453_s0 + $0x1] ss:$0 sm:$0xff]  ;;  %s5729_s0 = scalar_lea.sflag [#allocation3], %s1178_s5 }
0x2b99   : > { %v6705_v44 = vpop.f32.mrf.mxu0 }
0x2ba5   : > { %v6895_v7 = vpop.eup %6894 }
0x2ba6   : > { %v5222_v23 = vmul.f32 %v6895_v7, %v6893_v4  ;;  %v6058_v7 = vld [vmem:[%s8388_s9 + $0x1] ss:$0 sm:$0xff]  ;;  %s6904_s9 = sshll.u32 %s7010_s8, 4  ;;  %s6905_s9 = int_to_ptr.vmem [resolvable:$false] %s6904_s9 }
0x2ba7   : > { %p6907_p0 = scmp.lt.s32.totalorder %s5743_s1, %s6905_s9 }
0x2ba8   : > { %6715 = vmatmul.mubr.msk.f32.vlgmr.msra.gmra.mxu1 %vm1341_vm1, %v5222_v23 }
0x2ba9   : > { %6736 = vmatprep.mubr.msk.f32.mxu1 %vm7001_vm0, %v7000_v1  ;;  %6729 = vmatpush3.msra.mxu1 %v6040_v61 }
0x2baa   : > { %6730 = vmatprep.subr.mxu1 %v7000_v1 }
0x2bab   : > { %6731 = vmatpush3.msra.mxu1 %v6039_v30 }
0x2bac   : > { %6732 = vmatprep.subr.mxu1 %v7000_v1 }
0x2c68   : > { %v5312_v53 = vpop.f32.mrf.mxu1 }
0x2c69   : > { %6726 = vmatmul.mubr.msk.f32.vlgmr.msra.gmra.mxu0 %vm1341_vm1, %v5312_v53  ;;  %v6059_v53 = vld [vmem:[%s8454_s4] ss:$0 sm:$0xff]  ;;  %s6906_s4 = scalar_lea.vmem %s6905_s9, 256 }
0x2c6a   : > { %v6716_v63 = vpop.f32.mrf.mxu1  ;;  %6755 = vmatprep.mubr.msk.f32.mxu0 %vm7001_vm0, %v7000_v1  ;;  %6740 = vmatpush3.msra.mxu0 %v6051_v41  ;;  %p6908_p1 = scmp.lt.s32.totalorder %s6906_s4, %s6900_s7 }
0x2c6b   : > { %6741 = vmatprep.subr.mxu0 %v7000_v1 }
0x2c6c   : > { %6742 = vmatpush3.msra.mxu0 %v6050_v62  ;;  %p6909_p2 = por %p6908_p1, %p6907_p0 }
0x2c6d   : > { %6743 = vmatprep.subr.mxu0 %v7000_v1 }
0x2c6e   : > { %6744 = vmatpush3.msra.mxu0 %v6049_v2  ;;  %p6910_p3 = pnand %p6909_p2, %p6903_p13 }
0x2c6f   : > { %6745 = vmatprep.subr.mxu0 %v7000_v1 }
0x2c70   : > { %6746 = vmatpush3.msra.mxu0 %v6048_v33 }
0x2c71   : > { %6747 = vmatprep.subr.mxu0 %v7000_v1 }
0x2c72   : > { %6748 = vmatpush3.msra.mxu0 %v6047_v6 }
0x2c73   : > { %6749 = vmatprep.subr.mxu0 %v7000_v1 }
0x2c74   : > { %6750 = vmatpush3.msra.mxu0 %v6046_v21 }
0x2c75   : > { %6751 = vmatprep.subr.mxu0 %v7000_v1 }
0x2c76   : > { %6752 = vmatpush3.msra.mxu0 %v6045_v19 }
0x2c77   : > { %6753 = vmatprep.subr.mxu0 %v7000_v1 }
0x2c78   : > { %6754 = vmatpush3.msra.mxu0 %v6044_v14 }
0x2d29   : > { %v5398_v45 = vpop.f32.mrf.mxu0 }
0x2d2a   : > { %v5399_v56 = vadd.f32 %v6031_v3, %v5398_v45 }
0x2d2b   : > { %v6727_v47 = vpop.f32.mrf.mxu0 }
0x2d2c   : > { %v5402_v49 = vadd.f32 %v5399_v56, %v8152_v58  ;;  %v6038_v58 = vld [vmem:[%s8443_s29 + $0x28] sm:$0xff] }
0x2d2d   : > { %6733 = vmatpush3.msra.mxu1 %v6038_v58 }
0x2d2e   : > { %v5407_v50 = vsel %vm1341_vm1, %v5402_v49, 0.0  ;;  %6734 = vmatprep.subr.mxu1 %v7000_v1 }
0x2d2f   : > { %5408 = vadd.xlane.f32.xlu0 %v5407_v50  ;;  %6735 = vmatpush3.msra.mxu1 %v6037_v42 }
0x2d30   : > { %6758 = vmatprep.subr.mxu1 %v7000_v1 }
0x2db8   : > { %v5409_v54 = vpop.xlane.xlu0 %5408 }
0x2db9   : > { %v5410_v25 = vmul.f32 0.03125, %v5409_v54 }
0x2dbb   : > { %v5411_v55 = vsub.f32 %v5402_v49, %v5410_v25 }
0x2dbd   : > { %v5412_v57 = vmul.f32 %v5411_v55, %v5411_v55 }
0x2dbf   : > { %v5413_v59 = vsel %vm1341_vm1, %v5412_v57, 0.0 }
0x2dc0   : > { %5414 = vadd.xlane.f32.xlu1 %v5413_v59 }
0x2e49   : > { %v5415_v60 = vpop.xlane.xlu1 %5414 }
0x2e4a   : > { %v5416_v29 = vmul.f32 0.03125, %v5415_v60 }
0x2e4c   : > { %v5417_v9 = vadd.f32 1e-05, %v5416_v29 }
0x2e4e   : > { %6896 = vrsqrt.f32 %v5417_v9 }
0x2e5b   : > { %v6897_v10 = vpop.eup %6896 }
0x2e5c   : > { %v5419_v16 = vmul.f32 %v6897_v10, %v5411_v55 }
0x2e5e   : > { %v5426_v18 = vmul.f32 %v6035_v11, %v5419_v16 }
0x2e60   : > { %v5433_v48 = vadd.f32 %v6036_v13, %v5426_v18 }
0x2e62   : > { %6737 = vmatmul.mubr.msk.f32.vlgmr.msra.gmra.mxu1 %vm1341_vm1, %v5433_v48 }
0x2e63   : > { %6766 = vmatprep.mubr.msk.f32.mxu1 %vm7001_vm0, %v7000_v1  ;;  %6759 = vmatpush3.msra.mxu1 %v5646_v37 }
0x2e64   : > { %6760 = vmatprep.subr.mxu1 %v7000_v1 }
0x2e65   : > { %6761 = vmatpush3.msra.mxu1 %v5645_v38 }
0x2e66   : > { %6762 = vmatprep.subr.mxu1 %v7000_v1 }
0x2e67   : > { %6763 = vmatpush3.msra.mxu1 %v5644_v39 }
0x2e68   : > { %6764 = vmatprep.subr.mxu1 %v7000_v1 }
0x2e69   : > { %6765 = vmatpush3.msra.mxu1 %v5643_v15 }
0x2f22   : > { %v5516_v22 = vpop.f32.mrf.mxu1 }
0x2f23   : > { %v5517_v17 = vadd.f32 %v6042_v28, %v5516_v22 }
0x2f24   : > { %v6738_v26 = vpop.f32.mrf.mxu1 }
0x2f25   : > { %v5520_v27 = vmax.f32 %v5517_v17, 0.0 }
0x2f27   : > { %6756 = vmatmul.mubr.msk.f32.vlgmr.msra.gmra.mxu0 %vm2013_vm3, %v5520_v27 }
0x2fe7   : > { %v5607_v46 = vpop.f32.mrf.mxu0 }
0x2fe8   : > { %v5608_v31 = vadd.f32 %v6053_v51, %v5607_v46 }
0x2fe9   : > { %v6757_v32 = vpop.f32.mrf.mxu0 }
0x2fea   : > { %v5611_v12 = vadd.f32 %v5608_v31, %v5433_v48 }
0x2fec   : > { %v5616_v24 = vsel %vm1341_vm1, %v5611_v12, 0.0 }
0x2fed   : > { %5617 = vadd.xlane.f32.xlu0 %v5616_v24 }
0x3076   : > { %v5618_v20 = vpop.xlane.xlu0 %5617 }
0x3077   : > { %v5619_v35 = vmul.f32 0.03125, %v5618_v20 }
0x3079   : > { %v5620_v36 = vsub.f32 %v5611_v12, %v5619_v35 }
0x307b   : > { %v5621_v8 = vmul.f32 %v5620_v36, %v5620_v36 }
0x307d   : > { %v5622_v52 = vsel %vm1341_vm1, %v5621_v8, 0.0 }
0x307e   : > { %5623 = vadd.xlane.f32.xlu0 %v5622_v52 }
0x3107   : > { %v5624_v4 = vpop.xlane.xlu0 %5623 }
0x3108   : > { %v5625_v34 = vmul.f32 0.03125, %v5624_v4 }
0x310a   : > { %v5626_v40 = vadd.f32 1e-05, %v5625_v34 }
0x310c   : > { %6898 = vrsqrt.f32 %v5626_v40 }
0x3119   : > { %v6899_v5 = vpop.eup %6898 }
0x311a   : > { %v5628_v44 = vmul.f32 %v6899_v5, %v5620_v36 }
0x311c   : > { %v5635_v23 = vmul.f32 %v6057_v43, %v5628_v44 }
0x311e   : > { %v5642_v0 = vadd.f32 %v6058_v7, %v5635_v23 }
0x3120   : > { %6767 = vmatmul.mubr.msk.f32.vlgmr.msra.gmra.mxu1 %vm1341_vm1, %v5642_v0 }
0x31e0   : > { %v5723_v1 = vpop.f32.mrf.mxu1 }
0x31e1   : > { %v5724_v63 = vadd.f32 %v6059_v53, %v5723_v1 }
0x31e2   : > { %v6768_v3 = vpop.f32.mrf.mxu1 }
0x31e3   : > { %5727 = vst [vmem:[%s1180_s15] sm:$0xff] %v5724_v63 }
0x31e4   : > { %6913 = shalt.err (!%p6910_p3)
}
0x31e5   : > { %s6914_s13 = scalar_lea.hbm %s8260_s6, 128  ;;  %s6918_s5 = scalar_lea.hbm %s8456_s3, 256 }
0x31e6   : > { %p6915_p4 = scmp.ne.s32.totalorder %s8260_s6, %s6914_s13  ;;  %p6919_p9 = scmp.lt.s32.totalorder %s8260_s6, %s8456_s3 }
0x31e7   : > { %p6920_p10 = scmp.lt.s32.totalorder %s6918_s5, %s6914_s13 }
0x31e8   : > { %p6916_p7 = pnand %p6915_p4, %p7249_p5 }
0x31e9   : > { %p6921_p11 = por %p6920_p10, %p6919_p9 }
0x31ea   : > { %p6917_p8 = pneg %p6916_p7 }
0x31ec   : > { %p6922_p12 = pnand %p6921_p11, %p6917_p8 }
0x31ee   : > { %6925 = shalt.err (!%p6922_p12)
}
0x31ef   : > { %6769 = dma.vmem_to_hbm [thread:$0]  (%p7249_p5), %s5743_s1, 128, %s8260_s6, %s5729_s0  }
0x31f0 PF: > { %s8458_s9 = sld [smem:[#allocation43_spill]]  ;;  %p6775_p13 = scmp.ge.s32.totalorder %s6960_s22, 2 }
0x31f2   : > { %p6772_p0 = pnand %p6775_p13, %p7253_p6 }
0x31f4   : > { %p6773_p1 = pneg %p6772_p0 }
0x31f6   : > { %s5754_s7 = sand.u32 1, %s8458_s9  }
0x31f7   : > { %s5755_s8 = scalar_lea.sflag [#allocation3], %s5754_s7 }
0x31f8   : > { %6943 = dma.done.wait (%p6773_p1), %s5755_s8, 128  }
0x31f9   : > { %6945 = vsyncadd (%p6773_p1), %s5755_s8, 4294967168  ;;  %s8460_s22 = sld [smem:[#allocation46_spill]]  ;;  %s8463_s15 = smov %s6952_s16 }
0x31fa   : > { %s8461_s28 = sld [smem:[#allocation44_spill]] }
0x31fb   : > { %s8462_s18 = sld [smem:[#allocation47_spill]] }
0x31ff   : > { %p87_p2 = scmp.ge.s32.totalorder %s8460_s22, 4  }
0x3200   : > { %s8464_s16 = smov %s8461_s28 }
0x3201   :  { %89 = sbr.rel (!%p87_p2) target bundleno = 95 (0x5f), region = 286 }
0x3206   :  { %5760 = vsyncpa [#allocation3], 1 }
0x3207   :  { %5762 = vsyncpa [#allocation3 + $0x1], 1 }

</bundles_post_ra>
